<compile_context>
chip_gen: v7x
topology: tpu7x:2x2x1
jax: 0.10.0
libtpu: 0.0.40
codegen_flags: <defaults>
</compile_context>

<pallas_src>
import jax
import jax.numpy as jnp
from jax.experimental import pallas as pl
from jax.experimental.pallas import tpu as pltpu


# ----------------------------------------------------------------------------
# Fused stage kernels: (linear+ReLU) -> DPIB bottleneck -> residual, all on the
# MXU with f32 accumulation; intermediates stay in VMEM/vregs.
# ----------------------------------------------------------------------------
def _stage_kernel(x_ref, w1_ref, b1_ref, wa_ref, ba_ref, wb_ref, bb_ref, o_ref):
    x = x_ref[...]
    # MLP / PointConv feature transform: y = relu(x @ W1 + b1)   (f32 acc)
    y = jnp.maximum(
        jnp.dot(x, w1_ref[...], preferred_element_type=jnp.float32) + b1_ref[...],
        0.0)
    # DPIB bottleneck: h = relu(y @ Wa + ba)
    h = jnp.maximum(
        jnp.dot(y.astype(jnp.bfloat16), wa_ref[...],
                preferred_element_type=jnp.float32) + ba_ref[...],
        0.0).astype(jnp.bfloat16)
    # DPIB expand + fused residual: z = relu(h @ Wb + bb + y)
    z = jnp.maximum(
        jnp.dot(h, wb_ref[...], preferred_element_type=jnp.float32)
        + bb_ref[...] + y,
        0.0)
    o_ref[...] = z.astype(o_ref.dtype)


def _stage_mlp6_kernel(x_ref, w1_ref, b1_ref, wa_ref, ba_ref, wb_ref, bb_ref,
                       w6_ref, b6_ref, o_ref):
    # Same as _stage_kernel, with the final 64->8 mlp6 fused in so the
    # 8-lane-wide output is produced in the same epilogue (no standalone
    # narrow-output pallas_call).
    x = x_ref[...]
    y = jnp.maximum(
        jnp.dot(x, w1_ref[...], preferred_element_type=jnp.float32) + b1_ref[...],
        0.0)
    h = jnp.maximum(
        jnp.dot(y.astype(jnp.bfloat16), wa_ref[...],
                preferred_element_type=jnp.float32) + ba_ref[...],
        0.0).astype(jnp.bfloat16)
    z = jnp.maximum(
        jnp.dot(h, wb_ref[...], preferred_element_type=jnp.float32)
        + bb_ref[...] + y,
        0.0)
    out = jnp.maximum(
        jnp.dot(z.astype(jnp.bfloat16), w6_ref[...],
                preferred_element_type=jnp.float32) + b6_ref[...],
        0.0)
    o_ref[...] = out.astype(o_ref.dtype)


def _pad_and_tile(rows):
    """Pick a row tile (multiple of 8, capped at 512) and the padded row count.

    Keeps >=2 grid steps whenever rows allow so the 'parallel' grid axis can be
    split across both TensorCores on v7x.
    """
    if rows >= 1024:
        tn = 512
    else:
        p16 = ((rows + 15) // 16) * 16
        tn = max(8, p16 // 2)
    padded = pl.cdiv(rows, tn) * tn
    return padded, tn


def fused_stage(x, w1, b1, wa, ba, wb, bb, w6=None, b6=None,
                out_dtype=jnp.bfloat16):
    """x: (rows, Cin) bf16.  Computes DPIB(relu(x@W1+b1)) [then mlp6]."""
    rows, cin = x.shape
    cmid = w1.shape[1]
    cout = w6.shape[1] if w6 is not None else cmid

    padded, tn = _pad_and_tile(rows)
    if padded != rows:
        x = jnp.pad(x, ((0, padded - rows), (0, 0)))
    grid = (padded // tn,)

    const = lambda i: (0, 0)  # weights/biases: whole array resident in VMEM
    in_specs = [pl.BlockSpec((tn, cin), lambda i: (i, 0)),
                pl.BlockSpec(w1.shape, const), pl.BlockSpec(b1.shape, const),
                pl.BlockSpec(wa.shape, const), pl.BlockSpec(ba.shape, const),
                pl.BlockSpec(wb.shape, const), pl.BlockSpec(bb.shape, const)]
    args = [x, w1, b1, wa, ba, wb, bb]
    kernel = _stage_kernel
    if w6 is not None:
        in_specs += [pl.BlockSpec(w6.shape, const), pl.BlockSpec(b6.shape, const)]
        args += [w6, b6]
        kernel = _stage_mlp6_kernel

    out = pl.pallas_call(
        kernel,
        out_shape=jax.ShapeDtypeStruct((padded, cout), out_dtype),
        grid_spec=pltpu.PrefetchScalarGridSpec(
            num_scalar_prefetch=0,
            grid=grid,
            in_specs=in_specs,
            out_specs=pl.BlockSpec((tn, cout), lambda i: (i, 0)),
        ),
        compiler_params=pltpu.CompilerParams(
            dimension_semantics=("parallel",),
            vmem_limit_bytes=32 * 1024 * 1024,
        ),
    )(*args)

    if padded != rows:
        out = out[:rows]
    return out


# ----------------------------------------------------------------------------
# Deterministic parameter construction (shapes follow the module's __init__).
# Weights bf16 (MXU operands), biases f32 (epilogue accumulation).
# ----------------------------------------------------------------------------
def _init_linear(key, cin, cout):
    k1, k2 = jax.random.split(key)
    w = (jax.random.normal(k1, (cin, cout), jnp.float32)
         / jnp.sqrt(float(cin))).astype(jnp.bfloat16)
    b = 0.01 * jax.random.normal(k2, (1, cout), jnp.float32)
    return {"w": w, "b": b}


def _init_dpib(key, c):
    k1, k2 = jax.random.split(key)
    return {"a": _init_linear(k1, c, max(c // 2, 1)),
            "b": _init_linear(k2, max(c // 2, 1), c)}


def init_attribute_encoder_params(key, Nin, Ns):
    keys = jax.random.split(key, 17)
    p = {}
    p["mlp1"] = _init_linear(keys[0], 3, 16)
    p["mlp2"] = _init_linear(keys[1], 16, 64)
    p["mlp3"] = _init_linear(keys[2], 64, 128)
    p["mlp4"] = _init_linear(keys[3], 128, 256)
    p["mlp5"] = _init_linear(keys[4], 256, 512)
    p["dpib1"] = _init_dpib(keys[5], 16)
    p["dpib2"] = _init_dpib(keys[6], 64)
    p["dpib3"] = _init_dpib(keys[7], 128)
    p["dpib4"] = _init_dpib(keys[8], 256)
    p["dpib5"] = _init_dpib(keys[9], 512)
    p["pconv1"] = _init_linear(keys[10], 512, 256)   # Nout = Nin // 2
    p["dpib6"] = _init_dpib(keys[11], 256)
    p["pconv2"] = _init_linear(keys[12], 256, 128)   # Nout = Nin // 4
    p["dpib7"] = _init_dpib(keys[13], 128)
    p["pconv3"] = _init_linear(keys[14], 128, 64)    # Nout = Ns
    p["dpib8"] = _init_dpib(keys[15], 64)
    p["mlp6"] = _init_linear(keys[16], 64, 8)
    return p


# ----------------------------------------------------------------------------
# Forward-pass glue: transposes / strided decimation in plain JAX (no gather),
# all dense compute inside the fused Pallas stages.
# ----------------------------------------------------------------------------
def _decimate(x, geo, B, n_in, n_out):
    """Uniform-stride point downsampling (static strided slice, no gather)."""
    stride = max(n_in // n_out, 1)
    c = x.shape[1]
    x = x.reshape(B, n_in, c)[:, ::stride, :][:, :n_out, :].reshape(B * n_out, c)
    geo = geo[:, ::stride, :][:, :n_out, :]
    return x, geo


def _stage(x, mlp, dpib, mlp6=None, out_dtype=jnp.bfloat16):
    w6 = mlp6["w"] if mlp6 is not None else None
    b6 = mlp6["b"] if mlp6 is not None else None
    return fused_stage(x, mlp["w"], mlp["b"],
                       dpib["a"]["w"], dpib["a"]["b"],
                       dpib["b"]["w"], dpib["b"]["b"],
                       w6, b6, out_dtype)


def attribute_encoder_forward(params, rgb, geometry, Nin, Ns):
    """rgb, geometry: (B, 3, Nin) float32 (PyTorch NCW).
    Returns (x: (B, 8, Ns) f32, geometry3: (B, 3, Ns) f32)."""
    B = rgb.shape[0]
    x = jnp.transpose(rgb, (0, 2, 1)).reshape(B * Nin, 3).astype(jnp.bfloat16)
    geo = jnp.transpose(geometry, (0, 2, 1))  # (B, Nin, 3)

    # Encoder trunk: each call is one fused (MLP_k + DPIB_k) kernel.
    x = _stage(x, params["mlp1"], params["dpib1"])
    x = _stage(x, params["mlp2"], params["dpib2"])
    x = _stage(x, params["mlp3"], params["dpib3"])
    x = _stage(x, params["mlp4"], params["dpib4"])
    x = _stage(x, params["mlp5"], params["dpib5"])

    # Downsampling stages: decimate, then fused (PointConv_k + DPIB_k) kernel.
    x, geo = _decimate(x, geo, B, Nin, Nin // 2)
    x = _stage(x, params["pconv1"], params["dpib6"])
    x, geo = _decimate(x, geo, B, Nin // 2, Nin // 4)
    x = _stage(x, params["pconv2"], params["dpib7"])
    x, geo = _decimate(x, geo, B, Nin // 4, Ns)
    # Final stage fuses PointConv3 + DPIB8 + mlp6 (narrow 8-lane output stays
    # in the same kernel epilogue), producing f32 directly.
    x = _stage(x, params["pconv3"], params["dpib8"], mlp6=params["mlp6"],
               out_dtype=jnp.float32)

    x = x.reshape(B, Ns, 8).transpose(0, 2, 1)          # (B, 8, Ns)
    geo3 = geo.transpose(0, 2, 1).astype(jnp.float32)   # (B, 3, Ns)
    return x, geo3


if __name__ == "__main__":
    B, Nin, Ns = 2, 64, 8
    key = jax.random.PRNGKey(0)
    k_rgb, k_geo, k_par = jax.random.split(key, 3)

    rgb = jax.random.uniform(k_rgb, (B, 3, Nin), jnp.float32)
    geometry = jax.random.uniform(k_geo, (B, 3, Nin), jnp.float32)
    params = init_attribute_encoder_params(k_par, Nin, Ns)

    fwd = jax.jit(lambda p, r, g: attribute_encoder_forward(p, r, g, Nin, Ns))
    x_out, geo_out = fwd(params, rgb, geometry)
    jax.block_until_ready((x_out, geo_out))

    assert x_out.shape == (B, 8, Ns), x_out.shape
    assert geo_out.shape == (B, 3, Ns), geo_out.shape
    assert jnp.all(jnp.isfinite(x_out)) and jnp.all(jnp.isfinite(geo_out))
    print("KERNEL_OK")
</pallas_src>

<mosaic_0001>
module attributes {stable_mosaic.version = 11 : i64} {
  func.func @_stage_kernel(%arg0: i32, %arg1: memref<64x3xbf16, #tpu.memory_space<vmem>>, %arg2: memref<3x16xbf16, #tpu.memory_space<vmem>>, %arg3: memref<1x16xf32, #tpu.memory_space<vmem>>, %arg4: memref<16x8xbf16, #tpu.memory_space<vmem>>, %arg5: memref<1x8xf32, #tpu.memory_space<vmem>>, %arg6: memref<8x16xbf16, #tpu.memory_space<vmem>>, %arg7: memref<1x16xf32, #tpu.memory_space<vmem>>, %arg8: memref<64x16xbf16, #tpu.memory_space<vmem>>) attributes {dimension_semantics = [#tpu.dimension_semantics<parallel>], iteration_bounds = array<i64: 2>, scalar_prefetch = 0 : i64, scratch_operands = 0 : i64, tpu.core_type = #tpu.core_type<tc>, window_params = [{transform_indices = @transform_0, window_bounds = array<i64: 64, 3>}, {pipeline_mode = #tpu.pipeline_mode<synchronous>, transform_indices = @transform_1, window_bounds = array<i64: 3, 16>}, {pipeline_mode = #tpu.pipeline_mode<synchronous>, transform_indices = @transform_2, window_bounds = array<i64: 1, 16>}, {pipeline_mode = #tpu.pipeline_mode<synchronous>, transform_indices = @transform_3, window_bounds = array<i64: 16, 8>}, {pipeline_mode = #tpu.pipeline_mode<synchronous>, transform_indices = @transform_4, window_bounds = array<i64: 1, 8>}, {pipeline_mode = #tpu.pipeline_mode<synchronous>, transform_indices = @transform_5, window_bounds = array<i64: 8, 16>}, {pipeline_mode = #tpu.pipeline_mode<synchronous>, transform_indices = @transform_6, window_bounds = array<i64: 1, 16>}, {transform_indices = @transform_7, window_bounds = array<i64: 64, 16>}]} {
    %c0 = arith.constant 0 : index
    %c0_0 = arith.constant 0 : index
    %0 = vector.load %arg1[%c0, %c0_0] : memref<64x3xbf16, #tpu.memory_space<vmem>>, vector<64x3xbf16>
    %c0_1 = arith.constant 0 : index
    %c0_2 = arith.constant 0 : index
    %1 = vector.load %arg2[%c0_1, %c0_2] : memref<3x16xbf16, #tpu.memory_space<vmem>>, vector<3x16xbf16>
    %cst = arith.constant dense<0.000000e+00> : vector<64x16xf32>
    %2 = tpu.matmul %0, %1, %cst {dimension_numbers = #tpu.dot_dimension_numbers<[1], [0], [0], [1], [0, 0, 1, 1], [], []>} : vector<64x3xbf16>, vector<3x16xbf16>, vector<64x16xf32> -> vector<64x16xf32>
    %c0_3 = arith.constant 0 : index
    %c0_4 = arith.constant 0 : index
    %3 = vector.load %arg3[%c0_3, %c0_4] : memref<1x16xf32, #tpu.memory_space<vmem>>, vector<1x16xf32>
    %4 = vector.broadcast %3 : vector<1x16xf32> to vector<64x16xf32>
    %5 = arith.addf %2, %4 : vector<64x16xf32>
    %cst_5 = arith.constant 0.000000e+00 : f32
    %6 = vector.broadcast %cst_5 : f32 to vector<64x16xf32>
    %7 = arith.maximumf %5, %6 : vector<64x16xf32>
    %8 = arith.truncf %7 : vector<64x16xf32> to vector<64x16xbf16>
    %c0_6 = arith.constant 0 : index
    %c0_7 = arith.constant 0 : index
    %9 = vector.load %arg4[%c0_6, %c0_7] : memref<16x8xbf16, #tpu.memory_space<vmem>>, vector<16x8xbf16>
    %cst_8 = arith.constant dense<0.000000e+00> : vector<64x8xf32>
    %10 = tpu.matmul %8, %9, %cst_8 {dimension_numbers = #tpu.dot_dimension_numbers<[1], [0], [0], [1], [0, 0, 1, 1], [], []>} : vector<64x16xbf16>, vector<16x8xbf16>, vector<64x8xf32> -> vector<64x8xf32>
    %c0_9 = arith.constant 0 : index
    %c0_10 = arith.constant 0 : index
    %11 = vector.load %arg5[%c0_9, %c0_10] : memref<1x8xf32, #tpu.memory_space<vmem>>, vector<1x8xf32>
    %12 = vector.broadcast %11 : vector<1x8xf32> to vector<64x8xf32>
    %13 = arith.addf %10, %12 : vector<64x8xf32>
    %cst_11 = arith.constant 0.000000e+00 : f32
    %14 = vector.broadcast %cst_11 : f32 to vector<64x8xf32>
    %15 = arith.maximumf %13, %14 : vector<64x8xf32>
    %16 = arith.truncf %15 : vector<64x8xf32> to vector<64x8xbf16>
    %c0_12 = arith.constant 0 : index
    %c0_13 = arith.constant 0 : index
    %17 = vector.load %arg6[%c0_12, %c0_13] : memref<8x16xbf16, #tpu.memory_space<vmem>>, vector<8x16xbf16>
    %cst_14 = arith.constant dense<0.000000e+00> : vector<64x16xf32>
    %18 = tpu.matmul %16, %17, %cst_14 {dimension_numbers = #tpu.dot_dimension_numbers<[1], [0], [0], [1], [0, 0, 1, 1], [], []>} : vector<64x8xbf16>, vector<8x16xbf16>, vector<64x16xf32> -> vector<64x16xf32>
    %c0_15 = arith.constant 0 : index
    %c0_16 = arith.constant 0 : index
    %19 = vector.load %arg7[%c0_15, %c0_16] : memref<1x16xf32, #tpu.memory_space<vmem>>, vector<1x16xf32>
    %20 = vector.broadcast %19 : vector<1x16xf32> to vector<64x16xf32>
    %21 = arith.addf %18, %20 : vector<64x16xf32>
    %22 = arith.addf %21, %7 : vector<64x16xf32>
    %cst_17 = arith.constant 0.000000e+00 : f32
    %23 = vector.broadcast %cst_17 : f32 to vector<64x16xf32>
    %24 = arith.maximumf %22, %23 : vector<64x16xf32>
    %25 = arith.truncf %24 : vector<64x16xf32> to vector<64x16xbf16>
    %c0_18 = arith.constant 0 : index
    %c0_19 = arith.constant 0 : index
    %26 = vector.load %arg8[%c0_18, %c0_19] : memref<64x16xbf16, #tpu.memory_space<vmem>>, vector<64x16xbf16>
    tpu.vector_store %arg8[%c0_18, %c0_19], %25 {strides = array<i32>} : memref<64x16xbf16, #tpu.memory_space<vmem>>, vector<64x16xbf16>,
    return
  }
  func.func @transform_0(%arg0: i32) -> (i32, i32) {
    %c0_i32 = arith.constant 0 : i32
    %c0_i32_0 = arith.constant 0 : i32
    return %arg0, %c0_i32 : i32, i32
  }
  func.func @transform_1(%arg0: i32) -> (i32, i32) {
    %c0_i32 = arith.constant 0 : i32
    %c0_i32_0 = arith.constant 0 : i32
    %c0_i32_1 = arith.constant 0 : i32
    return %c0_i32, %c0_i32_0 : i32, i32
  }
  func.func @transform_2(%arg0: i32) -> (i32, i32) {
    %c0_i32 = arith.constant 0 : i32
    %c0_i32_0 = arith.constant 0 : i32
    %c0_i32_1 = arith.constant 0 : i32
    return %c0_i32, %c0_i32_0 : i32, i32
  }
  func.func @transform_3(%arg0: i32) -> (i32, i32) {
    %c0_i32 = arith.constant 0 : i32
    %c0_i32_0 = arith.constant 0 : i32
    %c0_i32_1 = arith.constant 0 : i32
    return %c0_i32, %c0_i32_0 : i32, i32
  }
  func.func @transform_4(%arg0: i32) -> (i32, i32) {
    %c0_i32 = arith.constant 0 : i32
    %c0_i32_0 = arith.constant 0 : i32
    %c0_i32_1 = arith.constant 0 : i32
    return %c0_i32, %c0_i32_0 : i32, i32
  }
  func.func @transform_5(%arg0: i32) -> (i32, i32) {
    %c0_i32 = arith.constant 0 : i32
    %c0_i32_0 = arith.constant 0 : i32
    %c0_i32_1 = arith.constant 0 : i32
    return %c0_i32, %c0_i32_0 : i32, i32
  }
  func.func @transform_6(%arg0: i32) -> (i32, i32) {
    %c0_i32 = arith.constant 0 : i32
    %c0_i32_0 = arith.constant 0 : i32
    %c0_i32_1 = arith.constant 0 : i32
    return %c0_i32, %c0_i32_0 : i32, i32
  }
  func.func @transform_7(%arg0: i32) -> (i32, i32) {
    %c0_i32 = arith.constant 0 : i32
    %c0_i32_0 = arith.constant 0 : i32
    return %arg0, %c0_i32 : i32, i32
  }
}

module attributes {stable_mosaic.version = 11 : i64} {
  func.func @_stage_kernel(%arg0: i32, %arg1: memref<64x16xbf16, #tpu.memory_space<vmem>>, %arg2: memref<16x64xbf16, #tpu.memory_space<vmem>>, %arg3: memref<1x64xf32, #tpu.memory_space<vmem>>, %arg4: memref<64x32xbf16, #tpu.memory_space<vmem>>, %arg5: memref<1x32xf32, #tpu.memory_space<vmem>>, %arg6: memref<32x64xbf16, #tpu.memory_space<vmem>>, %arg7: memref<1x64xf32, #tpu.memory_space<vmem>>, %arg8: memref<64x64xbf16, #tpu.memory_space<vmem>>) attributes {dimension_semantics = [#tpu.dimension_semantics<parallel>], iteration_bounds = array<i64: 2>, scalar_prefetch = 0 : i64, scratch_operands = 0 : i64, tpu.core_type = #tpu.core_type<tc>, window_params = [{transform_indices = @transform_0, window_bounds = array<i64: 64, 16>}, {pipeline_mode = #tpu.pipeline_mode<synchronous>, transform_indices = @transform_1, window_bounds = array<i64: 16, 64>}, {pipeline_mode = #tpu.pipeline_mode<synchronous>, transform_indices = @transform_2, window_bounds = array<i64: 1, 64>}, {pipeline_mode = #tpu.pipeline_mode<synchronous>, transform_indices = @transform_3, window_bounds = array<i64: 64, 32>}, {pipeline_mode = #tpu.pipeline_mode<synchronous>, transform_indices = @transform_4, window_bounds = array<i64: 1, 32>}, {pipeline_mode = #tpu.pipeline_mode<synchronous>, transform_indices = @transform_5, window_bounds = array<i64: 32, 64>}, {pipeline_mode = #tpu.pipeline_mode<synchronous>, transform_indices = @transform_6, window_bounds = array<i64: 1, 64>}, {transform_indices = @transform_7, window_bounds = array<i64: 64, 64>}]} {
    %c0 = arith.constant 0 : index
    %c0_0 = arith.constant 0 : index
    %0 = vector.load %arg1[%c0, %c0_0] : memref<64x16xbf16, #tpu.memory_space<vmem>>, vector<64x16xbf16>
    %c0_1 = arith.constant 0 : index
    %c0_2 = arith.constant 0 : index
    %1 = vector.load %arg2[%c0_1, %c0_2] : memref<16x64xbf16, #tpu.memory_space<vmem>>, vector<16x64xbf16>
    %cst = arith.constant dense<0.000000e+00> : vector<64x64xf32>
    %2 = tpu.matmul %0, %1, %cst {dimension_numbers = #tpu.dot_dimension_numbers<[1], [0], [0], [1], [0, 0, 1, 1], [], []>} : vector<64x16xbf16>, vector<16x64xbf16>, vector<64x64xf32> -> vector<64x64xf32>
    %c0_3 = arith.constant 0 : index
    %c0_4 = arith.constant 0 : index
    %3 = vector.load %arg3[%c0_3, %c0_4] : memref<1x64xf32, #tpu.memory_space<vmem>>, vector<1x64xf32>
    %4 = vector.broadcast %3 : vector<1x64xf32> to vector<64x64xf32>
    %5 = arith.addf %2, %4 : vector<64x64xf32>
    %cst_5 = arith.constant 0.000000e+00 : f32
    %6 = vector.broadcast %cst_5 : f32 to vector<64x64xf32>
    %7 = arith.maximumf %5, %6 : vector<64x64xf32>
    %8 = arith.truncf %7 : vector<64x64xf32> to vector<64x64xbf16>
    %c0_6 = arith.constant 0 : index
    %c0_7 = arith.constant 0 : index
    %9 = vector.load %arg4[%c0_6, %c0_7] : memref<64x32xbf16, #tpu.memory_space<vmem>>, vector<64x32xbf16>
    %cst_8 = arith.constant dense<0.000000e+00> : vector<64x32xf32>
    %10 = tpu.matmul %8, %9, %cst_8 {dimension_numbers = #tpu.dot_dimension_numbers<[1], [0], [0], [1], [0, 0, 1, 1], [], []>} : vector<64x64xbf16>, vector<64x32xbf16>, vector<64x32xf32> -> vector<64x32xf32>
    %c0_9 = arith.constant 0 : index
    %c0_10 = arith.constant 0 : index
    %11 = vector.load %arg5[%c0_9, %c0_10] : memref<1x32xf32, #tpu.memory_space<vmem>>, vector<1x32xf32>
    %12 = vector.broadcast %11 : vector<1x32xf32> to vector<64x32xf32>
    %13 = arith.addf %10, %12 : vector<64x32xf32>
    %cst_11 = arith.constant 0.000000e+00 : f32
    %14 = vector.broadcast %cst_11 : f32 to vector<64x32xf32>
    %15 = arith.maximumf %13, %14 : vector<64x32xf32>
    %16 = arith.truncf %15 : vector<64x32xf32> to vector<64x32xbf16>
    %c0_12 = arith.constant 0 : index
    %c0_13 = arith.constant 0 : index
    %17 = vector.load %arg6[%c0_12, %c0_13] : memref<32x64xbf16, #tpu.memory_space<vmem>>, vector<32x64xbf16>
    %cst_14 = arith.constant dense<0.000000e+00> : vector<64x64xf32>
    %18 = tpu.matmul %16, %17, %cst_14 {dimension_numbers = #tpu.dot_dimension_numbers<[1], [0], [0], [1], [0, 0, 1, 1], [], []>} : vector<64x32xbf16>, vector<32x64xbf16>, vector<64x64xf32> -> vector<64x64xf32>
    %c0_15 = arith.constant 0 : index
    %c0_16 = arith.constant 0 : index
    %19 = vector.load %arg7[%c0_15, %c0_16] : memref<1x64xf32, #tpu.memory_space<vmem>>, vector<1x64xf32>
    %20 = vector.broadcast %19 : vector<1x64xf32> to vector<64x64xf32>
    %21 = arith.addf %18, %20 : vector<64x64xf32>
    %22 = arith.addf %21, %7 : vector<64x64xf32>
    %cst_17 = arith.constant 0.000000e+00 : f32
    %23 = vector.broadcast %cst_17 : f32 to vector<64x64xf32>
    %24 = arith.maximumf %22, %23 : vector<64x64xf32>
    %25 = arith.truncf %24 : vector<64x64xf32> to vector<64x64xbf16>
    %c0_18 = arith.constant 0 : index
    %c0_19 = arith.constant 0 : index
    %26 = vector.load %arg8[%c0_18, %c0_19] : memref<64x64xbf16, #tpu.memory_space<vmem>>, vector<64x64xbf16>
    tpu.vector_store %arg8[%c0_18, %c0_19], %25 {strides = array<i32>} : memref<64x64xbf16, #tpu.memory_space<vmem>>, vector<64x64xbf16>,
    return
  }
  func.func @transform_0(%arg0: i32) -> (i32, i32) {
    %c0_i32 = arith.constant 0 : i32
    %c0_i32_0 = arith.constant 0 : i32
    return %arg0, %c0_i32 : i32, i32
  }
  func.func @transform_1(%arg0: i32) -> (i32, i32) {
    %c0_i32 = arith.constant 0 : i32
    %c0_i32_0 = arith.constant 0 : i32
    %c0_i32_1 = arith.constant 0 : i32
    return %c0_i32, %c0_i32_0 : i32, i32
  }
  func.func @transform_2(%arg0: i32) -> (i32, i32) {
    %c0_i32 = arith.constant 0 : i32
    %c0_i32_0 = arith.constant 0 : i32
    %c0_i32_1 = arith.constant 0 : i32
    return %c0_i32, %c0_i32_0 : i32, i32
  }
  func.func @transform_3(%arg0: i32) -> (i32, i32) {
    %c0_i32 = arith.constant 0 : i32
    %c0_i32_0 = arith.constant 0 : i32
    %c0_i32_1 = arith.constant 0 : i32
    return %c0_i32, %c0_i32_0 : i32, i32
  }
  func.func @transform_4(%arg0: i32) -> (i32, i32) {
    %c0_i32 = arith.constant 0 : i32
    %c0_i32_0 = arith.constant 0 : i32
    %c0_i32_1 = arith.constant 0 : i32
    return %c0_i32, %c0_i32_0 : i32, i32
  }
  func.func @transform_5(%arg0: i32) -> (i32, i32) {
    %c0_i32 = arith.constant 0 : i32
    %c0_i32_0 = arith.constant 0 : i32
    %c0_i32_1 = arith.constant 0 : i32
    return %c0_i32, %c0_i32_0 : i32, i32
  }
  func.func @transform_6(%arg0: i32) -> (i32, i32) {
    %c0_i32 = arith.constant 0 : i32
    %c0_i32_0 = arith.constant 0 : i32
    %c0_i32_1 = arith.constant 0 : i32
    return %c0_i32, %c0_i32_0 : i32, i32
  }
  func.func @transform_7(%arg0: i32) -> (i32, i32) {
    %c0_i32 = arith.constant 0 : i32
    %c0_i32_0 = arith.constant 0 : i32
    return %arg0, %c0_i32 : i32, i32
  }
}

module attributes {stable_mosaic.version = 11 : i64} {
  func.func @_stage_kernel(%arg0: i32, %arg1: memref<64x64xbf16, #tpu.memory_space<vmem>>, %arg2: memref<64x128xbf16, #tpu.memory_space<vmem>>, %arg3: memref<1x128xf32, #tpu.memory_space<vmem>>, %arg4: memref<128x64xbf16, #tpu.memory_space<vmem>>, %arg5: memref<1x64xf32, #tpu.memory_space<vmem>>, %arg6: memref<64x128xbf16, #tpu.memory_space<vmem>>, %arg7: memref<1x128xf32, #tpu.memory_space<vmem>>, %arg8: memref<64x128xbf16, #tpu.memory_space<vmem>>) attributes {dimension_semantics = [#tpu.dimension_semantics<parallel>], iteration_bounds = array<i64: 2>, scalar_prefetch = 0 : i64, scratch_operands = 0 : i64, tpu.core_type = #tpu.core_type<tc>, window_params = [{transform_indices = @transform_0, window_bounds = array<i64: 64, 64>}, {pipeline_mode = #tpu.pipeline_mode<synchronous>, transform_indices = @transform_1, window_bounds = array<i64: 64, 128>}, {pipeline_mode = #tpu.pipeline_mode<synchronous>, transform_indices = @transform_2, window_bounds = array<i64: 1, 128>}, {pipeline_mode = #tpu.pipeline_mode<synchronous>, transform_indices = @transform_3, window_bounds = array<i64: 128, 64>}, {pipeline_mode = #tpu.pipeline_mode<synchronous>, transform_indices = @transform_4, window_bounds = array<i64: 1, 64>}, {pipeline_mode = #tpu.pipeline_mode<synchronous>, transform_indices = @transform_5, window_bounds = array<i64: 64, 128>}, {pipeline_mode = #tpu.pipeline_mode<synchronous>, transform_indices = @transform_6, window_bounds = array<i64: 1, 128>}, {transform_indices = @transform_7, window_bounds = array<i64: 64, 128>}]} {
    %c0 = arith.constant 0 : index
    %c0_0 = arith.constant 0 : index
    %0 = vector.load %arg1[%c0, %c0_0] : memref<64x64xbf16, #tpu.memory_space<vmem>>, vector<64x64xbf16>
    %c0_1 = arith.constant 0 : index
    %c0_2 = arith.constant 0 : index
    %1 = vector.load %arg2[%c0_1, %c0_2] : memref<64x128xbf16, #tpu.memory_space<vmem>>, vector<64x128xbf16>
    %cst = arith.constant dense<0.000000e+00> : vector<64x128xf32>
    %2 = tpu.matmul %0, %1, %cst {dimension_numbers = #tpu.dot_dimension_numbers<[1], [0], [0], [1], [0, 0, 1, 1], [], []>} : vector<64x64xbf16>, vector<64x128xbf16>, vector<64x128xf32> -> vector<64x128xf32>
    %c0_3 = arith.constant 0 : index
    %c0_4 = arith.constant 0 : index
    %3 = vector.load %arg3[%c0_3, %c0_4] : memref<1x128xf32, #tpu.memory_space<vmem>>, vector<1x128xf32>
    %4 = vector.broadcast %3 : vector<1x128xf32> to vector<64x128xf32>
    %5 = arith.addf %2, %4 : vector<64x128xf32>
    %cst_5 = arith.constant 0.000000e+00 : f32
    %6 = vector.broadcast %cst_5 : f32 to vector<64x128xf32>
    %7 = arith.maximumf %5, %6 : vector<64x128xf32>
    %8 = arith.truncf %7 : vector<64x128xf32> to vector<64x128xbf16>
    %c0_6 = arith.constant 0 : index
    %c0_7 = arith.constant 0 : index
    %9 = vector.load %arg4[%c0_6, %c0_7] : memref<128x64xbf16, #tpu.memory_space<vmem>>, vector<128x64xbf16>
    %cst_8 = arith.constant dense<0.000000e+00> : vector<64x64xf32>
    %10 = tpu.matmul %8, %9, %cst_8 {dimension_numbers = #tpu.dot_dimension_numbers<[1], [0], [0], [1], [0, 0, 1, 1], [], []>} : vector<64x128xbf16>, vector<128x64xbf16>, vector<64x64xf32> -> vector<64x64xf32>
    %c0_9 = arith.constant 0 : index
    %c0_10 = arith.constant 0 : index
    %11 = vector.load %arg5[%c0_9, %c0_10] : memref<1x64xf32, #tpu.memory_space<vmem>>, vector<1x64xf32>
    %12 = vector.broadcast %11 : vector<1x64xf32> to vector<64x64xf32>
    %13 = arith.addf %10, %12 : vector<64x64xf32>
    %cst_11 = arith.constant 0.000000e+00 : f32
    %14 = vector.broadcast %cst_11 : f32 to vector<64x64xf32>
    %15 = arith.maximumf %13, %14 : vector<64x64xf32>
    %16 = arith.truncf %15 : vector<64x64xf32> to vector<64x64xbf16>
    %c0_12 = arith.constant 0 : index
    %c0_13 = arith.constant 0 : index
    %17 = vector.load %arg6[%c0_12, %c0_13] : memref<64x128xbf16, #tpu.memory_space<vmem>>, vector<64x128xbf16>
    %cst_14 = arith.constant dense<0.000000e+00> : vector<64x128xf32>
    %18 = tpu.matmul %16, %17, %cst_14 {dimension_numbers = #tpu.dot_dimension_numbers<[1], [0], [0], [1], [0, 0, 1, 1], [], []>} : vector<64x64xbf16>, vector<64x128xbf16>, vector<64x128xf32> -> vector<64x128xf32>
    %c0_15 = arith.constant 0 : index
    %c0_16 = arith.constant 0 : index
    %19 = vector.load %arg7[%c0_15, %c0_16] : memref<1x128xf32, #tpu.memory_space<vmem>>, vector<1x128xf32>
    %20 = vector.broadcast %19 : vector<1x128xf32> to vector<64x128xf32>
    %21 = arith.addf %18, %20 : vector<64x128xf32>
    %22 = arith.addf %21, %7 : vector<64x128xf32>
    %cst_17 = arith.constant 0.000000e+00 : f32
    %23 = vector.broadcast %cst_17 : f32 to vector<64x128xf32>
    %24 = arith.maximumf %22, %23 : vector<64x128xf32>
    %25 = arith.truncf %24 : vector<64x128xf32> to vector<64x128xbf16>
    %c0_18 = arith.constant 0 : index
    %c0_19 = arith.constant 0 : index
    %26 = vector.load %arg8[%c0_18, %c0_19] : memref<64x128xbf16, #tpu.memory_space<vmem>>, vector<64x128xbf16>
    tpu.vector_store %arg8[%c0_18, %c0_19], %25 {strides = array<i32>} : memref<64x128xbf16, #tpu.memory_space<vmem>>, vector<64x128xbf16>,
    return
  }
  func.func @transform_0(%arg0: i32) -> (i32, i32) {
    %c0_i32 = arith.constant 0 : i32
    %c0_i32_0 = arith.constant 0 : i32
    return %arg0, %c0_i32 : i32, i32
  }
  func.func @transform_1(%arg0: i32) -> (i32, i32) {
    %c0_i32 = arith.constant 0 : i32
    %c0_i32_0 = arith.constant 0 : i32
    %c0_i32_1 = arith.constant 0 : i32
    return %c0_i32, %c0_i32_0 : i32, i32
  }
  func.func @transform_2(%arg0: i32) -> (i32, i32) {
    %c0_i32 = arith.constant 0 : i32
    %c0_i32_0 = arith.constant 0 : i32
    %c0_i32_1 = arith.constant 0 : i32
    return %c0_i32, %c0_i32_0 : i32, i32
  }
  func.func @transform_3(%arg0: i32) -> (i32, i32) {
    %c0_i32 = arith.constant 0 : i32
    %c0_i32_0 = arith.constant 0 : i32
    %c0_i32_1 = arith.constant 0 : i32
    return %c0_i32, %c0_i32_0 : i32, i32
  }
  func.func @transform_4(%arg0: i32) -> (i32, i32) {
    %c0_i32 = arith.constant 0 : i32
    %c0_i32_0 = arith.constant 0 : i32
    %c0_i32_1 = arith.constant 0 : i32
    return %c0_i32, %c0_i32_0 : i32, i32
  }
  func.func @transform_5(%arg0: i32) -> (i32, i32) {
    %c0_i32 = arith.constant 0 : i32
    %c0_i32_0 = arith.constant 0 : i32
    %c0_i32_1 = arith.constant 0 : i32
    return %c0_i32, %c0_i32_0 : i32, i32
  }
  func.func @transform_6(%arg0: i32) -> (i32, i32) {
    %c0_i32 = arith.constant 0 : i32
    %c0_i32_0 = arith.constant 0 : i32
    %c0_i32_1 = arith.constant 0 : i32
    return %c0_i32, %c0_i32_0 : i32, i32
  }
  func.func @transform_7(%arg0: i32) -> (i32, i32) {
    %c0_i32 = arith.constant 0 : i32
    %c0_i32_0 = arith.constant 0 : i32
    return %arg0, %c0_i32 : i32, i32
  }
}

module attributes {stable_mosaic.version = 11 : i64} {
  func.func @_stage_kernel(%arg0: i32, %arg1: memref<64x128xbf16, #tpu.memory_space<vmem>>, %arg2: memref<128x256xbf16, #tpu.memory_space<vmem>>, %arg3: memref<1x256xf32, #tpu.memory_space<vmem>>, %arg4: memref<256x128xbf16, #tpu.memory_space<vmem>>, %arg5: memref<1x128xf32, #tpu.memory_space<vmem>>, %arg6: memref<128x256xbf16, #tpu.memory_space<vmem>>, %arg7: memref<1x256xf32, #tpu.memory_space<vmem>>, %arg8: memref<64x256xbf16, #tpu.memory_space<vmem>>) attributes {dimension_semantics = [#tpu.dimension_semantics<parallel>], iteration_bounds = array<i64: 2>, scalar_prefetch = 0 : i64, scratch_operands = 0 : i64, tpu.core_type = #tpu.core_type<tc>, window_params = [{transform_indices = @transform_0, window_bounds = array<i64: 64, 128>}, {pipeline_mode = #tpu.pipeline_mode<synchronous>, transform_indices = @transform_1, window_bounds = array<i64: 128, 256>}, {pipeline_mode = #tpu.pipeline_mode<synchronous>, transform_indices = @transform_2, window_bounds = array<i64: 1, 256>}, {pipeline_mode = #tpu.pipeline_mode<synchronous>, transform_indices = @transform_3, window_bounds = array<i64: 256, 128>}, {pipeline_mode = #tpu.pipeline_mode<synchronous>, transform_indices = @transform_4, window_bounds = array<i64: 1, 128>}, {pipeline_mode = #tpu.pipeline_mode<synchronous>, transform_indices = @transform_5, window_bounds = array<i64: 128, 256>}, {pipeline_mode = #tpu.pipeline_mode<synchronous>, transform_indices = @transform_6, window_bounds = array<i64: 1, 256>}, {transform_indices = @transform_7, window_bounds = array<i64: 64, 256>}]} {
    %c0 = arith.constant 0 : index
    %c0_0 = arith.constant 0 : index
    %0 = vector.load %arg1[%c0, %c0_0] : memref<64x128xbf16, #tpu.memory_space<vmem>>, vector<64x128xbf16>
    %c0_1 = arith.constant 0 : index
    %c0_2 = arith.constant 0 : index
    %1 = vector.load %arg2[%c0_1, %c0_2] : memref<128x256xbf16, #tpu.memory_space<vmem>>, vector<128x256xbf16>
    %cst = arith.constant dense<0.000000e+00> : vector<64x256xf32>
    %2 = tpu.matmul %0, %1, %cst {dimension_numbers = #tpu.dot_dimension_numbers<[1], [0], [0], [1], [0, 0, 1, 1], [], []>} : vector<64x128xbf16>, vector<128x256xbf16>, vector<64x256xf32> -> vector<64x256xf32>
    %c0_3 = arith.constant 0 : index
    %c0_4 = arith.constant 0 : index
    %3 = vector.load %arg3[%c0_3, %c0_4] : memref<1x256xf32, #tpu.memory_space<vmem>>, vector<1x256xf32>
    %4 = vector.broadcast %3 : vector<1x256xf32> to vector<64x256xf32>
    %5 = arith.addf %2, %4 : vector<64x256xf32>
    %cst_5 = arith.constant 0.000000e+00 : f32
    %6 = vector.broadcast %cst_5 : f32 to vector<64x256xf32>
    %7 = arith.maximumf %5, %6 : vector<64x256xf32>
    %8 = arith.truncf %7 : vector<64x256xf32> to vector<64x256xbf16>
    %c0_6 = arith.constant 0 : index
    %c0_7 = arith.constant 0 : index
    %9 = vector.load %arg4[%c0_6, %c0_7] : memref<256x128xbf16, #tpu.memory_space<vmem>>, vector<256x128xbf16>
    %cst_8 = arith.constant dense<0.000000e+00> : vector<64x128xf32>
    %10 = tpu.matmul %8, %9, %cst_8 {dimension_numbers = #tpu.dot_dimension_numbers<[1], [0], [0], [1], [0, 0, 1, 1], [], []>} : vector<64x256xbf16>, vector<256x128xbf16>, vector<64x128xf32> -> vector<64x128xf32>
    %c0_9 = arith.constant 0 : index
    %c0_10 = arith.constant 0 : index
    %11 = vector.load %arg5[%c0_9, %c0_10] : memref<1x128xf32, #tpu.memory_space<vmem>>, vector<1x128xf32>
    %12 = vector.broadcast %11 : vector<1x128xf32> to vector<64x128xf32>
    %13 = arith.addf %10, %12 : vector<64x128xf32>
    %cst_11 = arith.constant 0.000000e+00 : f32
    %14 = vector.broadcast %cst_11 : f32 to vector<64x128xf32>
    %15 = arith.maximumf %13, %14 : vector<64x128xf32>
    %16 = arith.truncf %15 : vector<64x128xf32> to vector<64x128xbf16>
    %c0_12 = arith.constant 0 : index
    %c0_13 = arith.constant 0 : index
    %17 = vector.load %arg6[%c0_12, %c0_13] : memref<128x256xbf16, #tpu.memory_space<vmem>>, vector<128x256xbf16>
    %cst_14 = arith.constant dense<0.000000e+00> : vector<64x256xf32>
    %18 = tpu.matmul %16, %17, %cst_14 {dimension_numbers = #tpu.dot_dimension_numbers<[1], [0], [0], [1], [0, 0, 1, 1], [], []>} : vector<64x128xbf16>, vector<128x256xbf16>, vector<64x256xf32> -> vector<64x256xf32>
    %c0_15 = arith.constant 0 : index
    %c0_16 = arith.constant 0 : index
    %19 = vector.load %arg7[%c0_15, %c0_16] : memref<1x256xf32, #tpu.memory_space<vmem>>, vector<1x256xf32>
    %20 = vector.broadcast %19 : vector<1x256xf32> to vector<64x256xf32>
    %21 = arith.addf %18, %20 : vector<64x256xf32>
    %22 = arith.addf %21, %7 : vector<64x256xf32>
    %cst_17 = arith.constant 0.000000e+00 : f32
    %23 = vector.broadcast %cst_17 : f32 to vector<64x256xf32>
    %24 = arith.maximumf %22, %23 : vector<64x256xf32>
    %25 = arith.truncf %24 : vector<64x256xf32> to vector<64x256xbf16>
    %c0_18 = arith.constant 0 : index
    %c0_19 = arith.constant 0 : index
    %26 = vector.load %arg8[%c0_18, %c0_19] : memref<64x256xbf16, #tpu.memory_space<vmem>>, vector<64x256xbf16>
    tpu.vector_store %arg8[%c0_18, %c0_19], %25 {strides = array<i32>} : memref<64x256xbf16, #tpu.memory_space<vmem>>, vector<64x256xbf16>,
    return
  }
  func.func @transform_0(%arg0: i32) -> (i32, i32) {
    %c0_i32 = arith.constant 0 : i32
    %c0_i32_0 = arith.constant 0 : i32
    return %arg0, %c0_i32 : i32, i32
  }
  func.func @transform_1(%arg0: i32) -> (i32, i32) {
    %c0_i32 = arith.constant 0 : i32
    %c0_i32_0 = arith.constant 0 : i32
    %c0_i32_1 = arith.constant 0 : i32
    return %c0_i32, %c0_i32_0 : i32, i32
  }
  func.func @transform_2(%arg0: i32) -> (i32, i32) {
    %c0_i32 = arith.constant 0 : i32
    %c0_i32_0 = arith.constant 0 : i32
    %c0_i32_1 = arith.constant 0 : i32
    return %c0_i32, %c0_i32_0 : i32, i32
  }
  func.func @transform_3(%arg0: i32) -> (i32, i32) {
    %c0_i32 = arith.constant 0 : i32
    %c0_i32_0 = arith.constant 0 : i32
    %c0_i32_1 = arith.constant 0 : i32
    return %c0_i32, %c0_i32_0 : i32, i32
  }
  func.func @transform_4(%arg0: i32) -> (i32, i32) {
    %c0_i32 = arith.constant 0 : i32
    %c0_i32_0 = arith.constant 0 : i32
    %c0_i32_1 = arith.constant 0 : i32
    return %c0_i32, %c0_i32_0 : i32, i32
  }
  func.func @transform_5(%arg0: i32) -> (i32, i32) {
    %c0_i32 = arith.constant 0 : i32
    %c0_i32_0 = arith.constant 0 : i32
    %c0_i32_1 = arith.constant 0 : i32
    return %c0_i32, %c0_i32_0 : i32, i32
  }
  func.func @transform_6(%arg0: i32) -> (i32, i32) {
    %c0_i32 = arith.constant 0 : i32
    %c0_i32_0 = arith.constant 0 : i32
    %c0_i32_1 = arith.constant 0 : i32
    return %c0_i32, %c0_i32_0 : i32, i32
  }
  func.func @transform_7(%arg0: i32) -> (i32, i32) {
    %c0_i32 = arith.constant 0 : i32
    %c0_i32_0 = arith.constant 0 : i32
    return %arg0, %c0_i32 : i32, i32
  }
}

module attributes {stable_mosaic.version = 11 : i64} {
  func.func @_stage_kernel(%arg0: i32, %arg1: memref<64x256xbf16, #tpu.memory_space<vmem>>, %arg2: memref<256x512xbf16, #tpu.memory_space<vmem>>, %arg3: memref<1x512xf32, #tpu.memory_space<vmem>>, %arg4: memref<512x256xbf16, #tpu.memory_space<vmem>>, %arg5: memref<1x256xf32, #tpu.memory_space<vmem>>, %arg6: memref<256x512xbf16, #tpu.memory_space<vmem>>, %arg7: memref<1x512xf32, #tpu.memory_space<vmem>>, %arg8: memref<64x512xbf16, #tpu.memory_space<vmem>>) attributes {dimension_semantics = [#tpu.dimension_semantics<parallel>], iteration_bounds = array<i64: 2>, scalar_prefetch = 0 : i64, scratch_operands = 0 : i64, tpu.core_type = #tpu.core_type<tc>, window_params = [{transform_indices = @transform_0, window_bounds = array<i64: 64, 256>}, {pipeline_mode = #tpu.pipeline_mode<synchronous>, transform_indices = @transform_1, window_bounds = array<i64: 256, 512>}, {pipeline_mode = #tpu.pipeline_mode<synchronous>, transform_indices = @transform_2, window_bounds = array<i64: 1, 512>}, {pipeline_mode = #tpu.pipeline_mode<synchronous>, transform_indices = @transform_3, window_bounds = array<i64: 512, 256>}, {pipeline_mode = #tpu.pipeline_mode<synchronous>, transform_indices = @transform_4, window_bounds = array<i64: 1, 256>}, {pipeline_mode = #tpu.pipeline_mode<synchronous>, transform_indices = @transform_5, window_bounds = array<i64: 256, 512>}, {pipeline_mode = #tpu.pipeline_mode<synchronous>, transform_indices = @transform_6, window_bounds = array<i64: 1, 512>}, {transform_indices = @transform_7, window_bounds = array<i64: 64, 512>}]} {
    %c0 = arith.constant 0 : index
    %c0_0 = arith.constant 0 : index
    %0 = vector.load %arg1[%c0, %c0_0] : memref<64x256xbf16, #tpu.memory_space<vmem>>, vector<64x256xbf16>
    %c0_1 = arith.constant 0 : index
    %c0_2 = arith.constant 0 : index
    %1 = vector.load %arg2[%c0_1, %c0_2] : memref<256x512xbf16, #tpu.memory_space<vmem>>, vector<256x512xbf16>
    %cst = arith.constant dense<0.000000e+00> : vector<64x512xf32>
    %2 = tpu.matmul %0, %1, %cst {dimension_numbers = #tpu.dot_dimension_numbers<[1], [0], [0], [1], [0, 0, 1, 1], [], []>} : vector<64x256xbf16>, vector<256x512xbf16>, vector<64x512xf32> -> vector<64x512xf32>
    %c0_3 = arith.constant 0 : index
    %c0_4 = arith.constant 0 : index
    %3 = vector.load %arg3[%c0_3, %c0_4] : memref<1x512xf32, #tpu.memory_space<vmem>>, vector<1x512xf32>
    %4 = vector.broadcast %3 : vector<1x512xf32> to vector<64x512xf32>
    %5 = arith.addf %2, %4 : vector<64x512xf32>
    %cst_5 = arith.constant 0.000000e+00 : f32
    %6 = vector.broadcast %cst_5 : f32 to vector<64x512xf32>
    %7 = arith.maximumf %5, %6 : vector<64x512xf32>
    %8 = arith.truncf %7 : vector<64x512xf32> to vector<64x512xbf16>
    %c0_6 = arith.constant 0 : index
    %c0_7 = arith.constant 0 : index
    %9 = vector.load %arg4[%c0_6, %c0_7] : memref<512x256xbf16, #tpu.memory_space<vmem>>, vector<512x256xbf16>
    %cst_8 = arith.constant dense<0.000000e+00> : vector<64x256xf32>
    %10 = tpu.matmul %8, %9, %cst_8 {dimension_numbers = #tpu.dot_dimension_numbers<[1], [0], [0], [1], [0, 0, 1, 1], [], []>} : vector<64x512xbf16>, vector<512x256xbf16>, vector<64x256xf32> -> vector<64x256xf32>
    %c0_9 = arith.constant 0 : index
    %c0_10 = arith.constant 0 : index
    %11 = vector.load %arg5[%c0_9, %c0_10] : memref<1x256xf32, #tpu.memory_space<vmem>>, vector<1x256xf32>
    %12 = vector.broadcast %11 : vector<1x256xf32> to vector<64x256xf32>
    %13 = arith.addf %10, %12 : vector<64x256xf32>
    %cst_11 = arith.constant 0.000000e+00 : f32
    %14 = vector.broadcast %cst_11 : f32 to vector<64x256xf32>
    %15 = arith.maximumf %13, %14 : vector<64x256xf32>
    %16 = arith.truncf %15 : vector<64x256xf32> to vector<64x256xbf16>
    %c0_12 = arith.constant 0 : index
    %c0_13 = arith.constant 0 : index
    %17 = vector.load %arg6[%c0_12, %c0_13] : memref<256x512xbf16, #tpu.memory_space<vmem>>, vector<256x512xbf16>
    %cst_14 = arith.constant dense<0.000000e+00> : vector<64x512xf32>
    %18 = tpu.matmul %16, %17, %cst_14 {dimension_numbers = #tpu.dot_dimension_numbers<[1], [0], [0], [1], [0, 0, 1, 1], [], []>} : vector<64x256xbf16>, vector<256x512xbf16>, vector<64x512xf32> -> vector<64x512xf32>
    %c0_15 = arith.constant 0 : index
    %c0_16 = arith.constant 0 : index
    %19 = vector.load %arg7[%c0_15, %c0_16] : memref<1x512xf32, #tpu.memory_space<vmem>>, vector<1x512xf32>
    %20 = vector.broadcast %19 : vector<1x512xf32> to vector<64x512xf32>
    %21 = arith.addf %18, %20 : vector<64x512xf32>
    %22 = arith.addf %21, %7 : vector<64x512xf32>
    %cst_17 = arith.constant 0.000000e+00 : f32
    %23 = vector.broadcast %cst_17 : f32 to vector<64x512xf32>
    %24 = arith.maximumf %22, %23 : vector<64x512xf32>
    %25 = arith.truncf %24 : vector<64x512xf32> to vector<64x512xbf16>
    %c0_18 = arith.constant 0 : index
    %c0_19 = arith.constant 0 : index
    %26 = vector.load %arg8[%c0_18, %c0_19] : memref<64x512xbf16, #tpu.memory_space<vmem>>, vector<64x512xbf16>
    tpu.vector_store %arg8[%c0_18, %c0_19], %25 {strides = array<i32>} : memref<64x512xbf16, #tpu.memory_space<vmem>>, vector<64x512xbf16>,
    return
  }
  func.func @transform_0(%arg0: i32) -> (i32, i32) {
    %c0_i32 = arith.constant 0 : i32
    %c0_i32_0 = arith.constant 0 : i32
    return %arg0, %c0_i32 : i32, i32
  }
  func.func @transform_1(%arg0: i32) -> (i32, i32) {
    %c0_i32 = arith.constant 0 : i32
    %c0_i32_0 = arith.constant 0 : i32
    %c0_i32_1 = arith.constant 0 : i32
    return %c0_i32, %c0_i32_0 : i32, i32
  }
  func.func @transform_2(%arg0: i32) -> (i32, i32) {
    %c0_i32 = arith.constant 0 : i32
    %c0_i32_0 = arith.constant 0 : i32
    %c0_i32_1 = arith.constant 0 : i32
    return %c0_i32, %c0_i32_0 : i32, i32
  }
  func.func @transform_3(%arg0: i32) -> (i32, i32) {
    %c0_i32 = arith.constant 0 : i32
    %c0_i32_0 = arith.constant 0 : i32
    %c0_i32_1 = arith.constant 0 : i32
    return %c0_i32, %c0_i32_0 : i32, i32
  }
  func.func @transform_4(%arg0: i32) -> (i32, i32) {
    %c0_i32 = arith.constant 0 : i32
    %c0_i32_0 = arith.constant 0 : i32
    %c0_i32_1 = arith.constant 0 : i32
    return %c0_i32, %c0_i32_0 : i32, i32
  }
  func.func @transform_5(%arg0: i32) -> (i32, i32) {
    %c0_i32 = arith.constant 0 : i32
    %c0_i32_0 = arith.constant 0 : i32
    %c0_i32_1 = arith.constant 0 : i32
    return %c0_i32, %c0_i32_0 : i32, i32
  }
  func.func @transform_6(%arg0: i32) -> (i32, i32) {
    %c0_i32 = arith.constant 0 : i32
    %c0_i32_0 = arith.constant 0 : i32
    %c0_i32_1 = arith.constant 0 : i32
    return %c0_i32, %c0_i32_0 : i32, i32
  }
  func.func @transform_7(%arg0: i32) -> (i32, i32) {
    %c0_i32 = arith.constant 0 : i32
    %c0_i32_0 = arith.constant 0 : i32
    return %arg0, %c0_i32 : i32, i32
  }
}

module attributes {stable_mosaic.version = 11 : i64} {
  func.func @_stage_kernel(%arg0: i32, %arg1: memref<32x512xbf16, #tpu.memory_space<vmem>>, %arg2: memref<512x256xbf16, #tpu.memory_space<vmem>>, %arg3: memref<1x256xf32, #tpu.memory_space<vmem>>, %arg4: memref<256x128xbf16, #tpu.memory_space<vmem>>, %arg5: memref<1x128xf32, #tpu.memory_space<vmem>>, %arg6: memref<128x256xbf16, #tpu.memory_space<vmem>>, %arg7: memref<1x256xf32, #tpu.memory_space<vmem>>, %arg8: memref<32x256xbf16, #tpu.memory_space<vmem>>) attributes {dimension_semantics = [#tpu.dimension_semantics<parallel>], iteration_bounds = array<i64: 2>, scalar_prefetch = 0 : i64, scratch_operands = 0 : i64, tpu.core_type = #tpu.core_type<tc>, window_params = [{transform_indices = @transform_0, window_bounds = array<i64: 32, 512>}, {pipeline_mode = #tpu.pipeline_mode<synchronous>, transform_indices = @transform_1, window_bounds = array<i64: 512, 256>}, {pipeline_mode = #tpu.pipeline_mode<synchronous>, transform_indices = @transform_2, window_bounds = array<i64: 1, 256>}, {pipeline_mode = #tpu.pipeline_mode<synchronous>, transform_indices = @transform_3, window_bounds = array<i64: 256, 128>}, {pipeline_mode = #tpu.pipeline_mode<synchronous>, transform_indices = @transform_4, window_bounds = array<i64: 1, 128>}, {pipeline_mode = #tpu.pipeline_mode<synchronous>, transform_indices = @transform_5, window_bounds = array<i64: 128, 256>}, {pipeline_mode = #tpu.pipeline_mode<synchronous>, transform_indices = @transform_6, window_bounds = array<i64: 1, 256>}, {transform_indices = @transform_7, window_bounds = array<i64: 32, 256>}]} {
    %c0 = arith.constant 0 : index
    %c0_0 = arith.constant 0 : index
    %0 = vector.load %arg1[%c0, %c0_0] : memref<32x512xbf16, #tpu.memory_space<vmem>>, vector<32x512xbf16>
    %c0_1 = arith.constant 0 : index
    %c0_2 = arith.constant 0 : index
    %1 = vector.load %arg2[%c0_1, %c0_2] : memref<512x256xbf16, #tpu.memory_space<vmem>>, vector<512x256xbf16>
    %cst = arith.constant dense<0.000000e+00> : vector<32x256xf32>
    %2 = tpu.matmul %0, %1, %cst {dimension_numbers = #tpu.dot_dimension_numbers<[1], [0], [0], [1], [0, 0, 1, 1], [], []>} : vector<32x512xbf16>, vector<512x256xbf16>, vector<32x256xf32> -> vector<32x256xf32>
    %c0_3 = arith.constant 0 : index
    %c0_4 = arith.constant 0 : index
    %3 = vector.load %arg3[%c0_3, %c0_4] : memref<1x256xf32, #tpu.memory_space<vmem>>, vector<1x256xf32>
    %4 = vector.broadcast %3 : vector<1x256xf32> to vector<32x256xf32>
    %5 = arith.addf %2, %4 : vector<32x256xf32>
    %cst_5 = arith.constant 0.000000e+00 : f32
    %6 = vector.broadcast %cst_5 : f32 to vector<32x256xf32>
    %7 = arith.maximumf %5, %6 : vector<32x256xf32>
    %8 = arith.truncf %7 : vector<32x256xf32> to vector<32x256xbf16>
    %c0_6 = arith.constant 0 : index
    %c0_7 = arith.constant 0 : index
    %9 = vector.load %arg4[%c0_6, %c0_7] : memref<256x128xbf16, #tpu.memory_space<vmem>>, vector<256x128xbf16>
    %cst_8 = arith.constant dense<0.000000e+00> : vector<32x128xf32>
    %10 = tpu.matmul %8, %9, %cst_8 {dimension_numbers = #tpu.dot_dimension_numbers<[1], [0], [0], [1], [0, 0, 1, 1], [], []>} : vector<32x256xbf16>, vector<256x128xbf16>, vector<32x128xf32> -> vector<32x128xf32>
    %c0_9 = arith.constant 0 : index
    %c0_10 = arith.constant 0 : index
    %11 = vector.load %arg5[%c0_9, %c0_10] : memref<1x128xf32, #tpu.memory_space<vmem>>, vector<1x128xf32>
    %12 = vector.broadcast %11 : vector<1x128xf32> to vector<32x128xf32>
    %13 = arith.addf %10, %12 : vector<32x128xf32>
    %cst_11 = arith.constant 0.000000e+00 : f32
    %14 = vector.broadcast %cst_11 : f32 to vector<32x128xf32>
    %15 = arith.maximumf %13, %14 : vector<32x128xf32>
    %16 = arith.truncf %15 : vector<32x128xf32> to vector<32x128xbf16>
    %c0_12 = arith.constant 0 : index
    %c0_13 = arith.constant 0 : index
    %17 = vector.load %arg6[%c0_12, %c0_13] : memref<128x256xbf16, #tpu.memory_space<vmem>>, vector<128x256xbf16>
    %cst_14 = arith.constant dense<0.000000e+00> : vector<32x256xf32>
    %18 = tpu.matmul %16, %17, %cst_14 {dimension_numbers = #tpu.dot_dimension_numbers<[1], [0], [0], [1], [0, 0, 1, 1], [], []>} : vector<32x128xbf16>, vector<128x256xbf16>, vector<32x256xf32> -> vector<32x256xf32>
    %c0_15 = arith.constant 0 : index
    %c0_16 = arith.constant 0 : index
    %19 = vector.load %arg7[%c0_15, %c0_16] : memref<1x256xf32, #tpu.memory_space<vmem>>, vector<1x256xf32>
    %20 = vector.broadcast %19 : vector<1x256xf32> to vector<32x256xf32>
    %21 = arith.addf %18, %20 : vector<32x256xf32>
    %22 = arith.addf %21, %7 : vector<32x256xf32>
    %cst_17 = arith.constant 0.000000e+00 : f32
    %23 = vector.broadcast %cst_17 : f32 to vector<32x256xf32>
    %24 = arith.maximumf %22, %23 : vector<32x256xf32>
    %25 = arith.truncf %24 : vector<32x256xf32> to vector<32x256xbf16>
    %c0_18 = arith.constant 0 : index
    %c0_19 = arith.constant 0 : index
    %26 = vector.load %arg8[%c0_18, %c0_19] : memref<32x256xbf16, #tpu.memory_space<vmem>>, vector<32x256xbf16>
    tpu.vector_store %arg8[%c0_18, %c0_19], %25 {strides = array<i32>} : memref<32x256xbf16, #tpu.memory_space<vmem>>, vector<32x256xbf16>,
    return
  }
  func.func @transform_0(%arg0: i32) -> (i32, i32) {
    %c0_i32 = arith.constant 0 : i32
    %c0_i32_0 = arith.constant 0 : i32
    return %arg0, %c0_i32 : i32, i32
  }
  func.func @transform_1(%arg0: i32) -> (i32, i32) {
    %c0_i32 = arith.constant 0 : i32
    %c0_i32_0 = arith.constant 0 : i32
    %c0_i32_1 = arith.constant 0 : i32
    return %c0_i32, %c0_i32_0 : i32, i32
  }
  func.func @transform_2(%arg0: i32) -> (i32, i32) {
    %c0_i32 = arith.constant 0 : i32
    %c0_i32_0 = arith.constant 0 : i32
    %c0_i32_1 = arith.constant 0 : i32
    return %c0_i32, %c0_i32_0 : i32, i32
  }
  func.func @transform_3(%arg0: i32) -> (i32, i32) {
    %c0_i32 = arith.constant 0 : i32
    %c0_i32_0 = arith.constant 0 : i32
    %c0_i32_1 = arith.constant 0 : i32
    return %c0_i32, %c0_i32_0 : i32, i32
  }
  func.func @transform_4(%arg0: i32) -> (i32, i32) {
    %c0_i32 = arith.constant 0 : i32
    %c0_i32_0 = arith.constant 0 : i32
    %c0_i32_1 = arith.constant 0 : i32
    return %c0_i32, %c0_i32_0 : i32, i32
  }
  func.func @transform_5(%arg0: i32) -> (i32, i32) {
    %c0_i32 = arith.constant 0 : i32
    %c0_i32_0 = arith.constant 0 : i32
    %c0_i32_1 = arith.constant 0 : i32
    return %c0_i32, %c0_i32_0 : i32, i32
  }
  func.func @transform_6(%arg0: i32) -> (i32, i32) {
    %c0_i32 = arith.constant 0 : i32
    %c0_i32_0 = arith.constant 0 : i32
    %c0_i32_1 = arith.constant 0 : i32
    return %c0_i32, %c0_i32_0 : i32, i32
  }
  func.func @transform_7(%arg0: i32) -> (i32, i32) {
    %c0_i32 = arith.constant 0 : i32
    %c0_i32_0 = arith.constant 0 : i32
    return %arg0, %c0_i32 : i32, i32
  }
}

module attributes {stable_mosaic.version = 11 : i64} {
  func.func @_stage_kernel(%arg0: i32, %arg1: memref<16x256xbf16, #tpu.memory_space<vmem>>, %arg2: memref<256x128xbf16, #tpu.memory_space<vmem>>, %arg3: memref<1x128xf32, #tpu.memory_space<vmem>>, %arg4: memref<128x64xbf16, #tpu.memory_space<vmem>>, %arg5: memref<1x64xf32, #tpu.memory_space<vmem>>, %arg6: memref<64x128xbf16, #tpu.memory_space<vmem>>, %arg7: memref<1x128xf32, #tpu.memory_space<vmem>>, %arg8: memref<16x128xbf16, #tpu.memory_space<vmem>>) attributes {dimension_semantics = [#tpu.dimension_semantics<parallel>], iteration_bounds = array<i64: 2>, scalar_prefetch = 0 : i64, scratch_operands = 0 : i64, tpu.core_type = #tpu.core_type<tc>, window_params = [{transform_indices = @transform_0, window_bounds = array<i64: 16, 256>}, {pipeline_mode = #tpu.pipeline_mode<synchronous>, transform_indices = @transform_1, window_bounds = array<i64: 256, 128>}, {pipeline_mode = #tpu.pipeline_mode<synchronous>, transform_indices = @transform_2, window_bounds = array<i64: 1, 128>}, {pipeline_mode = #tpu.pipeline_mode<synchronous>, transform_indices = @transform_3, window_bounds = array<i64: 128, 64>}, {pipeline_mode = #tpu.pipeline_mode<synchronous>, transform_indices = @transform_4, window_bounds = array<i64: 1, 64>}, {pipeline_mode = #tpu.pipeline_mode<synchronous>, transform_indices = @transform_5, window_bounds = array<i64: 64, 128>}, {pipeline_mode = #tpu.pipeline_mode<synchronous>, transform_indices = @transform_6, window_bounds = array<i64: 1, 128>}, {transform_indices = @transform_7, window_bounds = array<i64: 16, 128>}]} {
    %c0 = arith.constant 0 : index
    %c0_0 = arith.constant 0 : index
    %0 = vector.load %arg1[%c0, %c0_0] : memref<16x256xbf16, #tpu.memory_space<vmem>>, vector<16x256xbf16>
    %c0_1 = arith.constant 0 : index
    %c0_2 = arith.constant 0 : index
    %1 = vector.load %arg2[%c0_1, %c0_2] : memref<256x128xbf16, #tpu.memory_space<vmem>>, vector<256x128xbf16>
    %cst = arith.constant dense<0.000000e+00> : vector<16x128xf32>
    %2 = tpu.matmul %0, %1, %cst {dimension_numbers = #tpu.dot_dimension_numbers<[1], [0], [0], [1], [0, 0, 1, 1], [], []>} : vector<16x256xbf16>, vector<256x128xbf16>, vector<16x128xf32> -> vector<16x128xf32>
    %c0_3 = arith.constant 0 : index
    %c0_4 = arith.constant 0 : index
    %3 = vector.load %arg3[%c0_3, %c0_4] : memref<1x128xf32, #tpu.memory_space<vmem>>, vector<1x128xf32>
    %4 = vector.broadcast %3 : vector<1x128xf32> to vector<16x128xf32>
    %5 = arith.addf %2, %4 : vector<16x128xf32>
    %cst_5 = arith.constant 0.000000e+00 : f32
    %6 = vector.broadcast %cst_5 : f32 to vector<16x128xf32>
    %7 = arith.maximumf %5, %6 : vector<16x128xf32>
    %8 = arith.truncf %7 : vector<16x128xf32> to vector<16x128xbf16>
    %c0_6 = arith.constant 0 : index
    %c0_7 = arith.constant 0 : index
    %9 = vector.load %arg4[%c0_6, %c0_7] : memref<128x64xbf16, #tpu.memory_space<vmem>>, vector<128x64xbf16>
    %cst_8 = arith.constant dense<0.000000e+00> : vector<16x64xf32>
    %10 = tpu.matmul %8, %9, %cst_8 {dimension_numbers = #tpu.dot_dimension_numbers<[1], [0], [0], [1], [0, 0, 1, 1], [], []>} : vector<16x128xbf16>, vector<128x64xbf16>, vector<16x64xf32> -> vector<16x64xf32>
    %c0_9 = arith.constant 0 : index
    %c0_10 = arith.constant 0 : index
    %11 = vector.load %arg5[%c0_9, %c0_10] : memref<1x64xf32, #tpu.memory_space<vmem>>, vector<1x64xf32>
    %12 = vector.broadcast %11 : vector<1x64xf32> to vector<16x64xf32>
    %13 = arith.addf %10, %12 : vector<16x64xf32>
    %cst_11 = arith.constant 0.000000e+00 : f32
    %14 = vector.broadcast %cst_11 : f32 to vector<16x64xf32>
    %15 = arith.maximumf %13, %14 : vector<16x64xf32>
    %16 = arith.truncf %15 : vector<16x64xf32> to vector<16x64xbf16>
    %c0_12 = arith.constant 0 : index
    %c0_13 = arith.constant 0 : index
    %17 = vector.load %arg6[%c0_12, %c0_13] : memref<64x128xbf16, #tpu.memory_space<vmem>>, vector<64x128xbf16>
    %cst_14 = arith.constant dense<0.000000e+00> : vector<16x128xf32>
    %18 = tpu.matmul %16, %17, %cst_14 {dimension_numbers = #tpu.dot_dimension_numbers<[1], [0], [0], [1], [0, 0, 1, 1], [], []>} : vector<16x64xbf16>, vector<64x128xbf16>, vector<16x128xf32> -> vector<16x128xf32>
    %c0_15 = arith.constant 0 : index
    %c0_16 = arith.constant 0 : index
    %19 = vector.load %arg7[%c0_15, %c0_16] : memref<1x128xf32, #tpu.memory_space<vmem>>, vector<1x128xf32>
    %20 = vector.broadcast %19 : vector<1x128xf32> to vector<16x128xf32>
    %21 = arith.addf %18, %20 : vector<16x128xf32>
    %22 = arith.addf %21, %7 : vector<16x128xf32>
    %cst_17 = arith.constant 0.000000e+00 : f32
    %23 = vector.broadcast %cst_17 : f32 to vector<16x128xf32>
    %24 = arith.maximumf %22, %23 : vector<16x128xf32>
    %25 = arith.truncf %24 : vector<16x128xf32> to vector<16x128xbf16>
    %c0_18 = arith.constant 0 : index
    %c0_19 = arith.constant 0 : index
    %26 = vector.load %arg8[%c0_18, %c0_19] : memref<16x128xbf16, #tpu.memory_space<vmem>>, vector<16x128xbf16>
    tpu.vector_store %arg8[%c0_18, %c0_19], %25 {strides = array<i32>} : memref<16x128xbf16, #tpu.memory_space<vmem>>, vector<16x128xbf16>,
    return
  }
  func.func @transform_0(%arg0: i32) -> (i32, i32) {
    %c0_i32 = arith.constant 0 : i32
    %c0_i32_0 = arith.constant 0 : i32
    return %arg0, %c0_i32 : i32, i32
  }
  func.func @transform_1(%arg0: i32) -> (i32, i32) {
    %c0_i32 = arith.constant 0 : i32
    %c0_i32_0 = arith.constant 0 : i32
    %c0_i32_1 = arith.constant 0 : i32
    return %c0_i32, %c0_i32_0 : i32, i32
  }
  func.func @transform_2(%arg0: i32) -> (i32, i32) {
    %c0_i32 = arith.constant 0 : i32
    %c0_i32_0 = arith.constant 0 : i32
    %c0_i32_1 = arith.constant 0 : i32
    return %c0_i32, %c0_i32_0 : i32, i32
  }
  func.func @transform_3(%arg0: i32) -> (i32, i32) {
    %c0_i32 = arith.constant 0 : i32
    %c0_i32_0 = arith.constant 0 : i32
    %c0_i32_1 = arith.constant 0 : i32
    return %c0_i32, %c0_i32_0 : i32, i32
  }
  func.func @transform_4(%arg0: i32) -> (i32, i32) {
    %c0_i32 = arith.constant 0 : i32
    %c0_i32_0 = arith.constant 0 : i32
    %c0_i32_1 = arith.constant 0 : i32
    return %c0_i32, %c0_i32_0 : i32, i32
  }
  func.func @transform_5(%arg0: i32) -> (i32, i32) {
    %c0_i32 = arith.constant 0 : i32
    %c0_i32_0 = arith.constant 0 : i32
    %c0_i32_1 = arith.constant 0 : i32
    return %c0_i32, %c0_i32_0 : i32, i32
  }
  func.func @transform_6(%arg0: i32) -> (i32, i32) {
    %c0_i32 = arith.constant 0 : i32
    %c0_i32_0 = arith.constant 0 : i32
    %c0_i32_1 = arith.constant 0 : i32
    return %c0_i32, %c0_i32_0 : i32, i32
  }
  func.func @transform_7(%arg0: i32) -> (i32, i32) {
    %c0_i32 = arith.constant 0 : i32
    %c0_i32_0 = arith.constant 0 : i32
    return %arg0, %c0_i32 : i32, i32
  }
}

module attributes {stable_mosaic.version = 11 : i64} {
  func.func @_stage_mlp6_kernel(%arg0: i32, %arg1: memref<8x128xbf16, #tpu.memory_space<vmem>>, %arg2: memref<128x64xbf16, #tpu.memory_space<vmem>>, %arg3: memref<1x64xf32, #tpu.memory_space<vmem>>, %arg4: memref<64x32xbf16, #tpu.memory_space<vmem>>, %arg5: memref<1x32xf32, #tpu.memory_space<vmem>>, %arg6: memref<32x64xbf16, #tpu.memory_space<vmem>>, %arg7: memref<1x64xf32, #tpu.memory_space<vmem>>, %arg8: memref<64x8xbf16, #tpu.memory_space<vmem>>, %arg9: memref<1x8xf32, #tpu.memory_space<vmem>>, %arg10: memref<8x8xf32, #tpu.memory_space<vmem>>) attributes {dimension_semantics = [#tpu.dimension_semantics<parallel>], iteration_bounds = array<i64: 2>, scalar_prefetch = 0 : i64, scratch_operands = 0 : i64, tpu.core_type = #tpu.core_type<tc>, window_params = [{transform_indices = @transform_0, window_bounds = array<i64: 8, 128>}, {pipeline_mode = #tpu.pipeline_mode<synchronous>, transform_indices = @transform_1, window_bounds = array<i64: 128, 64>}, {pipeline_mode = #tpu.pipeline_mode<synchronous>, transform_indices = @transform_2, window_bounds = array<i64: 1, 64>}, {pipeline_mode = #tpu.pipeline_mode<synchronous>, transform_indices = @transform_3, window_bounds = array<i64: 64, 32>}, {pipeline_mode = #tpu.pipeline_mode<synchronous>, transform_indices = @transform_4, window_bounds = array<i64: 1, 32>}, {pipeline_mode = #tpu.pipeline_mode<synchronous>, transform_indices = @transform_5, window_bounds = array<i64: 32, 64>}, {pipeline_mode = #tpu.pipeline_mode<synchronous>, transform_indices = @transform_6, window_bounds = array<i64: 1, 64>}, {pipeline_mode = #tpu.pipeline_mode<synchronous>, transform_indices = @transform_7, window_bounds = array<i64: 64, 8>}, {pipeline_mode = #tpu.pipeline_mode<synchronous>, transform_indices = @transform_8, window_bounds = array<i64: 1, 8>}, {transform_indices = @transform_9, window_bounds = array<i64: 8, 8>}]} {
    %c0 = arith.constant 0 : index
    %c0_0 = arith.constant 0 : index
    %0 = vector.load %arg1[%c0, %c0_0] : memref<8x128xbf16, #tpu.memory_space<vmem>>, vector<8x128xbf16>
    %c0_1 = arith.constant 0 : index
    %c0_2 = arith.constant 0 : index
    %1 = vector.load %arg2[%c0_1, %c0_2] : memref<128x64xbf16, #tpu.memory_space<vmem>>, vector<128x64xbf16>
    %cst = arith.constant dense<0.000000e+00> : vector<8x64xf32>
    %2 = tpu.matmul %0, %1, %cst {dimension_numbers = #tpu.dot_dimension_numbers<[1], [0], [0], [1], [0, 0, 1, 1], [], []>} : vector<8x128xbf16>, vector<128x64xbf16>, vector<8x64xf32> -> vector<8x64xf32>
    %c0_3 = arith.constant 0 : index
    %c0_4 = arith.constant 0 : index
    %3 = vector.load %arg3[%c0_3, %c0_4] : memref<1x64xf32, #tpu.memory_space<vmem>>, vector<1x64xf32>
    %4 = vector.broadcast %3 : vector<1x64xf32> to vector<8x64xf32>
    %5 = arith.addf %2, %4 : vector<8x64xf32>
    %cst_5 = arith.constant 0.000000e+00 : f32
    %6 = vector.broadcast %cst_5 : f32 to vector<8x64xf32>
    %7 = arith.maximumf %5, %6 : vector<8x64xf32>
    %8 = arith.truncf %7 : vector<8x64xf32> to vector<8x64xbf16>
    %c0_6 = arith.constant 0 : index
    %c0_7 = arith.constant 0 : index
    %9 = vector.load %arg4[%c0_6, %c0_7] : memref<64x32xbf16, #tpu.memory_space<vmem>>, vector<64x32xbf16>
    %cst_8 = arith.constant dense<0.000000e+00> : vector<8x32xf32>
    %10 = tpu.matmul %8, %9, %cst_8 {dimension_numbers = #tpu.dot_dimension_numbers<[1], [0], [0], [1], [0, 0, 1, 1], [], []>} : vector<8x64xbf16>, vector<64x32xbf16>, vector<8x32xf32> -> vector<8x32xf32>
    %c0_9 = arith.constant 0 : index
    %c0_10 = arith.constant 0 : index
    %11 = vector.load %arg5[%c0_9, %c0_10] : memref<1x32xf32, #tpu.memory_space<vmem>>, vector<1x32xf32>
    %12 = vector.broadcast %11 : vector<1x32xf32> to vector<8x32xf32>
    %13 = arith.addf %10, %12 : vector<8x32xf32>
    %cst_11 = arith.constant 0.000000e+00 : f32
    %14 = vector.broadcast %cst_11 : f32 to vector<8x32xf32>
    %15 = arith.maximumf %13, %14 : vector<8x32xf32>
    %16 = arith.truncf %15 : vector<8x32xf32> to vector<8x32xbf16>
    %c0_12 = arith.constant 0 : index
    %c0_13 = arith.constant 0 : index
    %17 = vector.load %arg6[%c0_12, %c0_13] : memref<32x64xbf16, #tpu.memory_space<vmem>>, vector<32x64xbf16>
    %cst_14 = arith.constant dense<0.000000e+00> : vector<8x64xf32>
    %18 = tpu.matmul %16, %17, %cst_14 {dimension_numbers = #tpu.dot_dimension_numbers<[1], [0], [0], [1], [0, 0, 1, 1], [], []>} : vector<8x32xbf16>, vector<32x64xbf16>, vector<8x64xf32> -> vector<8x64xf32>
    %c0_15 = arith.constant 0 : index
    %c0_16 = arith.constant 0 : index
    %19 = vector.load %arg7[%c0_15, %c0_16] : memref<1x64xf32, #tpu.memory_space<vmem>>, vector<1x64xf32>
    %20 = vector.broadcast %19 : vector<1x64xf32> to vector<8x64xf32>
    %21 = arith.addf %18, %20 : vector<8x64xf32>
    %22 = arith.addf %21, %7 : vector<8x64xf32>
    %cst_17 = arith.constant 0.000000e+00 : f32
    %23 = vector.broadcast %cst_17 : f32 to vector<8x64xf32>
    %24 = arith.maximumf %22, %23 : vector<8x64xf32>
    %25 = arith.truncf %24 : vector<8x64xf32> to vector<8x64xbf16>
    %c0_18 = arith.constant 0 : index
    %c0_19 = arith.constant 0 : index
    %26 = vector.load %arg8[%c0_18, %c0_19] : memref<64x8xbf16, #tpu.memory_space<vmem>>, vector<64x8xbf16>
    %cst_20 = arith.constant dense<0.000000e+00> : vector<8x8xf32>
    %27 = tpu.matmul %25, %26, %cst_20 {dimension_numbers = #tpu.dot_dimension_numbers<[1], [0], [0], [1], [0, 0, 1, 1], [], []>} : vector<8x64xbf16>, vector<64x8xbf16>, vector<8x8xf32> -> vector<8x8xf32>
    %c0_21 = arith.constant 0 : index
    %c0_22 = arith.constant 0 : index
    %28 = vector.load %arg9[%c0_21, %c0_22] : memref<1x8xf32, #tpu.memory_space<vmem>>, vector<1x8xf32>
    %29 = vector.broadcast %28 : vector<1x8xf32> to vector<8x8xf32>
    %30 = arith.addf %27, %29 : vector<8x8xf32>
    %cst_23 = arith.constant 0.000000e+00 : f32
    %31 = vector.broadcast %cst_23 : f32 to vector<8x8xf32>
    %32 = arith.maximumf %30, %31 : vector<8x8xf32>
    %c0_24 = arith.constant 0 : index
    %c0_25 = arith.constant 0 : index
    %33 = vector.load %arg10[%c0_24, %c0_25] : memref<8x8xf32, #tpu.memory_space<vmem>>, vector<8x8xf32>
    tpu.vector_store %arg10[%c0_24, %c0_25], %32 {strides = array<i32>} : memref<8x8xf32, #tpu.memory_space<vmem>>, vector<8x8xf32>,
    return
  }
  func.func @transform_0(%arg0: i32) -> (i32, i32) {
    %c0_i32 = arith.constant 0 : i32
    %c0_i32_0 = arith.constant 0 : i32
    return %arg0, %c0_i32 : i32, i32
  }
  func.func @transform_1(%arg0: i32) -> (i32, i32) {
    %c0_i32 = arith.constant 0 : i32
    %c0_i32_0 = arith.constant 0 : i32
    %c0_i32_1 = arith.constant 0 : i32
    return %c0_i32, %c0_i32_0 : i32, i32
  }
  func.func @transform_2(%arg0: i32) -> (i32, i32) {
    %c0_i32 = arith.constant 0 : i32
    %c0_i32_0 = arith.constant 0 : i32
    %c0_i32_1 = arith.constant 0 : i32
    return %c0_i32, %c0_i32_0 : i32, i32
  }
  func.func @transform_3(%arg0: i32) -> (i32, i32) {
    %c0_i32 = arith.constant 0 : i32
    %c0_i32_0 = arith.constant 0 : i32
    %c0_i32_1 = arith.constant 0 : i32
    return %c0_i32, %c0_i32_0 : i32, i32
  }
  func.func @transform_4(%arg0: i32) -> (i32, i32) {
    %c0_i32 = arith.constant 0 : i32
    %c0_i32_0 = arith.constant 0 : i32
    %c0_i32_1 = arith.constant 0 : i32
    return %c0_i32, %c0_i32_0 : i32, i32
  }
  func.func @transform_5(%arg0: i32) -> (i32, i32) {
    %c0_i32 = arith.constant 0 : i32
    %c0_i32_0 = arith.constant 0 : i32
    %c0_i32_1 = arith.constant 0 : i32
    return %c0_i32, %c0_i32_0 : i32, i32
  }
  func.func @transform_6(%arg0: i32) -> (i32, i32) {
    %c0_i32 = arith.constant 0 : i32
    %c0_i32_0 = arith.constant 0 : i32
    %c0_i32_1 = arith.constant 0 : i32
    return %c0_i32, %c0_i32_0 : i32, i32
  }
  func.func @transform_7(%arg0: i32) -> (i32, i32) {
    %c0_i32 = arith.constant 0 : i32
    %c0_i32_0 = arith.constant 0 : i32
    %c0_i32_1 = arith.constant 0 : i32
    return %c0_i32, %c0_i32_0 : i32, i32
  }
  func.func @transform_8(%arg0: i32) -> (i32, i32) {
    %c0_i32 = arith.constant 0 : i32
    %c0_i32_0 = arith.constant 0 : i32
    %c0_i32_1 = arith.constant 0 : i32
    return %c0_i32, %c0_i32_0 : i32, i32
  }
  func.func @transform_9(%arg0: i32) -> (i32, i32) {
    %c0_i32 = arith.constant 0 : i32
    %c0_i32_0 = arith.constant 0 : i32
    return %arg0, %c0_i32 : i32, i32
  }
}

</mosaic_0001>

<bundles_post_ra>
// kernel: _lambda_.10
= control target key start
LH: loop header
LB: loop body
LE: loop exit
PB: predicated region body
PF: predicated region fallthrough
CT: control target
= control target key end

     0   :  { %12 = vsyncpa [#allocation3], 0  ;;  %s1506_s0 = inlined_call_operand.vmem [shape: bf16[128,64], index: 0, kind: input, shape index: {}]   ;;  %s1507_s1 = inlined_call_operand.vmem [shape: bf16[64,128], index: 1, kind: input, shape index: {}]   ;;  %s1508_s2 = inlined_call_operand.hbm [shape: f32[1,128], index: 2, kind: input, shape index: {}]   ;;  %s1509_s3 = inlined_call_operand.vmem [shape: bf16[128,64], index: 3, kind: input, shape index: {}]   ;;  %s1510_s4 = inlined_call_operand.hbm [shape: f32[1,64], index: 4, kind: input, shape index: {}]   ;;  %s1511_s5 = inlined_call_operand.vmem [shape: bf16[64,128], index: 5, kind: input, shape index: {}]   ;;  %s1512_s6 = inlined_call_operand.hbm [shape: f32[1,128], index: 6, kind: input, shape index: {}]   ;;  %s1513_s7 = inlined_call_operand.vmem [shape: bf16[128,128], index: 7, kind: output, shape index: {}]  }
   0x1   :  { %13 = vsyncpa [#allocation5], 0  ;;  %s1258_s24 = smov 0  }
   0x2 LB: > { %s885_s25 = sadd.s32 4294967295, %s1213_s24   ;;  %p887_p0 = scmp.ge.s32.totalorder %s1213_s24, 1  ;;  %s1213_s24 = sphi %s1258_s24, %s19_s24  }
   0x3   : > { %p202_p1 = scmp.lt.s32.totalorder %s1213_s24, 3  ;;  %p1268_p2 = scmp.eq.s32.totalorder %s885_s25, 0 }
   0x4   : > { %s1215_s28 = smov [#allocation4]   ;;  %s1216_s30 = smov [#allocation2]  }
   0x5   : > { %s1517_s26 = scalar_select %p1268_p2, 1, 0 }
   0x6   : > { %p1272_p3 = pnand %p887_p0, %p202_p1  ;;  %s232_s29 = sshll.u32 %s1215_s28, 4  ;;  %s233_s29 = int_to_ptr.vmem [resolvable:$true] %s232_s29 }
   0x7   : > { %s218_s8 = sshll.u32 %s1216_s30, 4  ;;  %s1217_s9 = smov [#allocation6]   ;;  %s1284_s8 = int_to_ptr.vmem [resolvable:$true] %s218_s8 }
   0x8   : > { %s1518_s27 = scalar_select %p1272_p3, 1, 0 }
   0x9   : > { %p1068_p4 = pneg %p1272_p3  ;;  %s246_s10 = sshll.u32 %s1217_s9, 4  ;;  %s1286_s10 = int_to_ptr.vmem [resolvable:$true] %s246_s10 }
   0xa   : > { %s1115_s14 = scalar_lea.hbm %s1510_s4, 16 }
   0xb   : > { %p1280_p5 = pnand %p1268_p2, %p1068_p4  ;;  %p1116_p6 = scmp.ne.s32.totalorder %s1510_s4, %s1115_s14 }
   0xc   : > { %p1122_p10 = scmp.lt.u32.totalorder %s1115_s14, %s1510_s4 }
   0xd   : > { %p1296_p7 = pneg %p1280_p5 }
   0xf   : > { %p1118_p8 = pnand %p1296_p7, %p1116_p6 }
  0x11   : > { %p1119_p9 = pneg %p1118_p8 }
  0x13   : > { %p1124_p11 = pnand %p1122_p10, %p1119_p9 }
  0x15   : > { %1127 = shalt.err (!%p1124_p11)
}
  0x16   : > { %s1128_s20 = scalar_lea.vmem %s233_s29, 16  ;;  %s1135_s21 = scalar_lea.vmem %s233_s29, 32 }
  0x17   : > { %p1129_p12 = scmp.ne.s32.totalorder %s233_s29, %s1128_s20  ;;  %p1136_p1 = scmp.lt.s32.totalorder %s233_s29, %s233_s29 }
  0x18   : > { %p1137_p4 = scmp.lt.s32.totalorder %s1135_s21, %s1128_s20 }
  0x19   : > { %p1131_p13 = pnand %p1129_p12, %p1296_p7 }
  0x1a   : > { %p1138_p2 = por %p1137_p4, %p1136_p1 }
  0x1b   : > { %p1132_p0 = pneg %p1131_p13 }
  0x1d   : > { %p1139_p3 = pnand %p1138_p2, %p1132_p0 }
  0x1f   : > { %1142 = shalt.err (!%p1139_p3)
}
  0x20   : > { %1074 = dma.hbm_to_vmem [thread:$0]  (!%p1280_p5), %s1510_s4, 16, %s233_s29, [#allocation5]  }
  0x21   : > { %s1143_s9 = scalar_lea.hbm %s1508_s2, 16 }
  0x22   : > { %p1144_p6 = scmp.ne.s32.totalorder %s1508_s2, %s1143_s9  ;;  %p1150_p2 = scmp.lt.u32.totalorder %s1143_s9, %s1508_s2 }
  0x24   : > { %p1146_p8 = pnand %p1144_p6, %p1296_p7 }
  0x26   : > { %p1147_p9 = pneg %p1146_p8 }
  0x28   : > { %p1152_p3 = pnand %p1150_p2, %p1147_p9 }
  0x2a   : > { %1155 = shalt.err (!%p1152_p3)
}
  0x2b   : > { %s1156_s29 = scalar_lea.vmem %s1284_s8, 16  ;;  %s1163_s16 = scalar_lea.vmem %s1284_s8, 32 }
  0x2c   : > { %p1157_p10 = scmp.ne.s32.totalorder %s1284_s8, %s1156_s29  ;;  %p1164_p13 = scmp.lt.s32.totalorder %s1284_s8, %s1284_s8 }
  0x2d   : > { %p1165_p0 = scmp.lt.s32.totalorder %s1163_s16, %s1156_s29 }
  0x2e   : > { %p1159_p11 = pnand %p1157_p10, %p1296_p7 }
  0x2f   : > { %p1166_p1 = por %p1165_p0, %p1164_p13 }
  0x30   : > { %p1160_p12 = pneg %p1159_p11 }
  0x32   : > { %p1167_p4 = pnand %p1166_p1, %p1160_p12 }
  0x34   : > { %1170 = shalt.err (!%p1167_p4)
}
  0x35   : > { %1071 = dma.hbm_to_vmem [thread:$0]  (!%p1280_p5), %s1508_s2, 16, %s1284_s8, [#allocation3]  }
  0x36   : > { %s1171_s22 = scalar_lea.hbm %s1512_s6, 16 }
  0x37   : > { %p1172_p6 = scmp.ne.s32.totalorder %s1512_s6, %s1171_s22  ;;  %p1178_p2 = scmp.lt.u32.totalorder %s1171_s22, %s1512_s6 }
  0x39   : > { %p1174_p8 = pnand %p1172_p6, %p1296_p7 }
  0x3b   : > { %p1175_p9 = pneg %p1174_p8 }
  0x3d   : > { %p1180_p3 = pnand %p1178_p2, %p1175_p9 }
  0x3f   : > { %1183 = shalt.err (!%p1180_p3)
}
  0x40   : > { %s1184_s8 = scalar_lea.vmem %s1286_s10, 16  ;;  %s1191_s12 = scalar_lea.vmem %s1286_s10, 32 }
  0x41   : > { %p1185_p10 = scmp.ne.s32.totalorder %s1286_s10, %s1184_s8  ;;  %p1192_p13 = scmp.lt.s32.totalorder %s1286_s10, %s1286_s10 }
  0x42   : > { %p1193_p0 = scmp.lt.s32.totalorder %s1191_s12, %s1184_s8 }
  0x43   : > { %p1187_p11 = pnand %p1185_p10, %p1296_p7 }
  0x44   : > { %p1194_p1 = por %p1193_p0, %p1192_p13 }
  0x45   : > { %p1188_p12 = pneg %p1187_p11 }
  0x47   : > { %p1195_p4 = pnand %p1194_p1, %p1188_p12 }
  0x49   : > { %1198 = shalt.err (!%p1195_p4)
}
  0x4a   : > { %1077 = dma.hbm_to_vmem [thread:$0]  (!%p1280_p5), %s1512_s6, 16, %s1286_s10, [#allocation5]  }
  0x4b   : > { %p1521_p6 = scmp.ne.s32.totalorder %s1518_s27, 0 }
  0x4c   : > { %p1522_p7 = scmp.ne.s32.totalorder (!%p1521_p6), %s1517_s26, 0 }
  0x4d   : > { %268 = sbr.rel (%p1521_p6) target bundleno = 780 (0x30c), region = 48 }
  0x54   : > { %1204 = dma.done.wait (%p1522_p7), [#allocation3], 16  }
  0x55   : > { %1206 = vsyncadd (%p1522_p7), [#allocation3], 4294967280 }
  0x56   : > { %1208 = dma.done.wait (%p1522_p7), [#allocation5], 32  }
  0x57   : > { %1210 = vsyncadd (%p1522_p7), [#allocation5], 4294967264  ;;  %s896_s11 = sshll.u32 %s885_s25, 3  ;;  %v1095_v0 = vld [vmem:[%s1507_s1] sm:$0xff]   ;;  %v1096_v1 = vld [vmem:[%s1507_s1 + $0x8] sm:$0xff]   ;;  %vm388_vm0 = vcmask 523264  }
  0x58   : > { %p309_p8 = scmp.lt.s32.totalorder %s896_s11, 15  ;;  %1000 = vmatprep.subr.bf16.mxu0 %v1095_v0  ;;  %v1097_v2 = vld [vmem:[%s1507_s1 + $0x10] sm:$0xff]   ;;  %v1098_v4 = vld [vmem:[%s1507_s1 + $0x18] sm:$0xff]   ;;  %v1103_v5 = vld [vmem:[%s1509_s3] sm:$0xff]  }
  0x59   : > { %1001 = vmatpush3.bf16.msra.mxu0 %v1095_v0  ;;  %v1104_v6 = vld [vmem:[%s1509_s3 + $0x8] sm:$0xff]   ;;  %1016 = vmatprep.subr.bf16.mxu1 %v1103_v5  ;;  %v1105_v8 = vld [vmem:[%s1509_s3 + $0x10] sm:$0xff]   ;;  %v1106_v10 = vld [vmem:[%s1509_s3 + $0x18] sm:$0xff]  }
  0x5a   : > { %s1524_s11 = smov (!%p309_p8, %s896_s11), 15  ;;  %1002 = vmatprep.subr.bf16.mxu0 %v1096_v1  ;;  %1017 = vmatpush3.bf16.msra.mxu1 %v1103_v5  ;;  %v1107_v11 = vld [vmem:[%s1509_s3 + $0x20] sm:$0xff]   ;;  %v1108_v13 = vld [vmem:[%s1509_s3 + $0x28] sm:$0xff]   ;;  %v1109_v14 = vld [vmem:[%s1509_s3 + $0x30] sm:$0xff]  }
  0x5b   : > { %s897_s27 = sshll.u32 %s1524_s11, 2  ;;  %1018 = vmatprep.subr.bf16.mxu1 %v1104_v6  ;;  %v1110_v15 = vld [vmem:[%s1509_s3 + $0x38] sm:$0xff]   ;;  %v1111_v16 = vld [vmem:[%s1511_s5] sm:$0xff]   ;;  %v1112_v17 = vld [vmem:[%s1511_s5 + $0x8] sm:$0xff]  }
  0x5c   : > { %s1386_s18 = scalar_lea.vmem %s1506_s0, %s897_s27  ;;  %v900_v18 = vld [vmem:[#allocation2] ss:$0 sm:$0xff]  ;;  %v1113_v47 = vld [vmem:[%s1511_s5 + $0x10] sm:$0xff]   ;;  %v1114_v48 = vld [vmem:[%s1511_s5 + $0x18] sm:$0xff]   ;;  %s318_s12 = scalar_lea.vmem %s1513_s7, %s897_s27 }
  0x5d   : > { %v1099_v3 = vld [vmem:[%s1386_s18] sm:$0xff]   ;;  %1003 = vmatpush3.bf16.msra.mxu0 %v1096_v1  ;;  %v1100_v7 = vld [vmem:[%s1386_s18 + $0x8] sm:$0xff]   ;;  %v1101_v9 = vld [vmem:[%s1386_s18 + $0x10] sm:$0xff]  }
  0x5e   : > { %1008 = vmatprep.mubr.msk.bf16.mxu0 %vm388_vm0, %v1099_v3  ;;  %1004 = vmatprep.subr.bf16.mxu0 %v1097_v2  ;;  %v1102_v12 = vld [vmem:[%s1386_s18 + $0x18] sm:$0xff]   ;;  %v913_v49 = vld [vmem:[#allocation4] ss:$0 sm:$0xff] }
  0x5f   : > { %1019 = vmatpush3.bf16.msra.mxu1 %v1104_v6 }
  0x60   : > { %1020 = vmatprep.subr.bf16.mxu1 %v1105_v8 }
  0x61   : > { %1005 = vmatpush3.bf16.msra.mxu0 %v1097_v2 }
  0x62   : > { %1006 = vmatprep.subr.bf16.mxu0 %v1098_v4 }
  0x63   : > { %1021 = vmatpush3.bf16.msra.mxu1 %v1105_v8 }
  0x64   : > { %1022 = vmatprep.subr.bf16.mxu1 %v1106_v10 }
  0x65   : > { %1007 = vmatpush3.bf16.msra.mxu0 %v1098_v4 }
  0x66   : > { %1040 = vmatprep.subr.bf16.mxu0 %v1111_v16 }
  0x67   : > { %1023 = vmatpush3.bf16.msra.mxu1 %v1106_v10 }
  0x68   : > { %1009 = vmatmul.mubr.msk.bf16.vlgmr.msra.gmra.mrb[0].mxu0 %vm388_vm0, %v1100_v7  ;;  %1024 = vmatprep.subr.bf16.mxu1 %v1107_v11 }
  0x69   : > { %1012 = vmatprep.mubr.msk.bf16.mxu0 %vm388_vm0, %v1101_v9  ;;  %1041 = vmatpush3.bf16.msra.mxu0 %v1111_v16 }
  0x6a   : > { %1042 = vmatprep.subr.bf16.mxu0 %v1112_v17 }
  0x6b   : > { %1025 = vmatpush3.bf16.msra.mxu1 %v1107_v11 }
  0x6c   : > { %1026 = vmatprep.subr.bf16.mxu1 %v1108_v13 }
  0x6d   : > { %1043 = vmatpush3.bf16.msra.mxu0 %v1112_v17 }
  0x6e   : > { %1044 = vmatprep.subr.bf16.mxu0 %v1113_v47 }
  0x6f   : > { %1027 = vmatpush3.bf16.msra.mxu1 %v1108_v13 }
  0x70   : > { %1013 = vmatmul.mubr.msk.bf16.gmra.mrb[4].mxu0 %vm388_vm0, %v1102_v12  ;;  %1028 = vmatprep.subr.bf16.mxu1 %v1109_v14 }
  0x71   : > { %1045 = vmatpush3.bf16.msra.mxu0 %v1113_v47 }
  0x72   : > { %1046 = vmatprep.subr.bf16.mxu0 %v1114_v48 }
  0x73   : > { %1029 = vmatpush3.bf16.msra.mxu1 %v1109_v14  ;;  %v922_v14 = vld [vmem:[#allocation6] ss:$0 sm:$0xff] }
  0x74   : > { %1030 = vmatprep.subr.bf16.mxu1 %v1110_v15 }
  0x75   : > { %1047 = vmatpush3.bf16.msra.mxu0 %v1114_v48 }
  0x77   : > { %1031 = vmatpush3.bf16.msra.mxu1 %v1110_v15 }
 0x13b   : > { %v1010_v19 = vpop.f32.mrb[0].mxu0 }
 0x13c   : > { %v435_v20 = vpop.f32.mrb[1].mxu0  ;;  %v1434_v23 = vadd.f32 %v1010_v19, %v900_v18 }
 0x13d   : > { %v1432_v21 = vadd.f32 %v900_v18, %v435_v20  ;;  %v1011_v22 = vpop.f32.mrb[2].mxu0 }
 0x13e   : > { %v1436_v24 = vadd.f32 %v1011_v22, %v900_v18  ;;  %v438_v25 = vpop.f32.mrb[3].mxu0  ;;  %v468_v30 = vmax.f32 %v1434_v23, 0.0 }
 0x13f   : > { %v1438_v26 = vadd.f32 %v900_v18, %v438_v25  ;;  %v466_v28 = vmax.f32 %v1432_v21, 0.0 }
 0x140   : > { %v469_v27 = vmax.f32 %v1436_v24, 0.0 }
 0x141   : > { %v467_v29 = vmax.f32 %v1438_v26, 0.0 }
 0x142   : > { %v475_v33 = vpack.c.bf16 %v469_v27, %v468_v30 }
 0x143   : > { %v1014_v31 = vpop.f32.mrb[4].mxu0  ;;  %v474_v32 = vpack.c.bf16 %v467_v29, %v466_v28 }
 0x144   : > { %v451_v34 = vpop.f32.mrb[5].mxu0  ;;  %v1454_v37 = vadd.f32 %v1014_v31, %v900_v18 }
 0x145   : > { %v1452_v35 = vadd.f32 %v900_v18, %v451_v34  ;;  %v1015_v36 = vpop.f32.mrb[6].mxu0  ;;  %1032 = vmatprep.mubr.bf16.mxu1 %v474_v32 }
 0x146   : > { %v1456_v38 = vadd.f32 %v1015_v36, %v900_v18  ;;  %v454_v39 = vpop.f32.mrb[7].mxu0  ;;  %1033 = vmatmul.mubr.bf16.vlgmr.msra.gmra.mrb[0].mxu1 %v475_v33  ;;  %v472_v44 = vmax.f32 %v1454_v37, 0.0 }
 0x147   : > { %v1458_v40 = vadd.f32 %v900_v18, %v454_v39  ;;  %v470_v42 = vmax.f32 %v1452_v35, 0.0 }
 0x148   : > { %v473_v41 = vmax.f32 %v1456_v38, 0.0 }
 0x149   : > { %v471_v43 = vmax.f32 %v1458_v40, 0.0 }
 0x14a   : > { %v477_v46 = vpack.c.bf16 %v473_v41, %v472_v44 }
 0x14b   : > { %v476_v45 = vpack.c.bf16 %v471_v43, %v470_v42 }
 0x14d   : > { %1036 = vmatprep.mubr.bf16.mxu1 %v476_v45 }
 0x14e   : > { %1037 = vmatmul.mubr.bf16.gmra.mrb[4].mxu1 %v477_v46 }
 0x219   : > { %v1034_v50 = vpop.f32.mrb[0].mxu1 }
 0x21a   : > { %v592_v51 = vadd.f32 %v1034_v50, %v913_v49  ;;  %v583_v52 = vpop.f32.mrb[1].mxu1 }
 0x21b   : > { %v584_v53 = vadd.f32 %v913_v49, %v583_v52  ;;  %v1035_v54 = vpop.f32.mrb[2].mxu1 }
 0x21c   : > { %v595_v55 = vadd.f32 %v1035_v54, %v913_v49  ;;  %v586_v56 = vpop.f32.mrb[3].mxu1  ;;  %v616_v58 = vmax.f32 %v592_v51, 0.0 }
 0x21d   : > { %v587_v57 = vadd.f32 %v913_v49, %v586_v56  ;;  %v614_v60 = vmax.f32 %v584_v53, 0.0 }
 0x21e   : > { %v617_v59 = vmax.f32 %v595_v55, 0.0 }
 0x21f   : > { %v615_v61 = vmax.f32 %v587_v57, 0.0 }
 0x220   : > { %v623_v62 = vpack.c.bf16 %v617_v59, %v616_v58 }
 0x221   : > { %v622_v63 = vpack.c.bf16 %v615_v61, %v614_v60  ;;  %v1038_v0 = vpop.f32.mrb[4].mxu1 }
 0x222   : > { %v608_v1 = vadd.f32 %v1038_v0, %v913_v49  ;;  %v599_v2 = vpop.f32.mrb[5].mxu1 }
 0x223   : > { %v600_v3 = vadd.f32 %v913_v49, %v599_v2  ;;  %v1039_v4 = vpop.f32.mrb[6].mxu1  ;;  %1048 = vmatprep.mubr.msk.bf16.mxu0 %vm388_vm0, %v622_v63 }
 0x224   : > { %v611_v5 = vadd.f32 %v1039_v4, %v913_v49  ;;  %v602_v6 = vpop.f32.mrb[7].mxu1  ;;  %1049 = vmatmul.mubr.msk.bf16.vlgmr.msra.gmra.mrb[8].mxu0 %vm388_vm0, %v623_v62  ;;  %v620_v8 = vmax.f32 %v608_v1, 0.0 }
 0x225   : > { %v603_v7 = vadd.f32 %v913_v49, %v602_v6  ;;  %v618_v10 = vmax.f32 %v600_v3, 0.0 }
 0x226   : > { %v621_v9 = vmax.f32 %v611_v5, 0.0 }
 0x227   : > { %v619_v11 = vmax.f32 %v603_v7, 0.0 }
 0x228   : > { %v625_v12 = vpack.c.bf16 %v621_v9, %v620_v8 }
 0x229   : > { %v624_v13 = vpack.c.bf16 %v619_v11, %v618_v10 }
 0x22b   : > { %1052 = vmatprep.mubr.msk.bf16.mxu0 %vm388_vm0, %v624_v13 }
 0x22c   : > { %1053 = vmatmul.mubr.msk.bf16.gmra.mrb[12].mxu0 %vm388_vm0, %v625_v12 }
 0x2f7   : > { %v1050_v15 = vpop.f32.mrb[8].mxu0 }
 0x2f8   : > { %v720_v16 = vadd.f32 %v1050_v15, %v922_v14  ;;  %v711_v17 = vpop.f32.mrb[9].mxu0 }
 0x2f9   : > { %v712_v18 = vadd.f32 %v922_v14, %v711_v17  ;;  %v1051_v19 = vpop.f32.mrb[10].mxu0 }
 0x2fa   : > { %v744_v20 = vadd.f32 %v720_v16, %v468_v30  ;;  %v723_v22 = vadd.f32 %v1051_v19, %v922_v14  ;;  %v714_v25 = vpop.f32.mrb[11].mxu0 }
 0x2fb   : > { %v742_v31 = vadd.f32 %v712_v18, %v466_v28  ;;  %v715_v32 = vadd.f32 %v922_v14, %v714_v25 }
 0x2fc   : > { %v745_v33 = vadd.f32 %v723_v22, %v469_v27  ;;  %v752_v36 = vmax.f32 %v744_v20, 0.0 }
 0x2fd   : > { %v743_v34 = vadd.f32 %v715_v32, %v467_v29  ;;  %v750_v45 = vmax.f32 %v742_v31, 0.0 }
 0x2fe   : > { %v753_v39 = vmax.f32 %v745_v33, 0.0 }
 0x2ff   : > { %v751_v23 = vmax.f32 %v743_v34, 0.0  ;;  %v1054_v30 = vpop.f32.mrb[12].mxu0 }
 0x300   : > { %v957_v46 = vpack.c.bf16 %v753_v39, %v752_v36  ;;  %v736_v21 = vadd.f32 %v1054_v30, %v922_v14  ;;  %v727_v28 = vpop.f32.mrb[13].mxu0 }
 0x301   : > { %v952_v47 = vpack.c.bf16 %v751_v23, %v750_v45  ;;  %v728_v48 = vadd.f32 %v922_v14, %v727_v28  ;;  %v1055_v24 = vpop.f32.mrb[14].mxu0 }
 0x302   : > { %969 = vst [vmem:[%s318_s12 + $0x8] sm:$0xff] %v957_v46   ;;  %v748_v26 = vadd.f32 %v736_v21, %v472_v44  ;;  %v739_v27 = vadd.f32 %v1055_v24, %v922_v14  ;;  %v730_v29 = vpop.f32.mrb[15].mxu0 }
 0x303   : > { %953 = vst [vmem:[%s318_s12] sm:$0xff] %v952_v47   ;;  %v746_v49 = vadd.f32 %v728_v48, %v470_v42  ;;  %v731_v50 = vadd.f32 %v922_v14, %v730_v29 }
 0x304   : > { %v749_v51 = vadd.f32 %v739_v27, %v473_v41  ;;  %v756_v53 = vmax.f32 %v748_v26, 0.0 }
 0x305   : > { %v747_v52 = vadd.f32 %v731_v50, %v471_v43  ;;  %v754_v55 = vmax.f32 %v746_v49, 0.0 }
 0x306   : > { %v757_v54 = vmax.f32 %v749_v51, 0.0 }
 0x307   : > { %v755_v56 = vmax.f32 %v747_v52, 0.0 }
 0x308   : > { %v967_v57 = vpack.c.bf16 %v757_v54, %v756_v53 }
 0x309   : > { %v962_v37 = vpack.c.bf16 %v755_v56, %v754_v55 }
 0x30a   : > { %971 = vst [vmem:[%s318_s12 + $0x18] sm:$0xff] %v967_v57  }
 0x30b   : > { %970 = vst [vmem:[%s318_s12 + $0x10] sm:$0xff] %v962_v37  }
 0x30c PF: > { %s19_s24 = sadd.s32 1, %s1213_s24  }
 0x30d   : > { %p16_p5 = scmp.ge.s32.totalorder %s19_s24, 4  }
 0x30f   :  { %18 = sbr.rel (!%p16_p5) target bundleno = 2 (0x2), region = 91 }
 0x316   :  { %820 = vsyncpa [#allocation3], 1 }
 0x317   :  { %822 = vsyncpa [#allocation3 + $0x1], 1 }
 0x318   :  { %823 = vsyncpa [#allocation5], 1 }

// kernel: _lambda_.9
= control target key start
LH: loop header
LB: loop body
LE: loop exit
PB: predicated region body
PF: predicated region fallthrough
CT: control target
= control target key end

     0   :  { %12 = vsyncpa [#allocation3], 0  ;;  %s1007_s24 = smov 0   ;;  %s1186_s0 = inlined_call_operand.vmem [shape: bf16[128,16], index: 0, kind: input, shape index: {}]   ;;  %s1187_s1 = inlined_call_operand.vmem [shape: bf16[16,64], index: 1, kind: input, shape index: {}]   ;;  %s1188_s2 = inlined_call_operand.hbm [shape: f32[1,64], index: 2, kind: input, shape index: {}]   ;;  %s1189_s3 = inlined_call_operand.vmem [shape: bf16[64,32], index: 3, kind: input, shape index: {}]   ;;  %s1190_s4 = inlined_call_operand.vmem [shape: f32[1,32], index: 4, kind: input, shape index: {}]   ;;  %s1191_s5 = inlined_call_operand.vmem [shape: bf16[32,64], index: 5, kind: input, shape index: {}]   ;;  %s1192_s6 = inlined_call_operand.vmem [shape: f32[1,64], index: 6, kind: input, shape index: {}]   ;;  %s1193_s7 = inlined_call_operand.vmem [shape: bf16[128,64], index: 7, kind: output, shape index: {}]  }
   0x1 LB: > { %s784_s25 = sadd.s32 4294967295, %s964_s24   ;;  %p786_p0 = scmp.ge.s32.totalorder %s964_s24, 1  ;;  %s964_s24 = sphi %s1007_s24, %s18_s24  }
   0x2   : > { %p201_p1 = scmp.lt.s32.totalorder %s964_s24, 3  ;;  %p1021_p3 = scmp.eq.s32.totalorder %s784_s25, 0 }
   0x3   : > { %s966_s28 = smov [#allocation2]   ;;  %s926_s10 = scalar_lea.hbm %s1188_s2, 16 }
   0x4   : > { %p1015_p2 = pnand %p786_p0, %p201_p1  ;;  %s217_s29 = sshll.u32 %s966_s28, 4  ;;  %s218_s29 = int_to_ptr.vmem [resolvable:$true] %s217_s29 }
   0x5   : > { %s1198_s27 = scalar_select %p1021_p3, 1, 0 }
   0x6   : > { %s1197_s26 = scalar_select %p1015_p2, 1, 0 }
   0x7   : > { %p900_p4 = pneg %p1015_p2  ;;  %p927_p6 = scmp.ne.s32.totalorder %s1188_s2, %s926_s10 }
   0x8   : > { %p933_p10 = scmp.lt.u32.totalorder %s926_s10, %s1188_s2 }
   0x9   : > { %p1029_p5 = pnand %p1021_p3, %p900_p4 }
   0xb   : > { %p928_p7 = pneg %p1029_p5 }
   0xd   : > { %p929_p8 = pnand %p928_p7, %p927_p6 }
   0xf   : > { %p930_p9 = pneg %p929_p8 }
  0x11   : > { %p935_p11 = pnand %p933_p10, %p930_p9 }
  0x13   : > { %938 = shalt.err (!%p935_p11)
}
  0x14   : > { %s939_s15 = scalar_lea.vmem %s218_s29, 16  ;;  %s946_s16 = scalar_lea.vmem %s218_s29, 32 }
  0x15   : > { %p940_p12 = scmp.ne.s32.totalorder %s218_s29, %s939_s15  ;;  %p947_p1 = scmp.lt.s32.totalorder %s218_s29, %s218_s29 }
  0x16   : > { %p948_p4 = scmp.lt.s32.totalorder %s946_s16, %s939_s15 }
  0x17   : > { %p942_p13 = pnand %p940_p12, %p928_p7 }
  0x18   : > { %p949_p3 = por %p948_p4, %p947_p1 }
  0x19   : > { %p943_p0 = pneg %p942_p13 }
  0x1b   : > { %p950_p2 = pnand %p949_p3, %p943_p0 }
  0x1d   : > { %953 = shalt.err (!%p950_p2)
}
  0x1e   : > { %903 = dma.hbm_to_vmem [thread:$0]  (!%p1029_p5), %s1188_s2, 16, %s218_s29, [#allocation3]  }
  0x1f   : > { %p1200_p6 = scmp.ne.s32.totalorder %s1197_s26, 0 }
  0x20   : > { %p1201_p8 = scmp.ne.s32.totalorder (!%p1200_p6), %s1198_s27, 0 }
  0x21   : > { %251 = sbr.rel (%p1200_p6) target bundleno = 725 (0x2d5), region = 48 }
  0x28   : > { %959 = dma.done.wait (%p1201_p8), [#allocation3], 16  }
  0x29   : > { %961 = vsyncadd (%p1201_p8), [#allocation3], 4294967280  ;;  %s791_s19 = sshll.u32 %s784_s25, 3  ;;  %v915_v0 = vld [vmem:[%s1187_s1] sm:$0xff]   ;;  %vm339_vm0 = vcmask 130048   ;;  %v921_v5 = vld [vmem:[%s1189_s3 + $0x8] sm:$0xff]  }
  0x2a   : > { %p284_p3 = scmp.lt.s32.totalorder %s791_s19, 15  ;;  %858 = vmatprep.subr.bf16.mxu0 %v915_v0  ;;  %v920_v4 = vld [vmem:[%s1189_s3] sm:$0xff]   ;;  %v922_v7 = vld [vmem:[%s1189_s3 + $0x10] sm:$0xff]   ;;  %v923_v8 = vld [vmem:[%s1189_s3 + $0x18] sm:$0xff]   ;;  %vm468_vm1 = vcmask 523264   ;;  %vm581_vm2 = vcmask 261120  }
  0x2b   : > { %859 = vmatpush3.bf16.msra.mxu0 %v915_v0  ;;  %868 = vmatprep.subr.bf16.mxu1 %v920_v4  ;;  %v924_v9 = vld [vmem:[%s1191_s5] sm:$0xff]   ;;  %v925_v39 = vld [vmem:[%s1191_s5 + $0x8] sm:$0xff]   ;;  %vm707_vm3 = vcmask 519168  }
  0x2c   : > { %s1203_s19 = smov (!%p284_p3, %s791_s19), 15  ;;  %869 = vmatpush3.bf16.msra.mxu1 %v920_v4  ;;  %884 = vmatprep.subr.bf16.mxu0 %v924_v9  ;;  %v795_v10 = vld [vmem:[#allocation2] ss:$0 sm:$0xff] }
  0x2d   : > { %s792_s20 = sshll.u32 %s1203_s19, 2  ;;  %870 = vmatprep.subr.bf16.mxu1 %v921_v5  ;;  %v805_v40 = vld [vmem:[%s1190_s4] ss:$0 sm:$0xff] }
  0x2e   : > { %s287_s23 = scalar_lea.vmem %s1186_s0, %s792_s20  ;;  %s1155_s26 = scalar_lea.vmem %s1193_s7, %s792_s20 }
  0x2f   : > { %v916_v1 = vld [vmem:[%s287_s23] sm:$0xff]   ;;  %v917_v2 = vld [vmem:[%s287_s23 + $0x8] sm:$0xff]   ;;  %v918_v3 = vld [vmem:[%s287_s23 + $0x10] sm:$0xff]  }
  0x30   : > { %860 = vmatprep.mubr.msk.bf16.mxu0 %vm339_vm0, %v916_v1  ;;  %v919_v6 = vld [vmem:[%s287_s23 + $0x18] sm:$0xff]   ;;  %871 = vmatpush3.bf16.msra.mxu1 %v921_v5  ;;  %v814_v5 = vld [vmem:[%s1192_s6] ss:$0 sm:$0xff] }
  0x31   : > { %861 = vmatmul.mubr.msk.bf16.vlgmr.msra.gmra.mrb[0].mxu0 %vm339_vm0, %v917_v2  ;;  %872 = vmatprep.subr.bf16.mxu1 %v922_v7 }
  0x32   : > { %864 = vmatprep.mubr.msk.bf16.mxu0 %vm339_vm0, %v918_v3  ;;  %885 = vmatpush3.bf16.msra.mxu0 %v924_v9 }
  0x33   : > { %886 = vmatprep.subr.bf16.mxu0 %v925_v39 }
  0x34   : > { %873 = vmatpush3.bf16.msra.mxu1 %v922_v7 }
  0x35   : > { %874 = vmatprep.subr.bf16.mxu1 %v923_v8 }
  0x36   : > { %887 = vmatpush3.bf16.msra.mxu0 %v925_v39 }
  0x38   : > { %875 = vmatpush3.bf16.msra.mxu1 %v923_v8 }
  0x39   : > { %865 = vmatmul.mubr.msk.bf16.gmra.mrb[4].mxu0 %vm339_vm0, %v919_v6 }
 0x104   : > { %v862_v11 = vpop.f32.mrb[0].mxu0 }
 0x105   : > { %v386_v12 = vpop.f32.mrb[1].mxu0  ;;  %v1089_v15 = vadd.f32 %v862_v11, %v795_v10 }
 0x106   : > { %v1087_v13 = vadd.f32 %v795_v10, %v386_v12  ;;  %v863_v14 = vpop.f32.mrb[2].mxu0 }
 0x107   : > { %v1091_v16 = vadd.f32 %v863_v14, %v795_v10  ;;  %v389_v17 = vpop.f32.mrb[3].mxu0  ;;  %v419_v22 = vmax.f32 %v1089_v15, 0.0 }
 0x108   : > { %v1093_v18 = vadd.f32 %v795_v10, %v389_v17  ;;  %v417_v20 = vmax.f32 %v1087_v13, 0.0 }
 0x109   : > { %v420_v19 = vmax.f32 %v1091_v16, 0.0 }
 0x10a   : > { %v418_v21 = vmax.f32 %v1093_v18, 0.0 }
 0x10b   : > { %v426_v25 = vpack.c.bf16 %v420_v19, %v419_v22 }
 0x10c   : > { %v866_v23 = vpop.f32.mrb[4].mxu0  ;;  %v425_v24 = vpack.c.bf16 %v418_v21, %v417_v20 }
 0x10d   : > { %v402_v26 = vpop.f32.mrb[5].mxu0  ;;  %v1110_v29 = vadd.f32 %v866_v23, %v795_v10 }
 0x10e   : > { %v1107_v27 = vadd.f32 %v795_v10, %v402_v26  ;;  %v867_v28 = vpop.f32.mrb[6].mxu0  ;;  %876 = vmatprep.mubr.msk.bf16.mxu1 %vm468_vm1, %v425_v24 }
 0x10f   : > { %v1112_v30 = vadd.f32 %v867_v28, %v795_v10  ;;  %v405_v31 = vpop.f32.mrb[7].mxu0  ;;  %877 = vmatmul.mubr.msk.bf16.vlgmr.msra.gmra.mrb[0].mxu1 %vm468_vm1, %v426_v25  ;;  %v423_v36 = vmax.f32 %v1110_v29, 0.0 }
 0x110   : > { %v1115_v32 = vadd.f32 %v795_v10, %v405_v31  ;;  %v421_v34 = vmax.f32 %v1107_v27, 0.0 }
 0x111   : > { %v424_v33 = vmax.f32 %v1112_v30, 0.0 }
 0x112   : > { %v422_v35 = vmax.f32 %v1115_v32, 0.0 }
 0x113   : > { %v428_v38 = vpack.c.bf16 %v424_v33, %v423_v36 }
 0x114   : > { %v427_v37 = vpack.c.bf16 %v422_v35, %v421_v34 }
 0x116   : > { %880 = vmatprep.mubr.msk.bf16.mxu1 %vm468_vm1, %v427_v37 }
 0x117   : > { %881 = vmatmul.mubr.msk.bf16.gmra.mrb[4].mxu1 %vm468_vm1, %v428_v38 }
 0x1e2   : > { %v878_v41 = vpop.f32.mrb[0].mxu1 }
 0x1e3   : > { %v524_v42 = vadd.f32 %v878_v41, %v805_v40  ;;  %v515_v43 = vpop.f32.mrb[1].mxu1 }
 0x1e4   : > { %v516_v44 = vadd.f32 %v805_v40, %v515_v43  ;;  %v879_v45 = vpop.f32.mrb[2].mxu1 }
 0x1e5   : > { %v527_v46 = vadd.f32 %v879_v45, %v805_v40  ;;  %v518_v47 = vpop.f32.mrb[3].mxu1  ;;  %v548_v49 = vmax.f32 %v524_v42, 0.0 }
 0x1e6   : > { %v519_v48 = vadd.f32 %v805_v40, %v518_v47  ;;  %v546_v51 = vmax.f32 %v516_v44, 0.0 }
 0x1e7   : > { %v549_v50 = vmax.f32 %v527_v46, 0.0 }
 0x1e8   : > { %v547_v52 = vmax.f32 %v519_v48, 0.0 }
 0x1e9   : > { %v555_v53 = vpack.c.bf16 %v549_v50, %v548_v49 }
 0x1ea   : > { %v554_v54 = vpack.c.bf16 %v547_v52, %v546_v51  ;;  %v882_v55 = vpop.f32.mrb[4].mxu1 }
 0x1eb   : > { %v540_v56 = vadd.f32 %v882_v55, %v805_v40  ;;  %v531_v57 = vpop.f32.mrb[5].mxu1 }
 0x1ec   : > { %v532_v58 = vadd.f32 %v805_v40, %v531_v57  ;;  %v883_v59 = vpop.f32.mrb[6].mxu1  ;;  %888 = vmatprep.mubr.msk.bf16.mxu0 %vm581_vm2, %v554_v54 }
 0x1ed   : > { %v543_v60 = vadd.f32 %v883_v59, %v805_v40  ;;  %v534_v61 = vpop.f32.mrb[7].mxu1  ;;  %889 = vmatmul.mubr.msk.bf16.vlgmr.msra.gmra.mrb[8].mxu0 %vm581_vm2, %v555_v53  ;;  %v552_v63 = vmax.f32 %v540_v56, 0.0 }
 0x1ee   : > { %v535_v62 = vadd.f32 %v805_v40, %v534_v61  ;;  %v550_v1 = vmax.f32 %v532_v58, 0.0 }
 0x1ef   : > { %v553_v0 = vmax.f32 %v543_v60, 0.0 }
 0x1f0   : > { %v551_v2 = vmax.f32 %v535_v62, 0.0 }
 0x1f1   : > { %v557_v3 = vpack.c.bf16 %v553_v0, %v552_v63 }
 0x1f2   : > { %v556_v4 = vpack.c.bf16 %v551_v2, %v550_v1 }
 0x1f4   : > { %892 = vmatprep.mubr.msk.bf16.mxu0 %vm581_vm2, %v556_v4 }
 0x1f5   : > { %893 = vmatmul.mubr.msk.bf16.gmra.mrb[12].mxu0 %vm581_vm2, %v557_v3 }
 0x2c0   : > { %v890_v6 = vpop.f32.mrb[8].mxu0 }
 0x2c1   : > { %v637_v7 = vadd.f32 %v890_v6, %v814_v5  ;;  %v628_v8 = vpop.f32.mrb[9].mxu0 }
 0x2c2   : > { %v629_v9 = vadd.f32 %v814_v5, %v628_v8  ;;  %v891_v10 = vpop.f32.mrb[10].mxu0 }
 0x2c3   : > { %v661_v11 = vadd.f32 %v637_v7, %v419_v22  ;;  %v640_v12 = vadd.f32 %v891_v10, %v814_v5  ;;  %v631_v14 = vpop.f32.mrb[11].mxu0 }
 0x2c4   : > { %v659_v17 = vadd.f32 %v629_v9, %v417_v20  ;;  %v632_v23 = vadd.f32 %v814_v5, %v631_v14 }
 0x2c5   : > { %v669_v24 = vmax.f32 %v661_v11, 0.0  ;;  %v662_v25 = vadd.f32 %v640_v12, %v420_v19 }
 0x2c6   : > { %v667_v15 = vmax.f32 %v659_v17, 0.0  ;;  %v660_v13 = vadd.f32 %v632_v23, %v418_v21 }
 0x2c7   : > { %v833_v20 = vpack.c.bf16 %v669_v24, %v669_v24  ;;  %v670_v22 = vmax.f32 %v662_v25, 0.0 }
 0x2c8   : > { %v831_v26 = vpack.c.bf16 %v667_v15, %v667_v15  ;;  %v668_v16 = vmax.f32 %v660_v13, 0.0  ;;  %v894_v19 = vpop.f32.mrb[12].mxu0 }
 0x2c9   : > { %710 = vst.msk [vmem:[%s1155_s26 + $0x8] sm:$0xf] %vm707_vm3, %v833_v20  ;;  %v834_v28 = vpack.c.bf16 %v670_v22, %v670_v22  ;;  %v653_v31 = vadd.f32 %v894_v19, %v814_v5  ;;  %v644_v37 = vpop.f32.mrb[13].mxu0 }
 0x2ca   : > { %708 = vst.msk [vmem:[%s1155_s26] sm:$0xf] %vm707_vm3, %v831_v26  ;;  %v832_v38 = vpack.c.bf16 %v668_v16, %v668_v16  ;;  %v645_v39 = vadd.f32 %v814_v5, %v644_v37  ;;  %v895_v40 = vpop.f32.mrb[14].mxu0 }
 0x2cb   : > { %711 = vst.msk [vmem:[%s1155_s26 + $0xc] sm:$0xf] %vm707_vm3, %v834_v28  ;;  %v665_v18 = vadd.f32 %v653_v31, %v423_v36  ;;  %v656_v21 = vadd.f32 %v895_v40, %v814_v5  ;;  %v647_v41 = vpop.f32.mrb[15].mxu0 }
 0x2cc   : > { %709 = vst.msk [vmem:[%s1155_s26 + $0x4] sm:$0xf] %vm707_vm3, %v832_v38  ;;  %v663_v42 = vadd.f32 %v645_v39, %v421_v34  ;;  %v648_v43 = vadd.f32 %v814_v5, %v647_v41 }
 0x2cd   : > { %v673_v44 = vmax.f32 %v665_v18, 0.0  ;;  %v666_v45 = vadd.f32 %v656_v21, %v424_v33 }
 0x2ce   : > { %v671_v46 = vmax.f32 %v663_v42, 0.0  ;;  %v664_v29 = vadd.f32 %v648_v43, %v422_v35 }
 0x2cf   : > { %v837_v36 = vpack.c.bf16 %v673_v44, %v673_v44  ;;  %v674_v47 = vmax.f32 %v666_v45, 0.0 }
 0x2d0   : > { %v835_v48 = vpack.c.bf16 %v671_v46, %v671_v46  ;;  %v672_v49 = vmax.f32 %v664_v29, 0.0 }
 0x2d1   : > { %714 = vst.msk [vmem:[%s1155_s26 + $0x18] sm:$0xf] %vm707_vm3, %v837_v36  ;;  %v838_v50 = vpack.c.bf16 %v674_v47, %v674_v47 }
 0x2d2   : > { %712 = vst.msk [vmem:[%s1155_s26 + $0x10] sm:$0xf] %vm707_vm3, %v835_v48  ;;  %v836_v27 = vpack.c.bf16 %v672_v49, %v672_v49 }
 0x2d3   : > { %715 = vst.msk [vmem:[%s1155_s26 + $0x1c] sm:$0xf] %vm707_vm3, %v838_v50 }
 0x2d4   : > { %713 = vst.msk [vmem:[%s1155_s26 + $0x14] sm:$0xf] %vm707_vm3, %v836_v27 }
 0x2d5 PF: > { %s18_s24 = sadd.s32 1, %s964_s24  }
 0x2d6   : > { %p15_p2 = scmp.ge.s32.totalorder %s18_s24, 4  }
 0x2d8   :  { %17 = sbr.rel (!%p15_p2) target bundleno = 1 (0x1), region = 83 }
 0x2df   :  { %738 = vsyncpa [#allocation3], 1 }
 0x2e0   :  { %740 = vsyncpa [#allocation3 + $0x1], 1 }

// kernel: _lambda_.8
= control target key start
LH: loop header
LB: loop body
LE: loop exit
PB: predicated region body
PF: predicated region fallthrough
CT: control target
= control target key end

     0   :  { %s882_s24 = smov 0   ;;  %s998_s0 = inlined_call_operand.vmem [shape: bf16[128,3], index: 0, kind: input, shape index: {}]   ;;  %s999_s1 = inlined_call_operand.vmem [shape: bf16[3,16], index: 1, kind: input, shape index: {}]   ;;  %s1000_s2 = inlined_call_operand.vmem [shape: f32[1,16], index: 2, kind: input, shape index: {}]   ;;  %s1001_s3 = inlined_call_operand.vmem [shape: bf16[16,8], index: 3, kind: input, shape index: {}]   ;;  %s1002_s4 = inlined_call_operand.vmem [shape: f32[1,8], index: 4, kind: input, shape index: {}]   ;;  %s1003_s5 = inlined_call_operand.vmem [shape: bf16[8,16], index: 5, kind: input, shape index: {}]   ;;  %s1004_s6 = inlined_call_operand.vmem [shape: f32[1,16], index: 6, kind: input, shape index: {}]   ;;  %s1005_s7 = inlined_call_operand.vmem [shape: bf16[128,16], index: 7, kind: output, shape index: {}]  }
   0x1 LB: > { %s724_s25 = sadd.s32 4294967295, %s839_s24   ;;  %p728_p0 = scmp.ge.s32.totalorder %s839_s24, 1  ;;  %s839_s24 = sphi %s882_s24, %s17_s24  }
   0x2   : > { %p238_p1 = scmp.lt.s32.totalorder %s839_s24, 3 }
   0x4   : > { %p239_p2 = pnand %p728_p0, %p238_p1 }
   0x5   : > { %v291_v0 = vld [vmem:[%s999_s1] sm:$0x3] (!%p239_p2)  ;;  %vm332_vm0 = vcmask (!%p239_p2), 1040384   ;;  %vm333_vm1 = vcmask (!%p239_p2), 1041408   ;;  %s729_s28 = sshll.u32 (!%p239_p2), %s724_s25, 3  ;;  %v841_v1 = vmov (!%p239_p2), 65535  }
   0x6   : > { %242 = sbr.rel (%p239_p2) target bundleno = 694 (0x2b6), region = 48  ;;  %v334_v2 = vsel (!%p239_p2), %vm332_vm0, 4294967295, %v841_v1  ;;  %p271_p3 = scmp.lt.s32.totalorder (!%p239_p2), %s729_s28, 15  ;;  %vm319_vm2 = vcmask (!%p239_p2), 23552   ;;  %v832_v9 = vld [vmem:[%s1001_s3] sm:$0xff] (!%p239_p2)   ;;  %vm431_vm3 = vcmask (!%p239_p2), 130048  }
   0x7   : > { %v335_v3 = vsel (!%p239_p2), %vm333_vm1, %v334_v2, 0  ;;  %v733_v10 = vld [vmem:[%s1000_s2] ss:$0 sm:$0xff] (!%p239_p2)  ;;  %vm542_vm4 = vcmask (!%p239_p2), 1043456   ;;  %vm529_vm5 = vcmask (!%p239_p2), 64512   ;;  %vm659_vm6 = vcmask (!%p239_p2), 125952  }
   0x8   : > { %v337_v4 = vand.u32 (!%p239_p2), %v335_v3, %v291_v0  ;;  %v521_v39 = vld [vmem:[%s1003_s5] sm:$0xf] (!%p239_p2) }
   0x9   : > { %v544_v40 = vsel (!%p239_p2), %vm542_vm4, %v521_v39, 0  ;;  %v742_v41 = vld [vmem:[%s1002_s4] ss:$0 sm:$0xff] (!%p239_p2) }
   0xa   : > { %786 = vmatprep.subr.bf16.mxu0 (!%p239_p2), %v337_v4  ;;  %816 = vmatprep.subr.bf16.mxu1 (!%p239_p2), %v337_v4 }
   0xb   : > { %787 = vmatpush3.bf16.msra.mxu0 (!%p239_p2), %v337_v4  ;;  %817 = vmatpush3.bf16.msra.mxu1 (!%p239_p2), %v337_v4 }
   0xc   : > { %796 = vmatprep.subr.bf16.mxu1 (!%p239_p2), %v832_v9  ;;  %818 = vmatprep.subr.msk.bf16.mxu0 (!%p239_p2), %vm542_vm4, %v521_v39 }
   0xd   : > { %s1007_s28 = smov (!%p271_p3, %s729_s28), 15 }
   0xe   : > { %s730_s29 = sshll.u32 %s1007_s28, 2 }
   0xf   : > { %s274_s9 = scalar_lea.vmem %s998_s0, %s730_s29  ;;  %s967_s22 = scalar_lea.vmem %s1005_s7, %s730_s29 }
  0x10   : > { %v828_v5 = vld [vmem:[%s274_s9] sm:$0xff]   ;;  %v829_v6 = vld [vmem:[%s274_s9 + $0x8] sm:$0xff]   ;;  %v830_v7 = vld [vmem:[%s274_s9 + $0x10] sm:$0xff]  }
  0x11   : > { %788 = vmatprep.mubr.msk.bf16.mxu0 %vm319_vm2, %v828_v5  ;;  %v831_v8 = vld [vmem:[%s274_s9 + $0x18] sm:$0xff]   ;;  %792 = vmatprep.mubr.msk.bf16.mxu1 %vm319_vm2, %v830_v7 }
  0x12   : > { %789 = vmatmul.mubr.msk.bf16.vlgmr.msra.gmra.mrb[0].mxu0 %vm319_vm2, %v829_v6  ;;  %793 = vmatmul.mubr.msk.bf16.vlgmr.msra.gmra.mrb[0].mxu1 %vm319_vm2, %v831_v8  ;;  %v748_v6 = vld [vmem:[%s1004_s6] ss:$0 sm:$0xff] }
  0x13   : > { %797 = vmatpush3.bf16.msra.mxu1 %v832_v9  ;;  %807 = vmatpush3.bf16.msra.mxu0 %v544_v40 }
  0xe5   : > { %v790_v11 = vpop.f32.mrb[0].mxu0  ;;  %v794_v15 = vpop.f32.mrb[0].mxu1 }
  0xe6   : > { %v373_v12 = vpop.f32.mrb[1].mxu0  ;;  %v909_v16 = vadd.f32 %v790_v11, %v733_v10  ;;  %v389_v19 = vpop.f32.mrb[1].mxu1  ;;  %v931_v33 = vadd.f32 %v794_v15, %v733_v10 }
  0xe7   : > { %v907_v13 = vadd.f32 %v733_v10, %v373_v12  ;;  %v791_v14 = vpop.f32.mrb[2].mxu0  ;;  %v915_v21 = vadd.f32 %v733_v10, %v389_v19  ;;  %v795_v22 = vpop.f32.mrb[2].mxu1 }
  0xe8   : > { %v911_v17 = vadd.f32 %v791_v14, %v733_v10  ;;  %v376_v18 = vpop.f32.mrb[3].mxu0  ;;  %v392_v24 = vpop.f32.mrb[3].mxu1  ;;  %v406_v29 = vmax.f32 %v909_v16, 0.0  ;;  %v933_v34 = vadd.f32 %v795_v22, %v733_v10  ;;  %v410_v36 = vmax.f32 %v931_v33, 0.0 }
  0xe9   : > { %v913_v20 = vadd.f32 %v733_v10, %v376_v18  ;;  %v404_v25 = vmax.f32 %v907_v13, 0.0  ;;  %v408_v27 = vmax.f32 %v915_v21, 0.0  ;;  %v921_v28 = vadd.f32 %v733_v10, %v392_v24 }
  0xea   : > { %v407_v23 = vmax.f32 %v911_v17, 0.0  ;;  %v411_v37 = vmax.f32 %v933_v34, 0.0 }
  0xeb   : > { %v405_v26 = vmax.f32 %v913_v20, 0.0  ;;  %v409_v31 = vmax.f32 %v921_v28, 0.0 }
  0xec   : > { %v413_v32 = vpack.c.bf16 %v407_v23, %v406_v29  ;;  %v415_v38 = vpack.c.bf16 %v411_v37, %v410_v36 }
  0xed   : > { %v412_v30 = vpack.c.bf16 %v405_v26, %v404_v25  ;;  %v414_v35 = vpack.c.bf16 %v409_v31, %v408_v27 }
  0xef   : > { %798 = vmatprep.mubr.msk.bf16.mxu1 %vm431_vm3, %v412_v30 }
  0xf0   : > { %799 = vmatmul.mubr.msk.bf16.vlgmr.msra.gmra.mrb[4].mxu1 %vm431_vm3, %v413_v32 }
  0xf1   : > { %802 = vmatprep.mubr.msk.bf16.mxu1 %vm431_vm3, %v414_v35 }
  0xf8   : > { %803 = vmatmul.mubr.msk.bf16.gmra.mrb[8].mxu1 %vm431_vm3, %v415_v38 }
 0x1c3   : > { %v800_v42 = vpop.f32.mrb[4].mxu1 }
 0x1c4   : > { %v487_v43 = vadd.f32 %v800_v42, %v742_v41  ;;  %v478_v44 = vpop.f32.mrb[5].mxu1 }
 0x1c5   : > { %v479_v45 = vadd.f32 %v742_v41, %v478_v44  ;;  %v801_v46 = vpop.f32.mrb[6].mxu1 }
 0x1c6   : > { %v490_v47 = vadd.f32 %v801_v46, %v742_v41  ;;  %v481_v48 = vpop.f32.mrb[7].mxu1  ;;  %v511_v50 = vmax.f32 %v487_v43, 0.0 }
 0x1c7   : > { %v482_v49 = vadd.f32 %v742_v41, %v481_v48  ;;  %v509_v52 = vmax.f32 %v479_v45, 0.0 }
 0x1c8   : > { %v512_v51 = vmax.f32 %v490_v47, 0.0 }
 0x1c9   : > { %v510_v53 = vmax.f32 %v482_v49, 0.0 }
 0x1ca   : > { %v518_v54 = vpack.c.bf16 %v512_v51, %v511_v50 }
 0x1cb   : > { %v517_v55 = vpack.c.bf16 %v510_v53, %v509_v52  ;;  %v804_v56 = vpop.f32.mrb[8].mxu1 }
 0x1cc   : > { %v503_v57 = vadd.f32 %v804_v56, %v742_v41  ;;  %v494_v58 = vpop.f32.mrb[9].mxu1 }
 0x1cd   : > { %v495_v59 = vadd.f32 %v742_v41, %v494_v58  ;;  %v805_v60 = vpop.f32.mrb[10].mxu1  ;;  %808 = vmatprep.mubr.msk.bf16.mxu0 %vm529_vm5, %v517_v55 }
 0x1ce   : > { %v506_v61 = vadd.f32 %v805_v60, %v742_v41  ;;  %v497_v62 = vpop.f32.mrb[11].mxu1  ;;  %809 = vmatmul.mubr.msk.bf16.vlgmr.msra.gmra.mrb[4].mxu0 %vm529_vm5, %v518_v54  ;;  %v515_v0 = vmax.f32 %v503_v57, 0.0 }
 0x1cf   : > { %v498_v63 = vadd.f32 %v742_v41, %v497_v62  ;;  %v513_v2 = vmax.f32 %v495_v59, 0.0 }
 0x1d0   : > { %v516_v1 = vmax.f32 %v506_v61, 0.0 }
 0x1d1   : > { %v514_v3 = vmax.f32 %v498_v63, 0.0 }
 0x1d2   : > { %v520_v4 = vpack.c.bf16 %v516_v1, %v515_v0 }
 0x1d3   : > { %v519_v5 = vpack.c.bf16 %v514_v3, %v513_v2 }
 0x1d5   : > { %812 = vmatprep.mubr.msk.bf16.mxu0 %vm529_vm5, %v519_v5 }
 0x1d6   : > { %813 = vmatmul.mubr.msk.bf16.gmra.mrb[8].mxu0 %vm529_vm5, %v520_v4 }
 0x2a1   : > { %v810_v7 = vpop.f32.mrb[4].mxu0 }
 0x2a2   : > { %v589_v8 = vadd.f32 %v810_v7, %v748_v6  ;;  %v580_v9 = vpop.f32.mrb[5].mxu0 }
 0x2a3   : > { %v581_v10 = vadd.f32 %v748_v6, %v580_v9  ;;  %v811_v11 = vpop.f32.mrb[6].mxu0 }
 0x2a4   : > { %v613_v12 = vadd.f32 %v589_v8, %v406_v29  ;;  %v592_v14 = vadd.f32 %v811_v11, %v748_v6  ;;  %v583_v15 = vpop.f32.mrb[7].mxu0 }
 0x2a5   : > { %v611_v16 = vadd.f32 %v581_v10, %v404_v25  ;;  %v584_v18 = vadd.f32 %v748_v6, %v583_v15 }
 0x2a6   : > { %v621_v19 = vmax.f32 %v613_v12, 0.0  ;;  %v614_v22 = vadd.f32 %v592_v14, %v407_v23 }
 0x2a7   : > { %v619_v24 = vmax.f32 %v611_v16, 0.0  ;;  %v612_v13 = vadd.f32 %v584_v18, %v405_v26 }
 0x2a8   : > { %v765_v25 = vpack.c.bf16 %v621_v19, %v621_v19  ;;  %v622_v29 = vmax.f32 %v614_v22, 0.0 }
 0x2a9   : > { %v763_v30 = vpack.c.bf16 %v619_v24, %v619_v24  ;;  %v620_v17 = vmax.f32 %v612_v13, 0.0  ;;  %v814_v23 = vpop.f32.mrb[8].mxu0 }
 0x2aa   : > { %662 = vst.msk [vmem:[%s967_s22 + $0x8] sm:$0xf] %vm659_vm6, %v765_v25  ;;  %v766_v32 = vpack.c.bf16 %v622_v29, %v622_v29  ;;  %v605_v35 = vadd.f32 %v814_v23, %v748_v6  ;;  %v596_v38 = vpop.f32.mrb[9].mxu0 }
 0x2ab   : > { %660 = vst.msk [vmem:[%s967_s22] sm:$0xf] %vm659_vm6, %v763_v30  ;;  %v764_v39 = vpack.c.bf16 %v620_v17, %v620_v17  ;;  %v597_v40 = vadd.f32 %v748_v6, %v596_v38  ;;  %v815_v41 = vpop.f32.mrb[10].mxu0 }
 0x2ac   : > { %663 = vst.msk [vmem:[%s967_s22 + $0xc] sm:$0xf] %vm659_vm6, %v766_v32  ;;  %v617_v20 = vadd.f32 %v605_v35, %v410_v36  ;;  %v608_v26 = vadd.f32 %v815_v41, %v748_v6  ;;  %v599_v42 = vpop.f32.mrb[11].mxu0 }
 0x2ad   : > { %661 = vst.msk [vmem:[%s967_s22 + $0x4] sm:$0xf] %vm659_vm6, %v764_v39  ;;  %v615_v43 = vadd.f32 %v597_v40, %v408_v27  ;;  %v600_v44 = vadd.f32 %v748_v6, %v599_v42 }
 0x2ae   : > { %v625_v45 = vmax.f32 %v617_v20, 0.0  ;;  %v618_v46 = vadd.f32 %v608_v26, %v411_v37 }
 0x2af   : > { %v623_v47 = vmax.f32 %v615_v43, 0.0  ;;  %v616_v33 = vadd.f32 %v600_v44, %v409_v31 }
 0x2b0   : > { %v769_v36 = vpack.c.bf16 %v625_v45, %v625_v45  ;;  %v626_v48 = vmax.f32 %v618_v46, 0.0 }
 0x2b1   : > { %v767_v49 = vpack.c.bf16 %v623_v47, %v623_v47  ;;  %v624_v50 = vmax.f32 %v616_v33, 0.0 }
 0x2b2   : > { %666 = vst.msk [vmem:[%s967_s22 + $0x18] sm:$0xf] %vm659_vm6, %v769_v36  ;;  %v770_v51 = vpack.c.bf16 %v626_v48, %v626_v48 }
 0x2b3   : > { %664 = vst.msk [vmem:[%s967_s22 + $0x10] sm:$0xf] %vm659_vm6, %v767_v49  ;;  %v768_v21 = vpack.c.bf16 %v624_v50, %v624_v50 }
 0x2b4   : > { %667 = vst.msk [vmem:[%s967_s22 + $0x1c] sm:$0xf] %vm659_vm6, %v770_v51 }
 0x2b5   : > { %665 = vst.msk [vmem:[%s967_s22 + $0x14] sm:$0xf] %vm659_vm6, %v768_v21 }
 0x2b6 PF: > { %s17_s24 = sadd.s32 1, %s839_s24  }
 0x2b7   : > { %p14_p4 = scmp.ge.s32.totalorder %s17_s24, 4  }
 0x2b9   :  { %16 = sbr.rel (!%p14_p4) target bundleno = 1 (0x1), region = 78 }

// kernel: _lambda_.11
= control target key start
LH: loop header
LB: loop body
LE: loop exit
PB: predicated region body
PF: predicated region fallthrough
CT: control target
= control target key end

     0   :  { %12 = vsyncpa [#allocation3], 0  ;;  %s1985_s0 = inlined_call_operand.vmem [shape: bf16[128,128], index: 0, kind: input, shape index: {}]   ;;  %s1986_s1 = inlined_call_operand.vmem [shape: bf16[128,256], index: 1, kind: input, shape index: {}]   ;;  %s1987_s2 = inlined_call_operand.hbm [shape: f32[1,256], index: 2, kind: input, shape index: {}]   ;;  %s1988_s3 = inlined_call_operand.vmem [shape: bf16[256,128], index: 3, kind: input, shape index: {}]   ;;  %s1989_s4 = inlined_call_operand.hbm [shape: f32[1,128], index: 4, kind: input, shape index: {}]   ;;  %s1990_s5 = inlined_call_operand.vmem [shape: bf16[128,256], index: 5, kind: input, shape index: {}]   ;;  %s1991_s6 = inlined_call_operand.hbm [shape: f32[1,256], index: 6, kind: input, shape index: {}]   ;;  %s1992_s7 = inlined_call_operand.vmem [shape: bf16[128,256], index: 7, kind: output, shape index: {}]  }
   0x1   :  { %13 = vsyncpa [#allocation5], 0  ;;  %s1526_s24 = smov 0  }
   0x2 LB: > { %s1130_s25 = sadd.s32 4294967295, %s1480_s24   ;;  %p1132_p0 = scmp.ge.s32.totalorder %s1480_s24, 1  ;;  %s1480_s24 = sphi %s1526_s24, %s19_s24  }
   0x3   : > { %p202_p1 = scmp.lt.s32.totalorder %s1480_s24, 3  ;;  %p1536_p2 = scmp.eq.s32.totalorder %s1130_s25, 0 }
   0x4   : > { %s1482_s28 = smov [#allocation4]   ;;  %s1483_s30 = smov [#allocation2]  }
   0x5   : > { %s1996_s26 = scalar_select %p1536_p2, 1, 0 }
   0x6   : > { %p1540_p3 = pnand %p1132_p0, %p202_p1  ;;  %s232_s29 = sshll.u32 %s1482_s28, 4  ;;  %s233_s29 = int_to_ptr.vmem [resolvable:$true] %s232_s29 }
   0x7   : > { %s218_s8 = sshll.u32 %s1483_s30, 4  ;;  %s1484_s9 = smov [#allocation6]   ;;  %s1552_s8 = int_to_ptr.vmem [resolvable:$true] %s218_s8 }
   0x8   : > { %s1997_s27 = scalar_select %p1540_p3, 1, 0 }
   0x9   : > { %p1286_p4 = pneg %p1540_p3  ;;  %s246_s10 = sshll.u32 %s1484_s9, 4  ;;  %s1554_s10 = int_to_ptr.vmem [resolvable:$true] %s246_s10 }
   0xa   : > { %s1382_s14 = scalar_lea.hbm %s1989_s4, 16 }
   0xb   : > { %p1548_p5 = pnand %p1536_p2, %p1286_p4  ;;  %p1383_p6 = scmp.ne.s32.totalorder %s1989_s4, %s1382_s14 }
   0xc   : > { %p1389_p10 = scmp.lt.u32.totalorder %s1382_s14, %s1989_s4 }
   0xd   : > { %p1564_p7 = pneg %p1548_p5 }
   0xf   : > { %p1385_p8 = pnand %p1564_p7, %p1383_p6 }
  0x11   : > { %p1386_p9 = pneg %p1385_p8 }
  0x13   : > { %p1391_p11 = pnand %p1389_p10, %p1386_p9 }
  0x15   : > { %1394 = shalt.err (!%p1391_p11)
}
  0x16   : > { %s1395_s20 = scalar_lea.vmem %s233_s29, 16  ;;  %s1402_s21 = scalar_lea.vmem %s233_s29, 32 }
  0x17   : > { %p1396_p12 = scmp.ne.s32.totalorder %s233_s29, %s1395_s20  ;;  %p1403_p1 = scmp.lt.s32.totalorder %s233_s29, %s233_s29 }
  0x18   : > { %p1404_p4 = scmp.lt.s32.totalorder %s1402_s21, %s1395_s20 }
  0x19   : > { %p1398_p13 = pnand %p1396_p12, %p1564_p7 }
  0x1a   : > { %p1405_p2 = por %p1404_p4, %p1403_p1 }
  0x1b   : > { %p1399_p0 = pneg %p1398_p13 }
  0x1d   : > { %p1406_p3 = pnand %p1405_p2, %p1399_p0 }
  0x1f   : > { %1409 = shalt.err (!%p1406_p3)
}
  0x20   : > { %1292 = dma.hbm_to_vmem [thread:$0]  (!%p1548_p5), %s1989_s4, 16, %s233_s29, [#allocation5]  }
  0x21   : > { %s1410_s9 = scalar_lea.hbm %s1987_s2, 32 }
  0x22   : > { %p1411_p6 = scmp.ne.s32.totalorder %s1987_s2, %s1410_s9  ;;  %p1417_p2 = scmp.lt.u32.totalorder %s1410_s9, %s1987_s2 }
  0x24   : > { %p1413_p8 = pnand %p1411_p6, %p1564_p7 }
  0x26   : > { %p1414_p9 = pneg %p1413_p8 }
  0x28   : > { %p1419_p3 = pnand %p1417_p2, %p1414_p9 }
  0x2a   : > { %1422 = shalt.err (!%p1419_p3)
}
  0x2b   : > { %s1423_s29 = scalar_lea.vmem %s1552_s8, 32  ;;  %p1431_p13 = scmp.lt.s32.totalorder %s1552_s8, %s1552_s8 }
  0x2c   : > { %p1424_p10 = scmp.ne.s32.totalorder %s1552_s8, %s1423_s29  ;;  %p1432_p0 = scmp.lt.s32.totalorder %s1423_s29, %s1423_s29 }
  0x2e   : > { %p1426_p11 = pnand %p1424_p10, %p1564_p7  ;;  %p1433_p1 = por %p1432_p0, %p1431_p13 }
  0x30   : > { %p1427_p12 = pneg %p1426_p11 }
  0x32   : > { %p1434_p4 = pnand %p1433_p1, %p1427_p12 }
  0x34   : > { %1437 = shalt.err (!%p1434_p4)
}
  0x35   : > { %1289 = dma.hbm_to_vmem [thread:$0]  (!%p1548_p5), %s1987_s2, 32, %s1552_s8, [#allocation3]  }
  0x36   : > { %s1438_s21 = scalar_lea.hbm %s1991_s6, 32 }
  0x37   : > { %p1439_p6 = scmp.ne.s32.totalorder %s1991_s6, %s1438_s21  ;;  %p1445_p2 = scmp.lt.u32.totalorder %s1438_s21, %s1991_s6 }
  0x39   : > { %p1441_p8 = pnand %p1439_p6, %p1564_p7 }
  0x3b   : > { %p1442_p9 = pneg %p1441_p8 }
  0x3d   : > { %p1447_p3 = pnand %p1445_p2, %p1442_p9 }
  0x3f   : > { %1450 = shalt.err (!%p1447_p3)
}
  0x40   : > { %s1451_s8 = scalar_lea.vmem %s1554_s10, 32  ;;  %p1459_p13 = scmp.lt.s32.totalorder %s1554_s10, %s1554_s10 }
  0x41   : > { %p1452_p10 = scmp.ne.s32.totalorder %s1554_s10, %s1451_s8  ;;  %p1460_p0 = scmp.lt.s32.totalorder %s1451_s8, %s1451_s8 }
  0x43   : > { %p1454_p11 = pnand %p1452_p10, %p1564_p7  ;;  %p1461_p1 = por %p1460_p0, %p1459_p13 }
  0x45   : > { %p1455_p12 = pneg %p1454_p11 }
  0x47   : > { %p1462_p4 = pnand %p1461_p1, %p1455_p12 }
  0x49   : > { %1465 = shalt.err (!%p1462_p4)
}
  0x4a   : > { %1295 = dma.hbm_to_vmem [thread:$0]  (!%p1548_p5), %s1991_s6, 32, %s1554_s10, [#allocation5]  }
  0x4b   : > { %p2000_p6 = scmp.ne.s32.totalorder %s1997_s27, 0 }
  0x4c   : > { %p2001_p8 = scmp.ne.s32.totalorder (!%p2000_p6), %s1996_s26, 0 }
  0x4d   : > { %268 = sbr.rel (%p2000_p6) target bundleno = 813 (0x32d), region = 48 }
  0x54   : > { %1471 = dma.done.wait (%p2001_p8), [#allocation3], 32  }
  0x55   : > { %1473 = vsyncadd (%p2001_p8), [#allocation3], 4294967264 }
  0x56   : > { %1475 = dma.done.wait (%p2001_p8), [#allocation5], 48  }
  0x57   : > { %1477 = vsyncadd (%p2001_p8), [#allocation5], 4294967248  ;;  %v1485_v0 = vmov 0   ;;  %s1141_s10 = sshll.u32 %s1130_s25, 3  ;;  %v1314_v1 = vld [vmem:[%s1986_s1 + $0x4] ss:$8 sps:$4 sm:$0xff]   ;;  %v349_v47 = vlaneseq }
  0x58   : > { %495 = vmatprep.mubr.bf16.mxu0 %v1485_v0  ;;  %p310_p5 = scmp.lt.s32.totalorder %s1141_s10, 15  ;;  %v1316_v2 = vld [vmem:[%s1986_s1] ss:$8 sps:$4 sm:$0xff]   ;;  %463 = vmatprep.subr.bf16.mxu0 %v1314_v1  ;;  %v1317_v3 = vld [vmem:[%s1986_s1 + $0x14] ss:$8 sps:$4 sm:$0xff]  }
  0x59   : > { %464 = vmatpush1.bf16.msra.mxu0 %v1316_v2  ;;  %v1319_v4 = vld [vmem:[%s1986_s1 + $0x10] ss:$8 sps:$4 sm:$0xff]   ;;  %v1320_v5 = vld [vmem:[%s1986_s1 + $0x24] ss:$8 sps:$4 sm:$0xff]   ;;  %v1322_v6 = vld [vmem:[%s1986_s1 + $0x20] ss:$8 sps:$4 sm:$0xff]  }
  0x5a   : > { %s2003_s10 = smov (!%p310_p5, %s1141_s10), 15  ;;  %465 = vmatprep.subr.bf16.mxu0 %v1317_v3  ;;  %v1323_v7 = vld [vmem:[%s1986_s1 + $0x34] ss:$8 sps:$4 sm:$0xff]   ;;  %v1325_v8 = vld [vmem:[%s1986_s1 + $0x30] ss:$8 sps:$4 sm:$0xff]   ;;  %v1342_v12 = vld [vmem:[%s1988_s3 + $0x40] sm:$0xff]  }
  0x5b   : > { %s1142_s18 = sshll.u32 %s2003_s10, 2  ;;  %v1326_v9 = vld [vmem:[%s1986_s1 + $0x44] ss:$8 sps:$4 sm:$0xff]   ;;  %v1328_v10 = vld [vmem:[%s1986_s1 + $0x40] ss:$8 sps:$4 sm:$0xff]   ;;  %1218 = vmatprep.subr.bf16.mxu1 %v1342_v12  ;;  %v1346_v17 = vld [vmem:[%s1988_s3 + $0x50] sm:$0xff]  }
  0x5c   : > { %s1666_s30 = scalar_lea.vmem %s1985_s0, %s1142_s18  ;;  %v1329_v11 = vld [vmem:[%s1986_s1 + $0x54] ss:$8 sps:$4 sm:$0xff]   ;;  %v1343_v13 = vld [vmem:[%s1988_s3] sm:$0xff]   ;;  %v1331_v14 = vld [vmem:[%s1986_s1 + $0x50] ss:$8 sps:$4 sm:$0xff]   ;;  %v1790_v48 = vshrl.u32 %v349_v47, 7 }
  0x5d   : > { %466 = vmatpush1.bf16.msra.mxu0 %v1319_v4  ;;  %v1344_v15 = vld [vmem:[%s1988_s3 + $0x48] sm:$0xff]   ;;  %1219 = vmatpush3.bf16.msra.mxu1 %v1343_v13  ;;  %v1347_v20 = vld [vmem:[%s1988_s3 + $0x10] sm:$0xff]   ;;  %v1348_v21 = vld [vmem:[%s1988_s3 + $0x58] sm:$0xff]   ;;  %s1209_s8 = sshll.u32 %s2003_s10, 3 }
  0x5e   : > { %467 = vmatprep.subr.bf16.mxu0 %v1320_v5  ;;  %v1345_v16 = vld [vmem:[%s1988_s3 + $0x8] sm:$0xff]   ;;  %1220 = vmatprep.subr.bf16.mxu1 %v1344_v15  ;;  %v1335_v22 = vld [vmem:[%s1986_s1 + $0x74] ss:$8 sps:$4 sm:$0xff]   ;;  %v1337_v23 = vld [vmem:[%s1986_s1 + $0x70] ss:$8 sps:$4 sm:$0xff]   ;;  %v355_v49 = vsub.s32 1, %v1790_v48  ;;  %s1936_s27 = scalar_lea.vmem %s1992_s7, %s1209_s8 }
  0x5f   : > { %v1332_v18 = vld [vmem:[%s1986_s1 + $0x64] ss:$8 sps:$4 sm:$0xff]   ;;  %v1334_v19 = vld [vmem:[%s1986_s1 + $0x60] ss:$8 sps:$4 sm:$0xff]   ;;  %v1349_v24 = vld [vmem:[%s1988_s3 + $0x18] sm:$0xff]   ;;  %v351_v51 = vsub.s32 0, %v1790_v48 }
  0x60   : > { %v1350_v25 = vld [vmem:[%s1988_s3 + $0x60] sm:$0xff]   ;;  %v1352_v28 = vld [vmem:[%s1988_s3 + $0x68] sm:$0xff]   ;;  %v1340_v30 = vld [vmem:[%s1666_s30 + $0x10] sm:$0xff]  }
  0x61   : > { %468 = vmatpush1.bf16.msra.mxu0 %v1322_v6  ;;  %1221 = vmatpush3.bf16.msra.mxu1 %v1345_v16  ;;  %v1338_v26 = vld [vmem:[%s1666_s30] sm:$0xff]   ;;  %v1339_v29 = vld [vmem:[%s1666_s30 + $0x8] sm:$0xff]   ;;  %v1341_v31 = vld [vmem:[%s1666_s30 + $0x18] sm:$0xff]  }
  0x62   : > { %469 = vmatprep.subr.bf16.mxu0 %v1323_v7  ;;  %1222 = vmatprep.subr.bf16.mxu1 %v1346_v17  ;;  %v1351_v27 = vld [vmem:[%s1988_s3 + $0x20] sm:$0xff]   ;;  %v1353_v32 = vld [vmem:[%s1988_s3 + $0x28] sm:$0xff]   ;;  %v1354_v33 = vld [vmem:[%s1988_s3 + $0x70] sm:$0xff]  }
  0x63   : > { %v1355_v34 = vld [vmem:[%s1988_s3 + $0x30] sm:$0xff]   ;;  %v1356_v35 = vld [vmem:[%s1988_s3 + $0x78] sm:$0xff]   ;;  %v1358_v37 = vld [vmem:[%s1990_s5] ss:$8 sps:$4 sm:$0xff]  }
  0x64   : > { %v1357_v36 = vld [vmem:[%s1988_s3 + $0x38] sm:$0xff]   ;;  %v1360_v38 = vld [vmem:[%s1990_s5 + $0x4] ss:$8 sps:$4 sm:$0xff]   ;;  %v1364_v42 = vld [vmem:[%s1990_s5 + $0x20] ss:$8 sps:$4 sm:$0xff]  }
  0x65   : > { %470 = vmatpush1.bf16.msra.mxu0 %v1325_v8  ;;  %1223 = vmatpush3.bf16.msra.mxu1 %v1347_v20  ;;  %v1363_v39 = vld [vmem:[%s1990_s5 + $0x14] ss:$8 sps:$4 sm:$0xff]   ;;  %v1361_v40 = vld [vmem:[%s1990_s5 + $0x10] ss:$8 sps:$4 sm:$0xff]   ;;  %v1366_v41 = vld [vmem:[%s1990_s5 + $0x24] ss:$8 sps:$4 sm:$0xff]  }
  0x66   : > { %471 = vmatprep.subr.bf16.mxu0 %v1326_v9  ;;  %1224 = vmatprep.subr.bf16.mxu1 %v1348_v21  ;;  %v1369_v43 = vld [vmem:[%s1990_s5 + $0x34] ss:$8 sps:$4 sm:$0xff]   ;;  %v1775_v44 = vld [vmem:[%s1990_s5 + $0x30] ss:$8 sps:$4 sm:$0xff]   ;;  %v1780_v45 = vld [vmem:[%s1990_s5 + $0x44] ss:$8 sps:$4 sm:$0xff]  }
  0x67   : > { %v1786_v46 = vld [vmem:[%s1990_s5 + $0x40] ss:$8 sps:$4 sm:$0xff]  }
  0x68   : > { %v347_v50 = vld [vmem:[#allocation2] sm:$0x3] }
  0x69   : > { %472 = vmatpush1.bf16.msra.mxu0 %v1328_v10  ;;  %1225 = vmatpush3.bf16.msra.mxu1 %v1349_v24  ;;  %v1796_v52 = vrot.slane %v347_v50, %v355_v49  ;;  %v352_v53 = vrot.slane %v347_v50, %v351_v51  ;;  %v1373_v50 = vld [vmem:[%s1990_s5 + $0x50] ss:$8 sps:$4 sm:$0xff]  }
  0x6a   : > { %473 = vmatprep.subr.bf16.mxu0 %v1329_v11  ;;  %1226 = vmatprep.subr.bf16.mxu1 %v1350_v25 }
  0x6d   : > { %474 = vmatpush1.bf16.msra.mxu0 %v1331_v14  ;;  %1227 = vmatpush3.bf16.msra.mxu1 %v1351_v27 }
  0x6e   : > { %475 = vmatprep.subr.bf16.mxu0 %v1332_v18  ;;  %1228 = vmatprep.subr.bf16.mxu1 %v1352_v28 }
  0x71   : > { %476 = vmatpush1.bf16.msra.mxu0 %v1334_v19  ;;  %1229 = vmatpush3.bf16.msra.mxu1 %v1353_v32 }
  0x72   : > { %477 = vmatprep.subr.bf16.mxu0 %v1335_v22  ;;  %1230 = vmatprep.subr.bf16.mxu1 %v1354_v33 }
  0x75   : > { %478 = vmatpush1.bf16.msra.mxu0 %v1337_v23  ;;  %1231 = vmatpush3.bf16.msra.mxu1 %v1355_v34 }
  0x76   : > { %1232 = vmatprep.subr.bf16.mxu1 %v1356_v35  ;;  %880 = vmatprep.subr.bf16.mxu0 %v1360_v38 }
  0x78   : > { %496 = vmatmul.mubr.bf16.vlgmr.msra.gmra.mrb[0].mxu0 %v1338_v26 }
  0x79   : > { %505 = vmatprep.mubr.bf16.mxu0 %v1485_v0  ;;  %1233 = vmatpush3.bf16.msra.mxu1 %v1357_v36 }
  0x7a   : > { %1258 = vmatprep.subr.bf16.mxu1 %v1360_v38  ;;  %881 = vmatpush1.bf16.msra.mxu0 %v1358_v37 }
  0x7b   : > { %882 = vmatprep.subr.bf16.mxu0 %v1363_v39 }
  0x7e   : > { %883 = vmatpush1.bf16.msra.mxu0 %v1361_v40 }
  0x7f   : > { %884 = vmatprep.subr.bf16.mxu0 %v1366_v41 }
  0x80   : > { %506 = vmatmul.mubr.bf16.gmra.mrb[4].mxu0 %v1339_v29 }
  0x81   : > { %515 = vmatprep.mubr.bf16.mxu0 %v1485_v0 }
  0x82   : > { %885 = vmatpush1.bf16.msra.mxu0 %v1364_v42 }
  0x83   : > { %886 = vmatprep.subr.bf16.mxu0 %v1369_v43 }
  0x86   : > { %887 = vmatpush1.bf16.msra.mxu0 %v1775_v44 }
  0x87   : > { %888 = vmatprep.subr.bf16.mxu0 %v1780_v45 }
  0x88   : > { %516 = vmatmul.mubr.bf16.gmra.mrb[8].mxu0 %v1340_v30 }
  0x89   : > { %525 = vmatprep.mubr.bf16.mxu0 %v1485_v0 }
  0x8a   : > { %889 = vmatpush1.bf16.msra.mxu0 %v1786_v46 }
  0x90   : > { %526 = vmatmul.mubr.bf16.gmra.mrb[12].mxu0 %v1341_v31 }
  0x91   : > { %912 = vmatprep.mubr.bf16.mxu0 %v1485_v0 }
 0x14b   : > { %v497_v54 = vpop.f32.mrb[0].mxu0 }
 0x14c   : > { %v499_v55 = vpop.f32.mrb[1].mxu0  ;;  %v1803_v58 = vadd.f32 %v497_v54, %v352_v53  ;;  %v1381_v54 = vld [vmem:[%s1990_s5 + $0x74] ss:$8 sps:$4 sm:$0xff]  }
 0x14d   : > { %v1801_v56 = vadd.f32 %v499_v55, %v1796_v52  ;;  %v501_v57 = vpop.f32.mrb[2].mxu0  ;;  %v1379_v55 = vld [vmem:[%s1990_s5 + $0x70] ss:$8 sps:$4 sm:$0xff]  }
 0x14e   : > { %v1805_v59 = vadd.f32 %v501_v57, %v352_v53  ;;  %v503_v60 = vpop.f32.mrb[3].mxu0  ;;  %v536_v2 = vmax.f32 %v1803_v58, 0.0 }
 0x14f   : > { %v1808_v61 = vadd.f32 %v503_v60, %v1796_v52  ;;  %v537_v63 = vmax.f32 %v1801_v56, 0.0  ;;  %v1166_v60 = vld [vmem:[#allocation4] ss:$0 sm:$0xff] }
 0x150   : > { %v538_v62 = vmax.f32 %v1805_v59, 0.0 }
 0x151   : > { %v539_v1 = vmax.f32 %v1808_v61, 0.0 }
 0x152   : > { %v552_v5 = vpack.c.bf16 %v538_v62, %v536_v2 }
 0x153   : > { %v507_v3 = vpop.f32.mrb[4].mxu0  ;;  %v553_v4 = vpack.c.bf16 %v539_v1, %v537_v63 }
 0x154   : > { %v509_v6 = vpop.f32.mrb[5].mxu0  ;;  %v1825_v9 = vadd.f32 %v507_v3, %v352_v53 }
 0x155   : > { %v1823_v7 = vadd.f32 %v509_v6, %v1796_v52  ;;  %v511_v8 = vpop.f32.mrb[6].mxu0  ;;  %727 = vmatprep.mubr.bf16.mxu1 %v553_v4 }
 0x156   : > { %v1827_v10 = vadd.f32 %v511_v8, %v352_v53  ;;  %v513_v11 = vpop.f32.mrb[7].mxu0  ;;  %728 = vmatmul.mubr.bf16.vlgmr.msra.gmra.mrb[0].mxu1 %v552_v5  ;;  %v540_v16 = vmax.f32 %v1825_v9, 0.0 }
 0x157   : > { %v1830_v12 = vadd.f32 %v513_v11, %v1796_v52  ;;  %1266 = vmatpush1.bf16.msra.mxu1 %v1358_v37  ;;  %v541_v14 = vmax.f32 %v1823_v7, 0.0 }
 0x158   : > { %v542_v13 = vmax.f32 %v1827_v10, 0.0  ;;  %1259 = vmatprep.subr.bf16.mxu1 %v1363_v39 }
 0x159   : > { %v543_v15 = vmax.f32 %v1830_v12, 0.0 }
 0x15a   : > { %v554_v19 = vpack.c.bf16 %v542_v13, %v540_v16 }
 0x15b   : > { %v555_v17 = vpack.c.bf16 %v543_v15, %v541_v14  ;;  %v517_v18 = vpop.f32.mrb[8].mxu0  ;;  %1267 = vmatpush1.bf16.msra.mxu1 %v1361_v40 }
 0x15c   : > { %v519_v20 = vpop.f32.mrb[9].mxu0  ;;  %1260 = vmatprep.subr.bf16.mxu1 %v1366_v41  ;;  %v1847_v23 = vadd.f32 %v517_v18, %v352_v53 }
 0x15d   : > { %v1845_v21 = vadd.f32 %v519_v20, %v1796_v52  ;;  %v521_v22 = vpop.f32.mrb[10].mxu0  ;;  %735 = vmatprep.mubr.bf16.mxu1 %v555_v17 }
 0x15e   : > { %v1849_v24 = vadd.f32 %v521_v22, %v352_v53  ;;  %v523_v25 = vpop.f32.mrb[11].mxu0  ;;  %736 = vmatmul.mubr.bf16.gmra.mrb[4].mxu1 %v554_v19  ;;  %v544_v30 = vmax.f32 %v1847_v23, 0.0 }
 0x15f   : > { %v1852_v26 = vadd.f32 %v523_v25, %v1796_v52  ;;  %1268 = vmatpush1.bf16.msra.mxu1 %v1364_v42  ;;  %v545_v28 = vmax.f32 %v1845_v21, 0.0 }
 0x160   : > { %v546_v27 = vmax.f32 %v1849_v24, 0.0  ;;  %1261 = vmatprep.subr.bf16.mxu1 %v1369_v43 }
 0x161   : > { %v547_v29 = vmax.f32 %v1852_v26, 0.0 }
 0x162   : > { %v556_v33 = vpack.c.bf16 %v546_v27, %v544_v30 }
 0x163   : > { %v557_v31 = vpack.c.bf16 %v547_v29, %v545_v28  ;;  %v527_v32 = vpop.f32.mrb[12].mxu0  ;;  %1269 = vmatpush1.bf16.msra.mxu1 %v1775_v44 }
 0x164   : > { %v529_v34 = vpop.f32.mrb[13].mxu0  ;;  %1262 = vmatprep.subr.bf16.mxu1 %v1780_v45  ;;  %v1871_v37 = vadd.f32 %v527_v32, %v352_v53 }
 0x165   : > { %v1869_v35 = vadd.f32 %v529_v34, %v1796_v52  ;;  %v531_v36 = vpop.f32.mrb[14].mxu0  ;;  %743 = vmatprep.mubr.bf16.mxu1 %v557_v31 }
 0x166   : > { %v1873_v38 = vadd.f32 %v531_v36, %v352_v53  ;;  %v533_v39 = vpop.f32.mrb[15].mxu0  ;;  %744 = vmatmul.mubr.bf16.gmra.mrb[8].mxu1 %v556_v33  ;;  %v548_v44 = vmax.f32 %v1871_v37, 0.0  ;;  %v1376_v53 = vld [vmem:[%s1990_s5 + $0x60] ss:$8 sps:$4 sm:$0xff]  }
 0x167   : > { %v1876_v40 = vadd.f32 %v533_v39, %v1796_v52  ;;  %1270 = vmatpush1.bf16.msra.mxu1 %v1786_v46  ;;  %v549_v42 = vmax.f32 %v1869_v35, 0.0  ;;  %v1375_v46 = vld [vmem:[%s1990_s5 + $0x54] ss:$8 sps:$4 sm:$0xff]   ;;  %v1378_v52 = vld [vmem:[%s1990_s5 + $0x64] ss:$8 sps:$4 sm:$0xff]  }
 0x168   : > { %v550_v41 = vmax.f32 %v1873_v38, 0.0  ;;  %890 = vmatprep.subr.bf16.mxu0 %v1375_v46  ;;  %1263 = vmatprep.subr.bf16.mxu1 %v1375_v46 }
 0x169   : > { %v551_v43 = vmax.f32 %v1876_v40, 0.0  ;;  %891 = vmatpush1.bf16.msra.mxu0 %v1373_v50 }
 0x16a   : > { %v558_v47 = vpack.c.bf16 %v550_v41, %v548_v44  ;;  %892 = vmatprep.subr.bf16.mxu0 %v1378_v52 }
 0x16b   : > { %v559_v45 = vpack.c.bf16 %v551_v43, %v549_v42  ;;  %1271 = vmatpush1.bf16.msra.mxu1 %v1373_v50 }
 0x16c   : > { %1264 = vmatprep.subr.bf16.mxu1 %v1378_v52 }
 0x16d   : > { %751 = vmatprep.mubr.bf16.mxu1 %v559_v45  ;;  %893 = vmatpush1.bf16.msra.mxu0 %v1376_v53 }
 0x16e   : > { %752 = vmatmul.mubr.bf16.gmra.mrb[12].mxu1 %v558_v47  ;;  %894 = vmatprep.subr.bf16.mxu0 %v1381_v54 }
 0x16f   : > { %932 = vmatprep.mubr.bf16.mxu1 %v1485_v0  ;;  %1272 = vmatpush1.bf16.msra.mxu1 %v1376_v53 }
 0x170   : > { %1265 = vmatprep.subr.bf16.mxu1 %v1381_v54 }
 0x171   : > { %895 = vmatpush1.bf16.msra.mxu0 %v1379_v55 }
 0x173   : > { %1273 = vmatpush1.bf16.msra.mxu1 %v1379_v55 }
 0x229   : > { %v1234_v57 = vpop.f32.mrb[0].mxu1 }
 0x22a   : > { %v1235_v3 = vpop.f32.mrb[1].mxu1 }
 0x22b   : > { %v1236_v4 = vadd.f32 %v1235_v3, %v1234_v57  ;;  %v1237_v5 = vpop.f32.mrb[2].mxu1 }
 0x22c   : > { %v1238_v6 = vpop.f32.mrb[3].mxu1 }
 0x22d   : > { %v730_v8 = vadd.f32 %v1236_v4, %v1166_v60  ;;  %v1239_v11 = vadd.f32 %v1238_v6, %v1237_v5 }
 0x22f   : > { %v733_v17 = vadd.f32 %v1239_v11, %v1166_v60  ;;  %v760_v18 = vmax.f32 %v730_v8, 0.0 }
 0x231   : > { %v761_v19 = vmax.f32 %v733_v17, 0.0  ;;  %v1240_v20 = vpop.f32.mrb[4].mxu1 }
 0x232   : > { %v1241_v22 = vpop.f32.mrb[5].mxu1 }
 0x233   : > { %v768_v25 = vpack.c.bf16 %v761_v19, %v760_v18  ;;  %v1242_v31 = vadd.f32 %v1241_v22, %v1240_v20  ;;  %v1243_v32 = vpop.f32.mrb[6].mxu1 }
 0x234   : > { %v1244_v33 = vpop.f32.mrb[7].mxu1 }
 0x235   : > { %v738_v34 = vadd.f32 %v1242_v31, %v1166_v60  ;;  %v1245_v36 = vadd.f32 %v1244_v33, %v1243_v32  ;;  %913 = vmatmul.mubr.bf16.vlgmr.msra.gmra.mrb[16].mxu0 %v768_v25 }
 0x236   : > { %922 = vmatprep.mubr.bf16.mxu0 %v1485_v0 }
 0x237   : > { %v741_v39 = vadd.f32 %v1245_v36, %v1166_v60  ;;  %v762_v45 = vmax.f32 %v738_v34, 0.0  ;;  %v788_v36 = vld [vmem:[#allocation6] sm:$0x3] }
 0x239   : > { %v763_v47 = vmax.f32 %v741_v39, 0.0  ;;  %v1246_v46 = vpop.f32.mrb[8].mxu1  ;;  %v1914_v39 = vrot.slane %v788_v36, %v351_v51 }
 0x23a   : > { %v1247_v50 = vpop.f32.mrb[9].mxu1 }
 0x23b   : > { %v1248_v52 = vadd.f32 %v1247_v50, %v1246_v46  ;;  %v1249_v53 = vpop.f32.mrb[10].mxu1  ;;  %v769_v54 = vpack.c.bf16 %v763_v47, %v762_v45  ;;  %v1918_v45 = vrot.slane %v788_v36, %v355_v49 }
 0x23c   : > { %v1250_v55 = vpop.f32.mrb[11].mxu1 }
 0x23d   : > { %v746_v57 = vadd.f32 %v1248_v52, %v1166_v60  ;;  %v1251_v3 = vadd.f32 %v1250_v55, %v1249_v53  ;;  %923 = vmatmul.mubr.bf16.gmra.mrb[20].mxu0 %v769_v54 }
 0x23f   : > { %v749_v4 = vadd.f32 %v1251_v3, %v1166_v60  ;;  %v764_v5 = vmax.f32 %v746_v57, 0.0 }
 0x241   : > { %v765_v6 = vmax.f32 %v749_v4, 0.0  ;;  %v1252_v8 = vpop.f32.mrb[12].mxu1 }
 0x242   : > { %v1253_v11 = vpop.f32.mrb[13].mxu1 }
 0x243   : > { %v770_v17 = vpack.c.bf16 %v765_v6, %v764_v5  ;;  %v1254_v18 = vadd.f32 %v1253_v11, %v1252_v8  ;;  %v1255_v19 = vpop.f32.mrb[14].mxu1 }
 0x244   : > { %v1256_v20 = vpop.f32.mrb[15].mxu1 }
 0x245   : > { %v754_v22 = vadd.f32 %v1254_v18, %v1166_v60  ;;  %v1257_v25 = vadd.f32 %v1256_v20, %v1255_v19  ;;  %933 = vmatmul.mubr.bf16.vlgmr.msra.gmra.mrb[16].mxu1 %v770_v17 }
 0x246   : > { %942 = vmatprep.mubr.bf16.mxu1 %v1485_v0 }
 0x247   : > { %v757_v31 = vadd.f32 %v1257_v25, %v1166_v60  ;;  %v766_v32 = vmax.f32 %v754_v22, 0.0 }
 0x249   : > { %v767_v33 = vmax.f32 %v757_v31, 0.0 }
 0x24b   : > { %v771_v34 = vpack.c.bf16 %v767_v33, %v766_v32 }
 0x24d   : > { %943 = vmatmul.mubr.bf16.gmra.mrb[20].mxu1 %v771_v34 }
 0x308   : > { %v914_v47 = vpop.f32.mrb[16].mxu0 }
 0x309   : > { %v915_v46 = vadd.f32 %v914_v47, %v1914_v39  ;;  %v916_v50 = vpop.f32.mrb[17].mxu0 }
 0x30a   : > { %v917_v0 = vadd.f32 %v916_v50, %v1918_v45  ;;  %v918_v60 = vpop.f32.mrb[18].mxu0 }
 0x30b   : > { %v953_v52 = vadd.f32 %v915_v46, %v536_v2  ;;  %v919_v53 = vadd.f32 %v918_v60, %v1914_v39  ;;  %v920_v54 = vpop.f32.mrb[19].mxu0 }
 0x30c   : > { %v954_v51 = vadd.f32 %v917_v0, %v537_v63  ;;  %v921_v48 = vadd.f32 %v920_v54, %v1918_v45 }
 0x30d   : > { %v969_v49 = vmax.f32 %v953_v52, 0.0  ;;  %v955_v55 = vadd.f32 %v919_v53, %v538_v62 }
 0x30e   : > { %v970_v57 = vmax.f32 %v954_v51, 0.0  ;;  %v956_v3 = vadd.f32 %v921_v48, %v539_v1 }
 0x30f   : > { %v971_v58 = vmax.f32 %v955_v55, 0.0 }
 0x310   : > { %v1210_v56 = vpack.c.bf16 %v970_v57, %v969_v49  ;;  %v972_v63 = vmax.f32 %v956_v3, 0.0  ;;  %v924_v2 = vpop.f32.mrb[20].mxu0 }
 0x311   : > { %v925_v4 = vadd.f32 %v924_v2, %v1914_v39  ;;  %v926_v5 = vpop.f32.mrb[21].mxu0 }
 0x312   : > { %1033 = vst [vmem:[%s1936_s27] sm:$0xff] %v1210_v56  ;;  %v1211_v59 = vpack.c.bf16 %v972_v63, %v971_v58  ;;  %v927_v62 = vadd.f32 %v926_v5, %v1918_v45  ;;  %v928_v61 = vpop.f32.mrb[22].mxu0 }
 0x313   : > { %v957_v1 = vadd.f32 %v925_v4, %v540_v16  ;;  %v929_v6 = vadd.f32 %v928_v61, %v1914_v39  ;;  %v930_v8 = vpop.f32.mrb[23].mxu0 }
 0x314   : > { %1034 = vst [vmem:[%s1936_s27 + $0x8] sm:$0xff] %v1211_v59  ;;  %v958_v11 = vadd.f32 %v927_v62, %v541_v14  ;;  %v931_v17 = vadd.f32 %v930_v8, %v1918_v45 }
 0x315   : > { %v973_v18 = vmax.f32 %v957_v1, 0.0  ;;  %v959_v19 = vadd.f32 %v929_v6, %v542_v13 }
 0x316   : > { %v974_v20 = vmax.f32 %v958_v11, 0.0  ;;  %v960_v9 = vadd.f32 %v931_v17, %v543_v15 }
 0x317   : > { %v975_v16 = vmax.f32 %v959_v19, 0.0 }
 0x318   : > { %v1212_v22 = vpack.c.bf16 %v974_v20, %v973_v18  ;;  %v976_v25 = vmax.f32 %v960_v9, 0.0  ;;  %v934_v31 = vpop.f32.mrb[16].mxu1 }
 0x319   : > { %v935_v32 = vadd.f32 %v934_v31, %v1914_v39  ;;  %v936_v33 = vpop.f32.mrb[17].mxu1 }
 0x31a   : > { %1035 = vst [vmem:[%s1936_s27 + $0x10] sm:$0xff] %v1212_v22  ;;  %v1213_v7 = vpack.c.bf16 %v976_v25, %v975_v16  ;;  %v937_v14 = vadd.f32 %v936_v33, %v1918_v45  ;;  %v938_v34 = vpop.f32.mrb[18].mxu1 }
 0x31b   : > { %v961_v10 = vadd.f32 %v935_v32, %v544_v30  ;;  %v939_v13 = vadd.f32 %v938_v34, %v1914_v39  ;;  %v940_v12 = vpop.f32.mrb[19].mxu1 }
 0x31c   : > { %1036 = vst [vmem:[%s1936_s27 + $0x18] sm:$0xff] %v1213_v7  ;;  %v962_v15 = vadd.f32 %v937_v14, %v545_v28  ;;  %v941_v36 = vadd.f32 %v940_v12, %v1918_v45 }
 0x31d   : > { %v977_v47 = vmax.f32 %v961_v10, 0.0  ;;  %v963_v46 = vadd.f32 %v939_v13, %v546_v27 }
 0x31e   : > { %v978_v50 = vmax.f32 %v962_v15, 0.0  ;;  %v964_v23 = vadd.f32 %v941_v36, %v547_v29 }
 0x31f   : > { %v979_v30 = vmax.f32 %v963_v46, 0.0 }
 0x320   : > { %v1214_v0 = vpack.c.bf16 %v978_v50, %v977_v47  ;;  %v980_v60 = vmax.f32 %v964_v23, 0.0  ;;  %v944_v52 = vpop.f32.mrb[20].mxu1 }
 0x321   : > { %v945_v53 = vadd.f32 %v944_v52, %v1914_v39  ;;  %v946_v54 = vpop.f32.mrb[21].mxu1 }
 0x322   : > { %1037 = vst [vmem:[%s1936_s27 + $0x20] sm:$0xff] %v1214_v0  ;;  %v1215_v21 = vpack.c.bf16 %v980_v60, %v979_v30  ;;  %v947_v28 = vadd.f32 %v946_v54, %v1918_v45  ;;  %v948_v51 = vpop.f32.mrb[22].mxu1 }
 0x323   : > { %v965_v24 = vadd.f32 %v945_v53, %v548_v44  ;;  %v949_v26 = vadd.f32 %v948_v51, %v1914_v39  ;;  %v950_v27 = vpop.f32.mrb[23].mxu1 }
 0x324   : > { %1038 = vst [vmem:[%s1936_s27 + $0x28] sm:$0xff] %v1215_v21  ;;  %v966_v29 = vadd.f32 %v947_v28, %v549_v42  ;;  %v951_v48 = vadd.f32 %v950_v27, %v1918_v45 }
 0x325   : > { %v981_v49 = vmax.f32 %v965_v24, 0.0  ;;  %v967_v55 = vadd.f32 %v949_v26, %v550_v41 }
 0x326   : > { %v982_v57 = vmax.f32 %v966_v29, 0.0  ;;  %v968_v3 = vadd.f32 %v951_v48, %v551_v43 }
 0x327   : > { %v983_v37 = vmax.f32 %v967_v55, 0.0 }
 0x328   : > { %v1216_v58 = vpack.c.bf16 %v982_v57, %v981_v49  ;;  %v984_v44 = vmax.f32 %v968_v3, 0.0 }
 0x32a   : > { %1039 = vst [vmem:[%s1936_s27 + $0x30] sm:$0xff] %v1216_v58  ;;  %v1217_v39 = vpack.c.bf16 %v984_v44, %v983_v37 }
 0x32c   : > { %1040 = vst [vmem:[%s1936_s27 + $0x38] sm:$0xff] %v1217_v39 }
 0x32d PF: > { %s19_s24 = sadd.s32 1, %s1480_s24  }
 0x32e   : > { %p16_p7 = scmp.ge.s32.totalorder %s19_s24, 4  }
 0x330   :  { %18 = sbr.rel (!%p16_p7) target bundleno = 2 (0x2), region = 91 }
 0x337   :  { %1065 = vsyncpa [#allocation3], 1 }
 0x338   :  { %1067 = vsyncpa [#allocation3 + $0x1], 1 }
 0x339   :  { %1068 = vsyncpa [#allocation5], 1 }

// kernel: _lambda_.14
= control target key start
LH: loop header
LB: loop body
LE: loop exit
PB: predicated region body
PF: predicated region fallthrough
CT: control target
= control target key end

     0   :  { %s961_s24 = smov 0   ;;  %s1089_s0 = inlined_call_operand.vmem [shape: bf16[32,256], index: 0, kind: input, shape index: {}]   ;;  %s1090_s1 = inlined_call_operand.vmem [shape: bf16[256,128], index: 1, kind: input, shape index: {}]   ;;  %s1091_s2 = inlined_call_operand.vmem [shape: f32[1,128], index: 2, kind: input, shape index: {}]   ;;  %s1092_s3 = inlined_call_operand.vmem [shape: bf16[128,64], index: 3, kind: input, shape index: {}]   ;;  %s1093_s4 = inlined_call_operand.vmem [shape: f32[1,64], index: 4, kind: input, shape index: {}]   ;;  %s1094_s5 = inlined_call_operand.vmem [shape: bf16[64,128], index: 5, kind: input, shape index: {}]   ;;  %s1095_s6 = inlined_call_operand.vmem [shape: f32[1,128], index: 6, kind: input, shape index: {}]   ;;  %s1096_s7 = inlined_call_operand.vmem [shape: bf16[32,128], index: 7, kind: output, shape index: {}]  }
   0x1 LB: > { %s746_s25 = sadd.s32 4294967295, %s917_s24   ;;  %p750_p0 = scmp.ge.s32.totalorder %s917_s24, 1  ;;  %s917_s24 = sphi %s961_s24, %s17_s24  }
   0x2   : > { %p239_p1 = scmp.lt.s32.totalorder %s917_s24, 3 }
   0x4   : > { %p240_p2 = pnand %p750_p0, %p239_p1 }
   0x5   : > { %v880_v0 = vld [vmem:[%s1090_s1 + $0x40] sm:$0xff] (!%p240_p2)   ;;  %s751_s28 = sshll.u32 (!%p240_p2), %s746_s25, 1  ;;  %v882_v2 = vld [vmem:[%s1090_s1 + $0x48] sm:$0xff] (!%p240_p2)   ;;  %v919_v4 = vmov (!%p240_p2), 0.0   ;;  %v884_v5 = vld [vmem:[%s1090_s1 + $0x50] sm:$0xff] (!%p240_p2)   ;;  %vm920_vm0 = vmmov (!%p240_p2), 0  }
   0x6   : > { %243 = sbr.rel (%p240_p2) target bundleno = 704 (0x2c0), region = 48  ;;  %v881_v1 = vld [vmem:[%s1090_s1] sm:$0xff] (!%p240_p2)   ;;  %802 = vmatprep.subr.bf16.mxu0 (!%p240_p2), %v880_v0  ;;  %v883_v3 = vld [vmem:[%s1090_s1 + $0x8] sm:$0xff] (!%p240_p2)   ;;  %p273_p3 = scmp.lt.s32.totalorder (!%p240_p2), %s751_s28, 3  ;;  %838 = vmatprep.subr.bf16.mxu1 (!%p240_p2), %v919_v4  ;;  %v885_v6 = vld [vmem:[%s1090_s1 + $0x10] sm:$0xff] (!%p240_p2)   ;;  %vm631_vm1 = vcmask (!%p240_p2), 523264  }
   0x7   : > { %803 = vmatpush3.bf16.msra.mxu0 (!%p240_p2), %v881_v1  ;;  %v886_v7 = vld [vmem:[%s1090_s1 + $0x58] sm:$0xff] (!%p240_p2)   ;;  %v888_v9 = vld [vmem:[%s1090_s1 + $0x60] sm:$0xff] (!%p240_p2)   ;;  %v890_v11 = vld [vmem:[%s1090_s1 + $0x68] sm:$0xff] (!%p240_p2)   ;;  %854 = vmatprep.mubr.msk.bf16.mxu1 (!%p240_p2), %vm920_vm0, %v919_v4 }
   0x8   : > { %804 = vmatprep.subr.bf16.mxu0 (!%p240_p2), %v882_v2  ;;  %v887_v8 = vld [vmem:[%s1090_s1 + $0x18] sm:$0xff] (!%p240_p2)   ;;  %v889_v10 = vld [vmem:[%s1090_s1 + $0x20] sm:$0xff] (!%p240_p2)   ;;  %v891_v12 = vld [vmem:[%s1090_s1 + $0x28] sm:$0xff] (!%p240_p2)  }
   0x9   : > { %v899_v14 = vld [vmem:[%s1092_s3] sm:$0xff] (!%p240_p2)   ;;  %v892_v15 = vld [vmem:[%s1090_s1 + $0x70] sm:$0xff] (!%p240_p2)   ;;  %v900_v16 = vld [vmem:[%s1092_s3 + $0x8] sm:$0xff] (!%p240_p2)  }
   0xa   : > { %839 = vmatpush3.bf16.msra.mxu1 (!%p240_p2), %v899_v14  ;;  %v893_v17 = vld [vmem:[%s1090_s1 + $0x30] sm:$0xff] (!%p240_p2)   ;;  %v894_v18 = vld [vmem:[%s1090_s1 + $0x78] sm:$0xff] (!%p240_p2)   ;;  %v903_v23 = vld [vmem:[%s1092_s3 + $0x20] sm:$0xff] (!%p240_p2)  }
   0xb   : > { %805 = vmatpush3.bf16.msra.mxu0 (!%p240_p2), %v883_v3  ;;  %840 = vmatprep.subr.bf16.mxu1 (!%p240_p2), %v919_v4  ;;  %v901_v19 = vld [vmem:[%s1092_s3 + $0x10] sm:$0xff] (!%p240_p2)   ;;  %v895_v20 = vld [vmem:[%s1090_s1 + $0x38] sm:$0xff] (!%p240_p2)   ;;  %v904_v24 = vld [vmem:[%s1092_s3 + $0x28] sm:$0xff] (!%p240_p2)  }
   0xc   : > { %806 = vmatprep.subr.bf16.mxu0 (!%p240_p2), %v884_v5  ;;  %v902_v21 = vld [vmem:[%s1092_s3 + $0x18] sm:$0xff] (!%p240_p2)   ;;  %v905_v25 = vld [vmem:[%s1092_s3 + $0x30] sm:$0xff] (!%p240_p2)   ;;  %v907_v27 = vld [vmem:[%s1094_s5] sm:$0xff] (!%p240_p2)  }
   0xd   : > { %s1098_s28 = smov (!%p273_p3, %s751_s28), 3  ;;  %v906_v26 = vld [vmem:[%s1092_s3 + $0x38] sm:$0xff]   ;;  %v908_v28 = vld [vmem:[%s1094_s5 + $0x8] sm:$0xff]   ;;  %v756_v30 = vld [vmem:[%s1091_s2] ss:$0 sm:$0xff] }
   0xe   : > { %s794_s20 = sshll.u32 %s1098_s28, 3  ;;  %841 = vmatpush3.bf16.msra.mxu1 %v900_v16  ;;  %v909_v41 = vld [vmem:[%s1094_s5 + $0x10] sm:$0xff]   ;;  %v910_v42 = vld [vmem:[%s1094_s5 + $0x18] sm:$0xff]   ;;  %v775_v43 = vld [vmem:[%s1093_s4] ss:$0 sm:$0xff]  ;;  %s755_s8 = sshll.u32 %s1098_s28, 2 }
   0xf   : > { %807 = vmatpush3.bf16.msra.mxu0 %v885_v6  ;;  %s277_s26 = scalar_lea.vmem %s1089_s0, %s794_s20  ;;  %842 = vmatprep.subr.bf16.mxu1 %v919_v4  ;;  %v784_v53 = vld [vmem:[%s1095_s6] ss:$0 sm:$0xff] }
  0x10   : > { %808 = vmatprep.subr.bf16.mxu0 %v886_v7  ;;  %v898_v13 = vld [vmem:[%s277_s26 + $0x4] ss:$8 sps:$4 sm:$0xff]   ;;  %v896_v22 = vld [vmem:[%s277_s26] ss:$8 sps:$4 sm:$0xff]   ;;  %s283_s26 = scalar_lea.vmem %s1096_s7, %s755_s8 }
  0x11   : > { %465 = vmatprep.mubr.bf16.mxu0 %v898_v13 }
  0x12   : > { %843 = vmatpush3.bf16.msra.mxu1 %v901_v19 }
  0x13   : > { %809 = vmatpush3.bf16.msra.mxu0 %v887_v8  ;;  %844 = vmatprep.subr.bf16.mxu1 %v919_v4 }
  0x14   : > { %810 = vmatprep.subr.bf16.mxu0 %v888_v9 }
  0x16   : > { %845 = vmatpush3.bf16.msra.mxu1 %v902_v21 }
  0x17   : > { %811 = vmatpush3.bf16.msra.mxu0 %v889_v10  ;;  %846 = vmatprep.subr.bf16.mxu1 %v919_v4 }
  0x18   : > { %812 = vmatprep.subr.bf16.mxu0 %v890_v11 }
  0x1a   : > { %847 = vmatpush3.bf16.msra.mxu1 %v903_v23 }
  0x1b   : > { %813 = vmatpush3.bf16.msra.mxu0 %v891_v12  ;;  %848 = vmatprep.subr.bf16.mxu1 %v919_v4 }
  0x1c   : > { %814 = vmatprep.subr.bf16.mxu0 %v892_v15 }
  0x1e   : > { %849 = vmatpush3.bf16.msra.mxu1 %v904_v24 }
  0x1f   : > { %815 = vmatpush3.bf16.msra.mxu0 %v893_v17  ;;  %850 = vmatprep.subr.bf16.mxu1 %v919_v4 }
  0x20   : > { %816 = vmatprep.subr.bf16.mxu0 %v894_v18 }
  0x22   : > { %851 = vmatpush3.bf16.msra.mxu1 %v905_v25 }
  0x23   : > { %817 = vmatpush3.bf16.msra.mxu0 %v895_v20  ;;  %852 = vmatprep.subr.bf16.mxu1 %v919_v4 }
  0x24   : > { %858 = vmatprep.subr.bf16.mxu0 %v919_v4 }
  0x26   : > { %466 = vmatmul.mubr.bf16.vlgmr.msra.gmra.mrb[0].mxu0 %v896_v22  ;;  %853 = vmatpush3.bf16.msra.mxu1 %v906_v26 }
  0x27   : > { %866 = vmatprep.mubr.msk.bf16.mxu0 %vm920_vm0, %v919_v4  ;;  %859 = vmatpush3.bf16.msra.mxu0 %v907_v27 }
  0x28   : > { %860 = vmatprep.subr.bf16.mxu0 %v919_v4 }
  0x2b   : > { %861 = vmatpush3.bf16.msra.mxu0 %v908_v28 }
  0x2c   : > { %862 = vmatprep.subr.bf16.mxu0 %v919_v4 }
  0x2f   : > { %863 = vmatpush3.bf16.msra.mxu0 %v909_v41 }
  0x30   : > { %864 = vmatprep.subr.bf16.mxu0 %v919_v4 }
  0x33   : > { %865 = vmatpush3.bf16.msra.mxu0 %v910_v42 }
  0xf9   : > { %v818_v29 = vpop.f32.mrb[0].mxu0 }
  0xfa   : > { %v819_v31 = vpop.f32.mrb[1].mxu0 }
  0xfb   : > { %v820_v32 = vadd.f32 %v819_v31, %v818_v29  ;;  %v821_v33 = vpop.f32.mrb[2].mxu0 }
  0xfc   : > { %v822_v34 = vpop.f32.mrb[3].mxu0 }
  0xfd   : > { %v468_v35 = vadd.f32 %v820_v32, %v756_v30  ;;  %v823_v36 = vadd.f32 %v822_v34, %v821_v33 }
  0xff   : > { %v471_v37 = vadd.f32 %v823_v36, %v756_v30  ;;  %v474_v38 = vmax.f32 %v468_v35, 0.0 }
 0x101   : > { %v475_v39 = vmax.f32 %v471_v37, 0.0 }
 0x103   : > { %v476_v40 = vpack.c.bf16 %v475_v39, %v474_v38 }
 0x105   : > { %855 = vmatmul.mubr.bf16.vlgmr.msra.gmra.mrb[0].mxu1 %v476_v40 }
 0x1d8   : > { %v582_v44 = vpop.f32.mrb[0].mxu1 }
 0x1d9   : > { %v583_v45 = vadd.f32 %v775_v43, %v582_v44  ;;  %v856_v46 = vpop.f32.mrb[1].mxu1 }
 0x1da   : > { %v585_v47 = vpop.f32.mrb[2].mxu1 }
 0x1db   : > { %v586_v48 = vadd.f32 %v775_v43, %v585_v47  ;;  %v857_v49 = vpop.f32.mrb[3].mxu1  ;;  %v589_v50 = vmax.f32 %v583_v45, 0.0 }
 0x1dd   : > { %v590_v51 = vmax.f32 %v586_v48, 0.0 }
 0x1df   : > { %v591_v52 = vpack.c.bf16 %v590_v51, %v589_v50 }
 0x1e1   : > { %867 = vmatmul.mubr.msk.bf16.vlgmr.msra.gmra.mrb[4].mxu0 %vm631_vm1, %v591_v52 }
 0x2b4   : > { %v669_v54 = vpop.f32.mrb[4].mxu0 }
 0x2b5   : > { %v670_v55 = vadd.f32 %v784_v53, %v669_v54  ;;  %v868_v56 = vpop.f32.mrb[5].mxu0 }
 0x2b6   : > { %v672_v57 = vpop.f32.mrb[6].mxu0 }
 0x2b7   : > { %v676_v58 = vadd.f32 %v670_v55, %v474_v38  ;;  %v673_v59 = vadd.f32 %v784_v53, %v672_v57  ;;  %v869_v60 = vpop.f32.mrb[7].mxu0 }
 0x2b9   : > { %v677_v61 = vadd.f32 %v673_v59, %v475_v39  ;;  %v678_v62 = vmax.f32 %v676_v58, 0.0 }
 0x2bb   : > { %v679_v63 = vmax.f32 %v677_v61, 0.0 }
 0x2bd   : > { %v800_v0 = vpack.c.bf16 %v679_v63, %v678_v62 }
 0x2bf   : > { %801 = vst [vmem:[%s283_s26] sm:$0xff] %v800_v0  }
 0x2c0 PF: > { %s17_s24 = sadd.s32 1, %s917_s24  }
 0x2c1   : > { %p14_p4 = scmp.ge.s32.totalorder %s17_s24, 4  }
 0x2c3   :  { %16 = sbr.rel (!%p14_p4) target bundleno = 1 (0x1), region = 78 }

// kernel: _lambda_.15
= control target key start
LH: loop header
LB: loop body
LE: loop exit
PB: predicated region body
PF: predicated region fallthrough
CT: control target
= control target key end

     0   :  { %s932_s30 = smov 0   ;;  %s1051_s0 = inlined_call_operand.vmem [shape: bf16[16,128], index: 0, kind: input, shape index: {}]   ;;  %s1052_s1 = inlined_call_operand.vmem [shape: bf16[128,64], index: 1, kind: input, shape index: {}]   ;;  %s1053_s2 = inlined_call_operand.vmem [shape: f32[1,64], index: 2, kind: input, shape index: {}]   ;;  %s1054_s3 = inlined_call_operand.vmem [shape: bf16[64,32], index: 3, kind: input, shape index: {}]   ;;  %s1055_s4 = inlined_call_operand.vmem [shape: f32[1,32], index: 4, kind: input, shape index: {}]   ;;  %s1056_s5 = inlined_call_operand.vmem [shape: bf16[32,64], index: 5, kind: input, shape index: {}]   ;;  %s1057_s6 = inlined_call_operand.vmem [shape: f32[1,64], index: 6, kind: input, shape index: {}]   ;;  %s1058_s7 = inlined_call_operand.vmem [shape: bf16[64,8], index: 7, kind: input, shape index: {}]   ;;  %s1059_s8 = inlined_call_operand.vmem [shape: f32[1,8], index: 8, kind: input, shape index: {}]   ;;  %s1060_s9 = inlined_call_operand.vmem [shape: f32[16,8], index: 9, kind: output, shape index: {}]  }
   0x1 LB: > { %s736_s10 = sadd.s32 4294967295, %s878_s30   ;;  %p740_p0 = scmp.ge.s32.totalorder %s878_s30, 1  ;;  %s878_s30 = sphi %s932_s30, %s19_s30  }
   0x2   : > { %p286_p1 = scmp.lt.s32.totalorder %s878_s30, 3 }
   0x4   : > { %p287_p2 = pnand %p740_p0, %p286_p1 }
   0x5   : > { %v854_v0 = vld [vmem:[%s1052_s1] sm:$0xff] (!%p287_p2)   ;;  %v880_v1 = vmov (!%p287_p2), 0.0   ;;  %v855_v2 = vld [vmem:[%s1052_s1 + $0x8] sm:$0xff] (!%p287_p2)   ;;  %vm881_vm0 = vmmov (!%p287_p2), 0   ;;  %v856_v3 = vld [vmem:[%s1052_s1 + $0x10] sm:$0xff] (!%p287_p2)   ;;  %p320_p3 = scmp.lt.s32.totalorder (!%p287_p2), %s736_s10, 1 }
   0x6   : > { %290 = sbr.rel (%p287_p2) target bundleno = 911 (0x38f), region = 56  ;;  %792 = vmatprep.subr.bf16.mxu0 (!%p287_p2), %v880_v1  ;;  %812 = vmatprep.subr.bf16.mxu1 (!%p287_p2), %v880_v1  ;;  %v862_v4 = vld [vmem:[%s1054_s3] sm:$0xff] (!%p287_p2)   ;;  %v857_v5 = vld [vmem:[%s1052_s1 + $0x18] sm:$0xff] (!%p287_p2)   ;;  %v863_v6 = vld [vmem:[%s1054_s3 + $0x8] sm:$0xff] (!%p287_p2)   ;;  %vm482_vm1 = vcmask (!%p287_p2), 523264   ;;  %vm551_vm2 = vcmask (!%p287_p2), 261120  }
   0x7   : > { %793 = vmatpush3.bf16.msra.mxu0 (!%p287_p2), %v854_v0  ;;  %808 = vmatprep.mubr.msk.bf16.mxu0 (!%p287_p2), %vm881_vm0, %v880_v1  ;;  %v858_v7 = vld [vmem:[%s1052_s1 + $0x20] sm:$0xff] (!%p287_p2)   ;;  %v859_v8 = vld [vmem:[%s1052_s1 + $0x28] sm:$0xff] (!%p287_p2)   ;;  %v860_v9 = vld [vmem:[%s1052_s1 + $0x30] sm:$0xff] (!%p287_p2)   ;;  %vm681_vm3 = vcmask (!%p287_p2), 64512  }
   0x8   : > { %794 = vmatprep.subr.bf16.mxu0 (!%p287_p2), %v880_v1  ;;  %820 = vmatprep.mubr.msk.bf16.mxu1 (!%p287_p2), %vm881_vm0, %v880_v1  ;;  %v861_v10 = vld [vmem:[%s1052_s1 + $0x38] sm:$0xff] (!%p287_p2)   ;;  %v864_v12 = vld [vmem:[%s1054_s3 + $0x10] sm:$0xff] (!%p287_p2)   ;;  %v743_v14 = vld [vmem:[%s1053_s2] ss:$0 sm:$0xff] (!%p287_p2) }
   0x9   : > { %813 = vmatpush3.bf16.msra.mxu1 (!%p287_p2), %v862_v4  ;;  %v865_v13 = vld [vmem:[%s1054_s3 + $0x18] sm:$0xff] (!%p287_p2)   ;;  %v866_v21 = vld [vmem:[%s1056_s5] sm:$0xff] (!%p287_p2)   ;;  %v867_v23 = vld [vmem:[%s1056_s5 + $0x8] sm:$0xff] (!%p287_p2)  }
   0xa   : > { %814 = vmatprep.subr.bf16.mxu1 (!%p287_p2), %v880_v1  ;;  %v752_v24 = vld [vmem:[%s1055_s4] ss:$0 sm:$0xff] (!%p287_p2)  ;;  %v869_v33 = vld [vmem:[%s1058_s7 + $0x8] sm:$0xff] (!%p287_p2)   ;;  %v870_v34 = vld [vmem:[%s1058_s7 + $0x10] sm:$0xff] (!%p287_p2)  }
   0xb   : > { %795 = vmatpush3.bf16.msra.mxu0 (!%p287_p2), %v855_v2  ;;  %v868_v31 = vld [vmem:[%s1058_s7] sm:$0xff] (!%p287_p2)   ;;  %v871_v35 = vld [vmem:[%s1058_s7 + $0x18] sm:$0xff] (!%p287_p2)  }
   0xc   : > { %796 = vmatprep.subr.bf16.mxu0 (!%p287_p2), %v880_v1  ;;  %v758_v36 = vld [vmem:[%s1057_s6] ss:$0 sm:$0xff] (!%p287_p2) }
   0xd   : > { %815 = vmatpush3.bf16.msra.mxu1 %v863_v6  ;;  %s1062_s10 = smov (!%p320_p3, %s736_s10), 1  ;;  %v762_v45 = vld [vmem:[%s1059_s8] ss:$0 sm:$0xff] }
   0xe   : > { %816 = vmatprep.subr.bf16.mxu1 %v880_v1  ;;  %s741_s29 = sshll.u32 %s1062_s10, 2  ;;  %s742_s21 = sshll.u32 %s1062_s10, 3 }
   0xf   : > { %797 = vmatpush3.bf16.msra.mxu0 %v856_v3  ;;  %s323_s15 = scalar_lea.vmem %s1051_s0, %s741_s29  ;;  %s327_s24 = scalar_lea.vmem %s1060_s9, %s742_s21 }
  0x10   : > { %798 = vmatprep.subr.bf16.mxu0 %v880_v1  ;;  %v329_v11 = vld [vmem:[%s323_s15] sm:$0xf] }
  0x11   : > { %817 = vmatpush3.bf16.msra.mxu1 %v864_v12 }
  0x12   : > { %818 = vmatprep.subr.bf16.mxu1 %v880_v1 }
  0x13   : > { %799 = vmatpush3.bf16.msra.mxu0 %v857_v5 }
  0x14   : > { %800 = vmatprep.subr.bf16.mxu0 %v880_v1 }
  0x15   : > { %819 = vmatpush3.bf16.msra.mxu1 %v865_v13 }
  0x16   : > { %824 = vmatprep.subr.bf16.mxu1 %v880_v1 }
  0x17   : > { %801 = vmatpush3.bf16.msra.mxu0 %v858_v7 }
  0x18   : > { %802 = vmatprep.subr.bf16.mxu0 %v880_v1 }
  0x1b   : > { %803 = vmatpush3.bf16.msra.mxu0 %v859_v8 }
  0x1c   : > { %804 = vmatprep.subr.bf16.mxu0 %v880_v1 }
  0x1f   : > { %805 = vmatpush3.bf16.msra.mxu0 %v860_v9 }
  0x20   : > { %806 = vmatprep.subr.bf16.mxu0 %v880_v1 }
  0x23   : > { %807 = vmatpush3.bf16.msra.mxu0 %v861_v10 }
  0x26   : > { %809 = vmatmul.mubr.bf16.vlgmr.msra.gmra.mrb[0].mxu0 %v329_v11 }
  0xf9   : > { %v435_v15 = vpop.f32.mrb[0].mxu0 }
  0xfa   : > { %v436_v16 = vadd.f32 %v743_v14, %v435_v15  ;;  %v810_v17 = vpop.f32.mrb[1].mxu0 }
  0xfb   : > { %v438_v18 = vpop.f32.mrb[2].mxu0 }
  0xfc   : > { %v441_v19 = vmax.f32 %v436_v16, 0.0  ;;  %v811_v20 = vpop.f32.mrb[3].mxu0 }
  0xfe   : > { %v442_v22 = vpack.c.bf16 %v441_v19, %v441_v19 }
 0x100   : > { %821 = vmatmul.mubr.msk.bf16.vlgmr.msra.gmra.mrb[0].mxu1 %vm482_vm1, %v442_v22 }
 0x101   : > { %825 = vmatpush3.bf16.msra.mxu1 %v866_v21  ;;  %828 = vmatprep.mubr.msk.bf16.mxu1 %vm881_vm0, %v880_v1 }
 0x102   : > { %826 = vmatprep.subr.bf16.mxu1 %v880_v1 }
 0x105   : > { %827 = vmatpush3.bf16.msra.mxu1 %v867_v23 }
 0x106   : > { %832 = vmatprep.subr.bf16.mxu1 %v880_v1 }
 0x1d3   : > { %v520_v25 = vpop.f32.mrb[0].mxu1 }
 0x1d4   : > { %v521_v26 = vadd.f32 %v752_v24, %v520_v25  ;;  %v822_v27 = vpop.f32.mrb[1].mxu1 }
 0x1d5   : > { %v523_v28 = vpop.f32.mrb[2].mxu1 }
 0x1d6   : > { %v526_v29 = vmax.f32 %v521_v26, 0.0  ;;  %v823_v30 = vpop.f32.mrb[3].mxu1 }
 0x1d8   : > { %v527_v32 = vpack.c.bf16 %v526_v29, %v526_v29 }
 0x1da   : > { %829 = vmatmul.mubr.msk.bf16.vlgmr.msra.gmra.mrb[4].mxu1 %vm551_vm2, %v527_v32 }
 0x1db   : > { %833 = vmatpush3.bf16.msra.mxu1 %v868_v31  ;;  %840 = vmatprep.mubr.msk.bf16.mxu1 %vm881_vm0, %v880_v1 }
 0x1dc   : > { %834 = vmatprep.subr.bf16.mxu1 %v880_v1 }
 0x1df   : > { %835 = vmatpush3.bf16.msra.mxu1 %v869_v33 }
 0x1e0   : > { %836 = vmatprep.subr.bf16.mxu1 %v880_v1 }
 0x1e3   : > { %837 = vmatpush3.bf16.msra.mxu1 %v870_v34 }
 0x1e4   : > { %838 = vmatprep.subr.bf16.mxu1 %v880_v1 }
 0x1e7   : > { %839 = vmatpush3.bf16.msra.mxu1 %v871_v35 }
 0x2ad   : > { %v589_v37 = vpop.f32.mrb[4].mxu1 }
 0x2ae   : > { %v590_v38 = vadd.f32 %v758_v36, %v589_v37  ;;  %v830_v39 = vpop.f32.mrb[5].mxu1 }
 0x2af   : > { %v592_v40 = vpop.f32.mrb[6].mxu1 }
 0x2b0   : > { %v595_v41 = vadd.f32 %v590_v38, %v441_v19  ;;  %v831_v42 = vpop.f32.mrb[7].mxu1 }
 0x2b2   : > { %v596_v43 = vmax.f32 %v595_v41, 0.0 }
 0x2b4   : > { %v597_v44 = vpack.c.bf16 %v596_v43, %v596_v43 }
 0x2b6   : > { %841 = vmatmul.mubr.msk.bf16.vlgmr.msra.gmra.mrb[8].mxu1 %vm482_vm1, %v597_v44 }
 0x389   : > { %v674_v46 = vpop.f32.mrb[8].mxu1 }
 0x38a   : > { %v675_v47 = vadd.f32 %v762_v45, %v674_v46  ;;  %v842_v48 = vpop.f32.mrb[9].mxu1 }
 0x38b   : > { %v677_v49 = vpop.f32.mrb[10].mxu1 }
 0x38c   : > { %v680_v50 = vmax.f32 %v675_v47, 0.0  ;;  %v843_v51 = vpop.f32.mrb[11].mxu1 }
 0x38e   : > { %682 = vst.msk [vmem:[%s327_s24] sm:$0xff] %vm681_vm3, %v680_v50 }
 0x38f PF: > { %s19_s30 = sadd.s32 1, %s878_s30  }
 0x390   : > { %p16_p4 = scmp.ge.s32.totalorder %s19_s30, 4  }
 0x392   :  { %18 = sbr.rel (!%p16_p4) target bundleno = 1 (0x1), region = 86 }

// kernel: _lambda_.13
= control target key start
LH: loop header
LB: loop body
LE: loop exit
PB: predicated region body
PF: predicated region fallthrough
CT: control target
= control target key end

     0   :  { %s1681_s24 = smov 0   ;;  %s2077_s0 = inlined_call_operand.vmem [shape: bf16[64,512], index: 0, kind: input, shape index: {}]   ;;  %s2078_s1 = inlined_call_operand.vmem [shape: bf16[512,256], index: 1, kind: input, shape index: {}]   ;;  %s2079_s2 = inlined_call_operand.vmem [shape: f32[1,256], index: 2, kind: input, shape index: {}]   ;;  %s2080_s3 = inlined_call_operand.vmem [shape: bf16[256,128], index: 3, kind: input, shape index: {}]   ;;  %s2081_s4 = inlined_call_operand.vmem [shape: f32[1,128], index: 4, kind: input, shape index: {}]   ;;  %s2082_s5 = inlined_call_operand.vmem [shape: bf16[128,256], index: 5, kind: input, shape index: {}]   ;;  %s2083_s6 = inlined_call_operand.vmem [shape: f32[1,256], index: 6, kind: input, shape index: {}]   ;;  %s2084_s7 = inlined_call_operand.vmem [shape: bf16[64,256], index: 7, kind: output, shape index: {}]  }
   0x1 LB: > { %s1303_s25 = sadd.s32 4294967295, %s1638_s24   ;;  %p1307_p0 = scmp.ge.s32.totalorder %s1638_s24, 1  ;;  %s1638_s24 = sphi %s1681_s24, %s17_s24  }
   0x2   : > { %p239_p1 = scmp.lt.s32.totalorder %s1638_s24, 3 }
   0x4   : > { %p240_p2 = pnand %p1307_p0, %p239_p1 }
   0x5   : > { %v1484_v0 = vld [vmem:[%s2078_s1 + $0x4] ss:$8 sps:$4 sm:$0xff] (!%p240_p2)   ;;  %v1486_v1 = vld [vmem:[%s2078_s1] ss:$8 sps:$4 sm:$0xff] (!%p240_p2)   ;;  %v1487_v2 = vld [vmem:[%s2078_s1 + $0x14] ss:$8 sps:$4 sm:$0xff] (!%p240_p2)  }
   0x6   : > { %243 = sbr.rel (%p240_p2) target bundleno = 811 (0x32b), region = 48  ;;  %732 = vmatprep.subr.bf16.mxu0 (!%p240_p2), %v1484_v0  ;;  %v1489_v3 = vld [vmem:[%s2078_s1 + $0x10] ss:$8 sps:$4 sm:$0xff] (!%p240_p2)   ;;  %v1490_v4 = vld [vmem:[%s2078_s1 + $0x24] ss:$8 sps:$4 sm:$0xff] (!%p240_p2)   ;;  %s1308_s13 = sshll.u32 (!%p240_p2), %s1303_s25, 2 }
   0x7   : > { %733 = vmatpush1.bf16.msra.mxu0 (!%p240_p2), %v1486_v1  ;;  %v1492_v5 = vld [vmem:[%s2078_s1 + $0x20] ss:$8 sps:$4 sm:$0xff] (!%p240_p2)   ;;  %v1493_v6 = vld [vmem:[%s2078_s1 + $0x34] ss:$8 sps:$4 sm:$0xff] (!%p240_p2)   ;;  %p274_p3 = scmp.lt.s32.totalorder (!%p240_p2), %s1308_s13, 7 }
   0x8   : > { %734 = vmatprep.subr.bf16.mxu0 (!%p240_p2), %v1487_v2  ;;  %v1495_v7 = vld [vmem:[%s2078_s1 + $0x30] ss:$8 sps:$4 sm:$0xff] (!%p240_p2)   ;;  %v1496_v8 = vld [vmem:[%s2078_s1 + $0x44] ss:$8 sps:$4 sm:$0xff] (!%p240_p2)   ;;  %v1498_v9 = vld [vmem:[%s2078_s1 + $0x40] ss:$8 sps:$4 sm:$0xff] (!%p240_p2)  }
   0x9   : > { %v1499_v10 = vld [vmem:[%s2078_s1 + $0x54] ss:$8 sps:$4 sm:$0xff] (!%p240_p2)   ;;  %v1501_v11 = vld [vmem:[%s2078_s1 + $0x50] ss:$8 sps:$4 sm:$0xff] (!%p240_p2)   ;;  %v1502_v12 = vld [vmem:[%s2078_s1 + $0x64] ss:$8 sps:$4 sm:$0xff] (!%p240_p2)  }
   0xa   : > { %v1504_v14 = vld [vmem:[%s2078_s1 + $0x60] ss:$8 sps:$4 sm:$0xff] (!%p240_p2)   ;;  %v1505_v15 = vld [vmem:[%s2078_s1 + $0x74] ss:$8 sps:$4 sm:$0xff] (!%p240_p2)   ;;  %v1507_v16 = vld [vmem:[%s2078_s1 + $0x70] ss:$8 sps:$4 sm:$0xff] (!%p240_p2)  }
   0xb   : > { %735 = vmatpush1.bf16.msra.mxu0 (!%p240_p2), %v1489_v3  ;;  %v1508_v17 = vld [vmem:[%s2078_s1 + $0x84] ss:$8 sps:$4 sm:$0xff] (!%p240_p2)   ;;  %v1510_v18 = vld [vmem:[%s2078_s1 + $0x80] ss:$8 sps:$4 sm:$0xff] (!%p240_p2)   ;;  %v1511_v19 = vld [vmem:[%s2078_s1 + $0x94] ss:$8 sps:$4 sm:$0xff] (!%p240_p2)  }
   0xc   : > { %736 = vmatprep.subr.bf16.mxu0 (!%p240_p2), %v1490_v4  ;;  %v1513_v20 = vld [vmem:[%s2078_s1 + $0x90] ss:$8 sps:$4 sm:$0xff] (!%p240_p2)   ;;  %v1514_v21 = vld [vmem:[%s2078_s1 + $0xa4] ss:$8 sps:$4 sm:$0xff] (!%p240_p2)   ;;  %v1516_v22 = vld [vmem:[%s2078_s1 + $0xa0] ss:$8 sps:$4 sm:$0xff] (!%p240_p2)  }
   0xd   : > { %s2086_s13 = smov (!%p274_p3, %s1308_s13), 7  ;;  %v1517_v23 = vld [vmem:[%s2078_s1 + $0xb4] ss:$8 sps:$4 sm:$0xff]   ;;  %v1519_v24 = vld [vmem:[%s2078_s1 + $0xb0] ss:$8 sps:$4 sm:$0xff]   ;;  %v1592_v28 = vld [vmem:[%s2080_s3 + $0x40] sm:$0xff]  }
   0xe   : > { %s1425_s27 = sshll.u32 %s2086_s13, 4  ;;  %v1520_v25 = vld [vmem:[%s2078_s1 + $0xc4] ss:$8 sps:$4 sm:$0xff]   ;;  %v1522_v26 = vld [vmem:[%s2078_s1 + $0xc0] ss:$8 sps:$4 sm:$0xff]   ;;  %1431 = vmatprep.subr.bf16.mxu1 %v1592_v28  ;;  %v1596_v34 = vld [vmem:[%s2080_s3 + $0x50] sm:$0xff]  }
   0xf   : > { %737 = vmatpush1.bf16.msra.mxu0 %v1492_v5  ;;  %s1731_s9 = scalar_lea.vmem %s2077_s0, %s1425_s27  ;;  %v1523_v27 = vld [vmem:[%s2078_s1 + $0xd4] ss:$8 sps:$4 sm:$0xff]   ;;  %v1525_v29 = vld [vmem:[%s2078_s1 + $0xd0] ss:$8 sps:$4 sm:$0xff]   ;;  %v1593_v30 = vld [vmem:[%s2080_s3] sm:$0xff]   ;;  %s1426_s23 = sshll.u32 %s2086_s13, 3 }
  0x10   : > { %738 = vmatprep.subr.bf16.mxu0 %v1493_v6  ;;  %v1534_v13 = vld [vmem:[%s1731_s9 + $0x4] ss:$16 sps:$4 sm:$0xff]   ;;  %v1594_v32 = vld [vmem:[%s2080_s3 + $0x48] sm:$0xff]   ;;  %1432 = vmatpush3.bf16.msra.mxu1 %v1593_v30  ;;  %v1598_v38 = vld [vmem:[%s2080_s3 + $0x58] sm:$0xff]   ;;  %s285_s26 = scalar_lea.vmem %s2084_s7, %s1426_s23 }
  0x11   : > { %764 = vmatprep.mubr.bf16.mxu0 %v1534_v13  ;;  %v1526_v31 = vld [vmem:[%s2078_s1 + $0xe4] ss:$8 sps:$4 sm:$0xff]   ;;  %1433 = vmatprep.subr.bf16.mxu1 %v1594_v32  ;;  %v1528_v35 = vld [vmem:[%s2078_s1 + $0xe0] ss:$8 sps:$4 sm:$0xff]   ;;  %v1529_v36 = vld [vmem:[%s2078_s1 + $0xf4] ss:$8 sps:$4 sm:$0xff]  }
  0x12   : > { %v1595_v33 = vld [vmem:[%s2080_s3 + $0x8] sm:$0xff]   ;;  %v1597_v37 = vld [vmem:[%s2080_s3 + $0x10] sm:$0xff]   ;;  %v1599_v41 = vld [vmem:[%s2080_s3 + $0x18] sm:$0xff]  }
  0x13   : > { %739 = vmatpush1.bf16.msra.mxu0 %v1495_v7  ;;  %v1531_v39 = vld [vmem:[%s2078_s1 + $0xf0] ss:$8 sps:$4 sm:$0xff]   ;;  %v1537_v40 = vld [vmem:[%s2078_s1 + $0x104] ss:$8 sps:$4 sm:$0xff]   ;;  %v1535_v44 = vld [vmem:[%s2078_s1 + $0x100] ss:$8 sps:$4 sm:$0xff]  }
  0x14   : > { %740 = vmatprep.subr.bf16.mxu0 %v1496_v8  ;;  %1434 = vmatpush3.bf16.msra.mxu1 %v1595_v33  ;;  %v1600_v42 = vld [vmem:[%s2080_s3 + $0x60] sm:$0xff]   ;;  %v1540_v46 = vld [vmem:[%s2078_s1 + $0x114] ss:$8 sps:$4 sm:$0xff]   ;;  %v1602_v48 = vld [vmem:[%s2080_s3 + $0x68] sm:$0xff]  }
  0x15   : > { %1435 = vmatprep.subr.bf16.mxu1 %v1596_v34  ;;  %v1532_v43 = vld [vmem:[%s1731_s9] ss:$16 sps:$4 sm:$0xff]   ;;  %v1577_v45 = vld [vmem:[%s1731_s9 + $0x24] ss:$16 sps:$4 sm:$0xff]   ;;  %v1588_v53 = vld [vmem:[%s1731_s9 + $0xc] ss:$16 sps:$4 sm:$0xff]  }
  0x16   : > { %v1601_v47 = vld [vmem:[%s2080_s3 + $0x20] sm:$0xff]   ;;  %v1538_v49 = vld [vmem:[%s2078_s1 + $0x110] ss:$8 sps:$4 sm:$0xff]   ;;  %v1546_v54 = vld [vmem:[%s2078_s1 + $0x134] ss:$8 sps:$4 sm:$0xff]  }
  0x17   : > { %741 = vmatpush1.bf16.msra.mxu0 %v1498_v9  ;;  %v1543_v50 = vld [vmem:[%s2078_s1 + $0x124] ss:$8 sps:$4 sm:$0xff]   ;;  %v1579_v51 = vld [vmem:[%s1731_s9 + $0x20] ss:$16 sps:$4 sm:$0xff]   ;;  %v1552_v58 = vld [vmem:[%s2078_s1 + $0x154] ss:$8 sps:$4 sm:$0xff]  }
  0x18   : > { %742 = vmatprep.subr.bf16.mxu0 %v1499_v10  ;;  %1436 = vmatpush3.bf16.msra.mxu1 %v1597_v37  ;;  %v1541_v52 = vld [vmem:[%s2078_s1 + $0x120] ss:$8 sps:$4 sm:$0xff]   ;;  %v1544_v55 = vld [vmem:[%s2078_s1 + $0x130] ss:$8 sps:$4 sm:$0xff]   ;;  %v1549_v56 = vld [vmem:[%s2078_s1 + $0x144] ss:$8 sps:$4 sm:$0xff]  }
  0x19   : > { %1437 = vmatprep.subr.bf16.mxu1 %v1598_v38  ;;  %v1547_v57 = vld [vmem:[%s2078_s1 + $0x140] ss:$8 sps:$4 sm:$0xff]   ;;  %v1550_v59 = vld [vmem:[%s2078_s1 + $0x150] ss:$8 sps:$4 sm:$0xff]   ;;  %v1555_v60 = vld [vmem:[%s2078_s1 + $0x164] ss:$8 sps:$4 sm:$0xff]  }
  0x1a   : > { %v1553_v61 = vld [vmem:[%s2078_s1 + $0x160] ss:$8 sps:$4 sm:$0xff]   ;;  %v1558_v62 = vld [vmem:[%s2078_s1 + $0x174] ss:$8 sps:$4 sm:$0xff]   ;;  %v1556_v63 = vld [vmem:[%s2078_s1 + $0x170] ss:$8 sps:$4 sm:$0xff]  }
  0x1b   : > { %743 = vmatpush1.bf16.msra.mxu0 %v1501_v11  ;;  %v1561_v0 = vld [vmem:[%s2078_s1 + $0x184] ss:$8 sps:$4 sm:$0xff]   ;;  %v1559_v1 = vld [vmem:[%s2078_s1 + $0x180] ss:$8 sps:$4 sm:$0xff]   ;;  %v1564_v2 = vld [vmem:[%s2078_s1 + $0x194] ss:$8 sps:$4 sm:$0xff]  }
  0x1c   : > { %744 = vmatprep.subr.bf16.mxu0 %v1502_v12  ;;  %1438 = vmatpush3.bf16.msra.mxu1 %v1599_v41  ;;  %v1562_v3 = vld [vmem:[%s2078_s1 + $0x190] ss:$8 sps:$4 sm:$0xff]   ;;  %v1567_v4 = vld [vmem:[%s2078_s1 + $0x1a4] ss:$8 sps:$4 sm:$0xff]   ;;  %v1565_v5 = vld [vmem:[%s2078_s1 + $0x1a0] ss:$8 sps:$4 sm:$0xff]  }
  0x1d   : > { %1439 = vmatprep.subr.bf16.mxu1 %v1600_v42  ;;  %v1570_v6 = vld [vmem:[%s2078_s1 + $0x1b4] ss:$8 sps:$4 sm:$0xff]   ;;  %v1568_v7 = vld [vmem:[%s2078_s1 + $0x1b0] ss:$8 sps:$4 sm:$0xff]   ;;  %v1573_v8 = vld [vmem:[%s2078_s1 + $0x1c4] ss:$8 sps:$4 sm:$0xff]  }
  0x1e   : > { %v1571_v9 = vld [vmem:[%s2078_s1 + $0x1c0] ss:$8 sps:$4 sm:$0xff]   ;;  %v1576_v10 = vld [vmem:[%s2078_s1 + $0x1d4] ss:$8 sps:$4 sm:$0xff]   ;;  %v1574_v11 = vld [vmem:[%s2078_s1 + $0x1d0] ss:$8 sps:$4 sm:$0xff]  }
  0x1f   : > { %745 = vmatpush1.bf16.msra.mxu0 %v1504_v14  ;;  %v1582_v12 = vld [vmem:[%s2078_s1 + $0x1e4] ss:$8 sps:$4 sm:$0xff]   ;;  %v1580_v13 = vld [vmem:[%s2078_s1 + $0x1e0] ss:$8 sps:$4 sm:$0xff]   ;;  %v1585_v14 = vld [vmem:[%s2078_s1 + $0x1f4] ss:$8 sps:$4 sm:$0xff]  }
  0x20   : > { %746 = vmatprep.subr.bf16.mxu0 %v1505_v15  ;;  %1440 = vmatpush3.bf16.msra.mxu1 %v1601_v47  ;;  %v1583_v15 = vld [vmem:[%s2078_s1 + $0x1f0] ss:$8 sps:$4 sm:$0xff]   ;;  %v360_v28 = vld [vmem:[%s2079_s2] sm:$0x3] }
  0x21   : > { %1441 = vmatprep.subr.bf16.mxu1 %v1602_v48 }
  0x23   : > { %747 = vmatpush1.bf16.msra.mxu0 %v1507_v16  ;;  %v1586_v16 = vld [vmem:[%s1731_s9 + $0x8] ss:$16 sps:$4 sm:$0xff]  }
  0x24   : > { %748 = vmatprep.subr.bf16.mxu0 %v1508_v17  ;;  %v1589_v17 = vld [vmem:[%s1731_s9 + $0x2c] ss:$16 sps:$4 sm:$0xff]  }
  0x27   : > { %749 = vmatpush1.bf16.msra.mxu0 %v1510_v18  ;;  %v1591_v18 = vld [vmem:[%s1731_s9 + $0x28] ss:$16 sps:$4 sm:$0xff]  }
  0x28   : > { %750 = vmatprep.subr.bf16.mxu0 %v1511_v19  ;;  %v1603_v19 = vld [vmem:[%s2080_s3 + $0x28] sm:$0xff]  }
  0x29   : > { %1442 = vmatpush3.bf16.msra.mxu1 %v1603_v19 }
  0x2b   : > { %751 = vmatpush1.bf16.msra.mxu0 %v1513_v20  ;;  %v1604_v20 = vld [vmem:[%s2080_s3 + $0x70] sm:$0xff]  }
  0x2c   : > { %752 = vmatprep.subr.bf16.mxu0 %v1514_v21  ;;  %v1605_v21 = vld [vmem:[%s2080_s3 + $0x30] sm:$0xff]   ;;  %1443 = vmatprep.subr.bf16.mxu1 %v1604_v20 }
  0x2d   : > { %1444 = vmatpush3.bf16.msra.mxu1 %v1605_v21 }
  0x2f   : > { %753 = vmatpush1.bf16.msra.mxu0 %v1516_v22  ;;  %v1606_v22 = vld [vmem:[%s2080_s3 + $0x78] sm:$0xff]  }
  0x30   : > { %754 = vmatprep.subr.bf16.mxu0 %v1517_v23  ;;  %v1607_v23 = vld [vmem:[%s2080_s3 + $0x38] sm:$0xff]   ;;  %1445 = vmatprep.subr.bf16.mxu1 %v1606_v22 }
  0x31   : > { %1446 = vmatpush3.bf16.msra.mxu1 %v1607_v23 }
  0x33   : > { %755 = vmatpush1.bf16.msra.mxu0 %v1519_v24  ;;  %v1610_v24 = vld [vmem:[%s2082_s5 + $0x4] ss:$8 sps:$4 sm:$0xff]  }
  0x34   : > { %756 = vmatprep.subr.bf16.mxu0 %v1520_v25  ;;  %1148 = vmatprep.subr.bf16.mxu1 %v1610_v24  ;;  %v362_v25 = vlaneseq }
  0x37   : > { %757 = vmatpush1.bf16.msra.mxu0 %v1522_v26  ;;  %v1948_v26 = vshrl.u32 %v362_v25, 7 }
  0x38   : > { %758 = vmatprep.subr.bf16.mxu0 %v1523_v27 }
  0x39   : > { %v368_v27 = vsub.s32 1, %v1948_v26 }
  0x3b   : > { %759 = vmatpush1.bf16.msra.mxu0 %v1525_v29  ;;  %v364_v29 = vsub.s32 0, %v1948_v26  ;;  %v369_v30 = vrot.slane %v360_v28, %v368_v27 }
  0x3c   : > { %760 = vmatprep.subr.bf16.mxu0 %v1526_v31 }
  0x3d   : > { %v365_v31 = vrot.slane %v360_v28, %v364_v29 }
  0x3f   : > { %761 = vmatpush1.bf16.msra.mxu0 %v1528_v35 }
  0x40   : > { %762 = vmatprep.subr.bf16.mxu0 %v1529_v36 }
  0x43   : > { %763 = vmatpush1.bf16.msra.mxu0 %v1531_v39 }
  0x44   : > { %785 = vmatprep.subr.bf16.mxu0 %v1537_v40 }
  0x46   : > { %765 = vmatmul.mubr.bf16.vlgmr.msra.gmra.mrb[0].mxu0 %v1532_v43 }
  0x47   : > { %786 = vmatpush1.bf16.msra.mxu0 %v1535_v44  ;;  %774 = vmatprep.mubr.bf16.mxu0 %v1577_v45 }
  0x48   : > { %787 = vmatprep.subr.bf16.mxu0 %v1540_v46  ;;  %v1608_v46 = vld [vmem:[%s2082_s5] ss:$8 sps:$4 sm:$0xff]  }
  0x4b   : > { %788 = vmatpush1.bf16.msra.mxu0 %v1538_v49  ;;  %v1613_v49 = vld [vmem:[%s2082_s5 + $0x14] ss:$8 sps:$4 sm:$0xff]  }
  0x4c   : > { %789 = vmatprep.subr.bf16.mxu0 %v1543_v50 }
  0x4e   : > { %775 = vmatmul.mubr.bf16.gmra.mrb[4].mxu0 %v1579_v51 }
  0x4f   : > { %790 = vmatpush1.bf16.msra.mxu0 %v1541_v52  ;;  %817 = vmatprep.mubr.bf16.mxu0 %v1588_v53 }
  0x50   : > { %791 = vmatprep.subr.bf16.mxu0 %v1546_v54 }
  0x53   : > { %792 = vmatpush1.bf16.msra.mxu0 %v1544_v55 }
  0x54   : > { %793 = vmatprep.subr.bf16.mxu0 %v1549_v56  ;;  %v1611_v56 = vld [vmem:[%s2082_s5 + $0x10] ss:$8 sps:$4 sm:$0xff]  }
  0x57   : > { %794 = vmatpush1.bf16.msra.mxu0 %v1547_v57 }
  0x58   : > { %795 = vmatprep.subr.bf16.mxu0 %v1552_v58  ;;  %v1616_v58 = vld [vmem:[%s2082_s5 + $0x24] ss:$8 sps:$4 sm:$0xff]  }
  0x5b   : > { %796 = vmatpush1.bf16.msra.mxu0 %v1550_v59 }
  0x5c   : > { %797 = vmatprep.subr.bf16.mxu0 %v1555_v60 }
  0x5f   : > { %798 = vmatpush1.bf16.msra.mxu0 %v1553_v61 }
  0x60   : > { %799 = vmatprep.subr.bf16.mxu0 %v1558_v62 }
  0x63   : > { %800 = vmatpush1.bf16.msra.mxu0 %v1556_v63  ;;  %v1614_v63 = vld [vmem:[%s2082_s5 + $0x20] ss:$8 sps:$4 sm:$0xff]  }
  0x64   : > { %801 = vmatprep.subr.bf16.mxu0 %v1561_v0 }
  0x67   : > { %802 = vmatpush1.bf16.msra.mxu0 %v1559_v1  ;;  %v1619_v1 = vld [vmem:[%s2082_s5 + $0x34] ss:$8 sps:$4 sm:$0xff]  }
  0x68   : > { %803 = vmatprep.subr.bf16.mxu0 %v1564_v2  ;;  %v1617_v2 = vld [vmem:[%s2082_s5 + $0x30] ss:$8 sps:$4 sm:$0xff]  }
  0x6b   : > { %804 = vmatpush1.bf16.msra.mxu0 %v1562_v3  ;;  %v1622_v3 = vld [vmem:[%s2082_s5 + $0x44] ss:$8 sps:$4 sm:$0xff]  }
  0x6c   : > { %805 = vmatprep.subr.bf16.mxu0 %v1567_v4  ;;  %v1620_v4 = vld [vmem:[%s2082_s5 + $0x40] ss:$8 sps:$4 sm:$0xff]  }
  0x6f   : > { %806 = vmatpush1.bf16.msra.mxu0 %v1565_v5  ;;  %v1625_v5 = vld [vmem:[%s2082_s5 + $0x54] ss:$8 sps:$4 sm:$0xff]  }
  0x70   : > { %807 = vmatprep.subr.bf16.mxu0 %v1570_v6  ;;  %v1623_v6 = vld [vmem:[%s2082_s5 + $0x50] ss:$8 sps:$4 sm:$0xff]  }
  0x73   : > { %808 = vmatpush1.bf16.msra.mxu0 %v1568_v7  ;;  %v1628_v7 = vld [vmem:[%s2082_s5 + $0x64] ss:$8 sps:$4 sm:$0xff]  }
  0x74   : > { %809 = vmatprep.subr.bf16.mxu0 %v1573_v8  ;;  %v1626_v8 = vld [vmem:[%s2082_s5 + $0x60] ss:$8 sps:$4 sm:$0xff]  }
  0x77   : > { %810 = vmatpush1.bf16.msra.mxu0 %v1571_v9  ;;  %v1631_v9 = vld [vmem:[%s2082_s5 + $0x74] ss:$8 sps:$4 sm:$0xff]  }
  0x78   : > { %811 = vmatprep.subr.bf16.mxu0 %v1576_v10  ;;  %v1629_v10 = vld [vmem:[%s2082_s5 + $0x70] ss:$8 sps:$4 sm:$0xff]  }
  0x7b   : > { %812 = vmatpush1.bf16.msra.mxu0 %v1574_v11  ;;  %v1640_v11 = vmov 0  }
  0x7c   : > { %813 = vmatprep.subr.bf16.mxu0 %v1582_v12 }
  0x7f   : > { %814 = vmatpush1.bf16.msra.mxu0 %v1580_v13  ;;  %v1386_v13 = vld [vmem:[%s2081_s4] ss:$0 sm:$0xff] }
  0x80   : > { %815 = vmatprep.subr.bf16.mxu0 %v1585_v14 }
  0x83   : > { %816 = vmatpush1.bf16.msra.mxu0 %v1583_v15 }
  0x86   : > { %818 = vmatmul.mubr.bf16.vlgmr.msra.gmra.mrb[0].mxu0 %v1586_v16 }
  0x87   : > { %827 = vmatprep.mubr.bf16.mxu0 %v1589_v17 }
  0x8e   : > { %828 = vmatmul.mubr.bf16.gmra.mrb[4].mxu0 %v1591_v18 }
 0x159   : > { %v819_v32 = vpop.f32.mrb[0].mxu0 }
 0x15a   : > { %v821_v33 = vpop.f32.mrb[1].mxu0  ;;  %v1961_v36 = vadd.f32 %v819_v32, %v365_v31 }
 0x15b   : > { %v1959_v34 = vadd.f32 %v821_v33, %v369_v30  ;;  %v823_v35 = vpop.f32.mrb[2].mxu0 }
 0x15c   : > { %v1963_v37 = vadd.f32 %v823_v35, %v365_v31  ;;  %v825_v38 = vpop.f32.mrb[3].mxu0  ;;  %v838_v43 = vmax.f32 %v1961_v36, 0.0 }
 0x15d   : > { %v1965_v39 = vadd.f32 %v825_v38, %v369_v30  ;;  %v839_v41 = vmax.f32 %v1959_v34, 0.0 }
 0x15e   : > { %v840_v40 = vmax.f32 %v1963_v37, 0.0 }
 0x15f   : > { %v841_v42 = vmax.f32 %v1965_v39, 0.0 }
 0x160   : > { %v846_v47 = vpack.c.bf16 %v840_v40, %v838_v43 }
 0x161   : > { %v829_v44 = vpop.f32.mrb[4].mxu0  ;;  %v847_v45 = vpack.c.bf16 %v841_v42, %v839_v41 }
 0x162   : > { %v831_v48 = vpop.f32.mrb[5].mxu0  ;;  %v1987_v52 = vadd.f32 %v829_v44, %v365_v31 }
 0x163   : > { %v1985_v50 = vadd.f32 %v831_v48, %v369_v30  ;;  %v833_v51 = vpop.f32.mrb[6].mxu0  ;;  %1017 = vmatprep.mubr.bf16.mxu1 %v847_v45 }
 0x164   : > { %v1989_v53 = vadd.f32 %v833_v51, %v365_v31  ;;  %v835_v54 = vpop.f32.mrb[7].mxu0  ;;  %1018 = vmatmul.mubr.bf16.vlgmr.msra.gmra.mrb[0].mxu1 %v846_v47  ;;  %v842_v61 = vmax.f32 %v1987_v52, 0.0 }
 0x165   : > { %v1991_v55 = vadd.f32 %v835_v54, %v369_v30  ;;  %1149 = vmatpush1.bf16.msra.mxu1 %v1608_v46  ;;  %v843_v59 = vmax.f32 %v1985_v50, 0.0  ;;  %v1056_v46 = vld [vmem:[%s2083_s6] sm:$0x3] }
 0x166   : > { %v844_v57 = vmax.f32 %v1989_v53, 0.0  ;;  %1150 = vmatprep.subr.bf16.mxu1 %v1613_v49  ;;  %v1061_v47 = vrot.slane %v1056_v46, %v364_v29  ;;  %v1065_v48 = vrot.slane %v1056_v46, %v368_v27 }
 0x167   : > { %v845_v60 = vmax.f32 %v1991_v55, 0.0 }
 0x168   : > { %v848_v0 = vpack.c.bf16 %v844_v57, %v842_v61 }
 0x169   : > { %v849_v62 = vpack.c.bf16 %v845_v60, %v843_v59  ;;  %1151 = vmatpush1.bf16.msra.mxu1 %v1611_v56 }
 0x16a   : > { %1152 = vmatprep.subr.bf16.mxu1 %v1616_v58 }
 0x16b   : > { %1025 = vmatprep.mubr.bf16.mxu1 %v849_v62 }
 0x16c   : > { %1026 = vmatmul.mubr.bf16.gmra.mrb[4].mxu1 %v848_v0 }
 0x16d   : > { %1153 = vmatpush1.bf16.msra.mxu1 %v1614_v63  ;;  %1180 = vmatprep.mubr.bf16.mxu1 %v1640_v11 }
 0x16e   : > { %1154 = vmatprep.subr.bf16.mxu1 %v1619_v1 }
 0x171   : > { %1155 = vmatpush1.bf16.msra.mxu1 %v1617_v2 }
 0x172   : > { %1156 = vmatprep.subr.bf16.mxu1 %v1622_v3 }
 0x175   : > { %1157 = vmatpush1.bf16.msra.mxu1 %v1620_v4 }
 0x176   : > { %1158 = vmatprep.subr.bf16.mxu1 %v1625_v5 }
 0x179   : > { %1159 = vmatpush1.bf16.msra.mxu1 %v1623_v6 }
 0x17a   : > { %1160 = vmatprep.subr.bf16.mxu1 %v1628_v7 }
 0x17d   : > { %1161 = vmatpush1.bf16.msra.mxu1 %v1626_v8 }
 0x17e   : > { %1162 = vmatprep.subr.bf16.mxu1 %v1631_v9 }
 0x181   : > { %1163 = vmatpush1.bf16.msra.mxu1 %v1629_v10 }
 0x237   : > { %v1447_v12 = vpop.f32.mrb[0].mxu1 }
 0x238   : > { %v1448_v14 = vpop.f32.mrb[1].mxu1 }
 0x239   : > { %v1449_v15 = vadd.f32 %v1448_v14, %v1447_v12  ;;  %v1450_v16 = vpop.f32.mrb[2].mxu1 }
 0x23a   : > { %v1451_v17 = vpop.f32.mrb[3].mxu1 }
 0x23b   : > { %v1020_v18 = vadd.f32 %v1449_v15, %v1386_v13  ;;  %v1452_v19 = vadd.f32 %v1451_v17, %v1450_v16 }
 0x23d   : > { %v1023_v20 = vadd.f32 %v1452_v19, %v1386_v13  ;;  %v1034_v21 = vmax.f32 %v1020_v18, 0.0 }
 0x23f   : > { %v1035_v22 = vmax.f32 %v1023_v20, 0.0  ;;  %v1453_v23 = vpop.f32.mrb[4].mxu1 }
 0x240   : > { %v1454_v24 = vpop.f32.mrb[5].mxu1 }
 0x241   : > { %v1038_v25 = vpack.c.bf16 %v1035_v22, %v1034_v21  ;;  %v1455_v28 = vadd.f32 %v1454_v24, %v1453_v23  ;;  %v1456_v30 = vpop.f32.mrb[6].mxu1 }
 0x242   : > { %v1457_v31 = vpop.f32.mrb[7].mxu1 }
 0x243   : > { %v1028_v32 = vadd.f32 %v1455_v28, %v1386_v13  ;;  %v1458_v33 = vadd.f32 %v1457_v31, %v1456_v30  ;;  %1181 = vmatmul.mubr.bf16.vlgmr.msra.gmra.mrb[8].mxu1 %v1038_v25 }
 0x244   : > { %1190 = vmatprep.mubr.bf16.mxu1 %v1640_v11 }
 0x245   : > { %v1031_v35 = vadd.f32 %v1458_v33, %v1386_v13  ;;  %v1036_v38 = vmax.f32 %v1028_v32, 0.0 }
 0x247   : > { %v1037_v44 = vmax.f32 %v1031_v35, 0.0 }
 0x249   : > { %v1039_v45 = vpack.c.bf16 %v1037_v44, %v1036_v38 }
 0x24b   : > { %1191 = vmatmul.mubr.bf16.gmra.mrb[12].mxu1 %v1039_v45 }
 0x316   : > { %v1182_v49 = vpop.f32.mrb[8].mxu1 }
 0x317   : > { %v1183_v51 = vadd.f32 %v1182_v49, %v1061_v47  ;;  %v1184_v54 = vpop.f32.mrb[9].mxu1 }
 0x318   : > { %v1185_v56 = vadd.f32 %v1184_v54, %v1065_v48  ;;  %v1186_v58 = vpop.f32.mrb[10].mxu1 }
 0x319   : > { %v1201_v62 = vadd.f32 %v1183_v51, %v838_v43  ;;  %v1187_v63 = vadd.f32 %v1186_v58, %v1061_v47  ;;  %v1188_v0 = vpop.f32.mrb[11].mxu1 }
 0x31a   : > { %v1202_v1 = vadd.f32 %v1185_v56, %v839_v41  ;;  %v1189_v2 = vadd.f32 %v1188_v0, %v1065_v48 }
 0x31b   : > { %v1209_v3 = vmax.f32 %v1201_v62, 0.0  ;;  %v1203_v26 = vadd.f32 %v1187_v63, %v840_v40 }
 0x31c   : > { %v1210_v27 = vmax.f32 %v1202_v1, 0.0  ;;  %v1204_v29 = vadd.f32 %v1189_v2, %v841_v42 }
 0x31d   : > { %v1211_v36 = vmax.f32 %v1203_v26, 0.0 }
 0x31e   : > { %v1427_v43 = vpack.c.bf16 %v1210_v27, %v1209_v3  ;;  %v1212_v4 = vmax.f32 %v1204_v29, 0.0  ;;  %v1192_v5 = vpop.f32.mrb[12].mxu1 }
 0x31f   : > { %v1193_v6 = vadd.f32 %v1192_v5, %v1061_v47  ;;  %v1194_v34 = vpop.f32.mrb[13].mxu1 }
 0x320   : > { %1241 = vst [vmem:[%s285_s26] sm:$0xff] %v1427_v43  ;;  %v1428_v41 = vpack.c.bf16 %v1212_v4, %v1211_v36  ;;  %v1195_v7 = vadd.f32 %v1194_v34, %v1065_v48  ;;  %v1196_v8 = vpop.f32.mrb[14].mxu1 }
 0x321   : > { %v1205_v37 = vadd.f32 %v1193_v6, %v842_v61  ;;  %v1197_v40 = vadd.f32 %v1196_v8, %v1061_v47  ;;  %v1198_v39 = vpop.f32.mrb[15].mxu1 }
 0x322   : > { %1242 = vst [vmem:[%s285_s26 + $0x8] sm:$0xff] %v1428_v41  ;;  %v1206_v42 = vadd.f32 %v1195_v7, %v843_v59  ;;  %v1199_v9 = vadd.f32 %v1198_v39, %v1065_v48 }
 0x323   : > { %v1213_v10 = vmax.f32 %v1205_v37, 0.0  ;;  %v1207_v11 = vadd.f32 %v1197_v40, %v844_v57 }
 0x324   : > { %v1214_v12 = vmax.f32 %v1206_v42, 0.0  ;;  %v1208_v13 = vadd.f32 %v1199_v9, %v845_v60 }
 0x325   : > { %v1215_v14 = vmax.f32 %v1207_v11, 0.0 }
 0x326   : > { %v1429_v15 = vpack.c.bf16 %v1214_v12, %v1213_v10  ;;  %v1216_v16 = vmax.f32 %v1208_v13, 0.0 }
 0x328   : > { %1243 = vst [vmem:[%s285_s26 + $0x10] sm:$0xff] %v1429_v15  ;;  %v1430_v52 = vpack.c.bf16 %v1216_v16, %v1215_v14 }
 0x32a   : > { %1244 = vst [vmem:[%s285_s26 + $0x18] sm:$0xff] %v1430_v52 }
 0x32b PF: > { %s17_s24 = sadd.s32 1, %s1638_s24  }
 0x32c   : > { %p14_p4 = scmp.ge.s32.totalorder %s17_s24, 4  }
 0x32e   :  { %16 = sbr.rel (!%p14_p4) target bundleno = 1 (0x1), region = 78 }

// kernel: _lambda_.12
= control target key start
LH: loop header
LB: loop body
LE: loop exit
PB: predicated region body
PF: predicated region fallthrough
CT: control target
= control target key end

     0   :  { %12 = vsyncpa [#allocation3], 0  ;;  %s4158_s0 = inlined_call_operand.vmem [shape: bf16[128,256], index: 0, kind: input, shape index: {}]   ;;  %s4159_s1 = inlined_call_operand.vmem [shape: bf16[256,512], index: 1, kind: input, shape index: {}]   ;;  %s4160_s2 = inlined_call_operand.hbm [shape: f32[1,512], index: 2, kind: input, shape index: {}]   ;;  %s4161_s3 = inlined_call_operand.vmem [shape: bf16[512,256], index: 3, kind: input, shape index: {}]   ;;  %s4162_s4 = inlined_call_operand.hbm [shape: f32[1,256], index: 4, kind: input, shape index: {}]   ;;  %s4163_s5 = inlined_call_operand.hbm [shape: bf16[256,512], index: 5, kind: input, shape index: {}]   ;;  %s4164_s6 = inlined_call_operand.hbm [shape: f32[1,512], index: 6, kind: input, shape index: {}]   ;;  %s4165_s7 = inlined_call_operand.vmem [shape: bf16[128,512], index: 7, kind: output, shape index: {}]  }
   0x1   :  { %13 = vsyncpa [#allocation5], 0 }
   0x2   :  { %14 = vsyncpa [#allocation8], 0  ;;  %s3197_s24 = smov 0  }
   0x3 LB: > { %s3151_s25 = smov [#allocation4]   ;;  %s2381_s27 = sadd.s32 4294967295, %s3149_s24   ;;  %s3149_s24 = sphi %s3197_s24, %s20_s24  }
   0x4   : > { %s233_s26 = sshll.u32 %s3151_s25, 4  ;;  %p2383_p0 = scmp.ge.s32.totalorder %s3149_s24, 1  ;;  %s3211_s26 = int_to_ptr.vmem [resolvable:$true] %s233_s26 }
   0x5   : > { %p203_p1 = scmp.lt.s32.totalorder %s3149_s24, 3  ;;  %p3207_p2 = scmp.eq.s32.totalorder %s2381_s27, 0 }
   0x6   : > { %s3152_s30 = smov [#allocation2]   ;;  %s3153_s9 = smov [#allocation6]  }
   0x7   : > { %s4200_s28 = scalar_select %p3207_p2, 1, 0 }
   0x8   : > { %p3213_p3 = pnand %p2383_p0, %p203_p1  ;;  %s219_s8 = sshll.u32 %s3152_s30, 4  ;;  %s3219_s8 = int_to_ptr.vmem [resolvable:$true] %s219_s8 }
   0x9   : > { %s243_s10 = sshll.u32 %s3153_s9, 4  ;;  %s3154_s12 = smov [#allocation7]   ;;  %s3227_s10 = int_to_ptr.vmem [resolvable:$true] %s243_s10 }
   0xa   : > { %s4201_s29 = scalar_select %p3213_p3, 1, 0 }
   0xb   : > { %p2684_p4 = pneg %p3213_p3  ;;  %s3229_s13 = sshll.u32 %s3154_s12, 4  ;;  %s258_s13 = int_to_ptr.vmem [resolvable:$true] %s3229_s13 }
   0xc   : > { %s3019_s16 = scalar_lea.hbm %s4162_s4, 32 }
   0xd   : > { %p3223_p5 = pnand %p3207_p2, %p2684_p4  ;;  %p3020_p6 = scmp.ne.s32.totalorder %s4162_s4, %s3019_s16 }
   0xe   : > { %p3026_p10 = scmp.lt.u32.totalorder %s3019_s16, %s4162_s4 }
   0xf   : > { %p3239_p7 = pneg %p3223_p5 }
  0x11   : > { %p3022_p8 = pnand %p3239_p7, %p3020_p6 }
  0x13   : > { %p3023_p9 = pneg %p3022_p8 }
  0x15   : > { %p3028_p11 = pnand %p3026_p10, %p3023_p9 }
  0x17   : > { %3031 = shalt.err (!%p3028_p11)
}
  0x18   : > { %s3032_s22 = scalar_lea.vmem %s3211_s26, 32  ;;  %p3040_p1 = scmp.lt.s32.totalorder %s3211_s26, %s3211_s26 }
  0x19   : > { %p3033_p12 = scmp.ne.s32.totalorder %s3211_s26, %s3032_s22  ;;  %p3041_p4 = scmp.lt.s32.totalorder %s3032_s22, %s3032_s22 }
  0x1b   : > { %p3035_p13 = pnand %p3033_p12, %p3239_p7  ;;  %p3042_p6 = por %p3041_p4, %p3040_p1 }
  0x1d   : > { %p3036_p0 = pneg %p3035_p13 }
  0x1f   : > { %p3043_p8 = pnand %p3042_p6, %p3036_p0 }
  0x21   : > { %3046 = shalt.err (!%p3043_p8)
}
  0x22   : > { %2690 = dma.hbm_to_vmem [thread:$0]  (!%p3223_p5), %s4162_s4, 32, %s3211_s26, [#allocation5]  }
  0x23   : > { %s3047_s12 = scalar_lea.hbm %s4160_s2, 64 }
  0x24   : > { %p3048_p9 = scmp.ne.s32.totalorder %s4160_s2, %s3047_s12  ;;  %p3054_p12 = scmp.lt.u32.totalorder %s3047_s12, %s4160_s2 }
  0x26   : > { %p3050_p10 = pnand %p3048_p9, %p3239_p7 }
  0x28   : > { %p3051_p11 = pneg %p3050_p10 }
  0x2a   : > { %p3056_p13 = pnand %p3054_p12, %p3051_p11 }
  0x2c   : > { %3059 = shalt.err (!%p3056_p13)
}
  0x2d   : > { %s3060_s26 = scalar_lea.vmem %s3219_s8, 64  ;;  %p3068_p6 = scmp.lt.s32.totalorder %s3219_s8, %s3219_s8 }
  0x2e   : > { %p3061_p0 = scmp.ne.s32.totalorder %s3219_s8, %s3060_s26  ;;  %p3069_p8 = scmp.lt.s32.totalorder %s3060_s26, %s3060_s26 }
  0x30   : > { %p3063_p1 = pnand %p3061_p0, %p3239_p7  ;;  %p3070_p9 = por %p3069_p8, %p3068_p6 }
  0x32   : > { %p3064_p4 = pneg %p3063_p1 }
  0x34   : > { %p3071_p10 = pnand %p3070_p9, %p3064_p4 }
  0x36   : > { %3074 = shalt.err (!%p3071_p10)
}
  0x37   : > { %2687 = dma.hbm_to_vmem [thread:$0]  (!%p3223_p5), %s4160_s2, 64, %s3219_s8, [#allocation3]  }
  0x38   : > { %s3075_s23 = scalar_lea.hbm %s4163_s5, 8192 }
  0x39   : > { %p3076_p11 = scmp.ne.s32.totalorder %s4163_s5, %s3075_s23  ;;  %p3082_p0 = scmp.lt.u32.totalorder %s3075_s23, %s4163_s5 }
  0x3b   : > { %p3078_p12 = pnand %p3076_p11, %p3239_p7 }
  0x3d   : > { %p3079_p13 = pneg %p3078_p12 }
  0x3f   : > { %p3084_p1 = pnand %p3082_p0, %p3079_p13 }
  0x41   : > { %3087 = shalt.err (!%p3084_p1)
}
  0x42   : > { %s3088_s8 = scalar_lea.vmem %s3227_s10, 8192  ;;  %p3096_p9 = scmp.lt.s32.totalorder %s3227_s10, %s3227_s10 }
  0x43   : > { %p3089_p4 = scmp.ne.s32.totalorder %s3227_s10, %s3088_s8  ;;  %p3097_p10 = scmp.lt.s32.totalorder %s3088_s8, %s3088_s8 }
  0x45   : > { %p3091_p6 = pnand %p3089_p4, %p3239_p7  ;;  %p3098_p11 = por %p3097_p10, %p3096_p9 }
  0x47   : > { %p3092_p8 = pneg %p3091_p6 }
  0x49   : > { %p3099_p12 = pnand %p3098_p11, %p3092_p8 }
  0x4b   : > { %3102 = shalt.err (!%p3099_p12)
}
  0x4c   : > { %s3155_s14 = smov 256   ;;  %s3156_s15 = smov 16  }
  0x4d   : > { %2693 = dma.hbm_to_vmem [thread:$0]  (!%p3223_p5), %s4163_s5, 8192, %s3227_s10, [#allocation5], %s3155_s14, %s3155_s14, %s3156_s15  }
  0x4e   : > { %s3103_s20 = scalar_lea.hbm %s4164_s6, 64 }
  0x4f   : > { %p3104_p13 = scmp.ne.s32.totalorder %s4164_s6, %s3103_s20  ;;  %p3110_p4 = scmp.lt.u32.totalorder %s3103_s20, %s4164_s6 }
  0x51   : > { %p3106_p0 = pnand %p3104_p13, %p3239_p7 }
  0x53   : > { %p3107_p1 = pneg %p3106_p0 }
  0x55   : > { %p3112_p6 = pnand %p3110_p4, %p3107_p1 }
  0x57   : > { %3115 = shalt.err (!%p3112_p6)
}
  0x58   : > { %s3116_s30 = scalar_lea.vmem %s258_s13, 64  ;;  %p3124_p11 = scmp.lt.s32.totalorder %s258_s13, %s258_s13 }
  0x59   : > { %p3117_p8 = scmp.ne.s32.totalorder %s258_s13, %s3116_s30  ;;  %p3125_p12 = scmp.lt.s32.totalorder %s3116_s30, %s3116_s30 }
  0x5b   : > { %p3119_p9 = pnand %p3117_p8, %p3239_p7  ;;  %p3126_p2 = por %p3125_p12, %p3124_p11 }
  0x5d   : > { %p3120_p10 = pneg %p3119_p9 }
  0x5f   : > { %p3127_p3 = pnand %p3126_p2, %p3120_p10 }
  0x61   : > { %3130 = shalt.err (!%p3127_p3)
}
  0x62   : > { %2696 = dma.hbm_to_vmem [thread:$0]  (!%p3223_p5), %s4164_s6, 64, %s258_s13, [#allocation8]  }
  0x63   : > { %p4204_p13 = scmp.ne.s32.totalorder %s4201_s29, 0 }
  0x64   : > { %p4205_p0 = scmp.ne.s32.totalorder (!%p4204_p13), %s4200_s28, 0 }
  0x65   : > { %280 = sbr.rel (%p4204_p13) target bundleno = 998 (0x3e6), region = 48 }
  0x6c   : > { %3136 = dma.done.wait (%p4205_p0), [#allocation3], 64  }
  0x6d   : > { %3138 = vsyncadd (%p4205_p0), [#allocation3], 4294967232 }
  0x6e   : > { %3140 = dma.done.wait (%p4205_p0), [#allocation5], 8224  }
  0x6f   : > { %3142 = vsyncadd (%p4205_p0), [#allocation5], 4294959072 }
  0x70   : > { %3144 = dma.done.wait (%p4205_p0), [#allocation8], 64  }
  0x71   : > { %3146 = vsyncadd (%p4205_p0), [#allocation8], 4294967232  ;;  %v2719_v0 = vld [vmem:[%s4159_s1 + $0x4] ss:$16 sps:$4 sm:$0xff]   ;;  %v2721_v1 = vld [vmem:[%s4159_s1] ss:$16 sps:$4 sm:$0xff]  }
  0x72   : > { %794 = vmatprep.subr.bf16.mxu0 %v2719_v0  ;;  %v2722_v2 = vld [vmem:[%s4159_s1 + $0x24] ss:$16 sps:$4 sm:$0xff]   ;;  %v2724_v3 = vld [vmem:[%s4159_s1 + $0x20] ss:$16 sps:$4 sm:$0xff]   ;;  %s2394_s17 = sshll.u32 %s2381_s27, 3 }
  0x73   : > { %795 = vmatpush1.bf16.msra.mxu0 %v2721_v1  ;;  %v2725_v4 = vld [vmem:[%s4159_s1 + $0x44] ss:$16 sps:$4 sm:$0xff]   ;;  %v2727_v5 = vld [vmem:[%s4159_s1 + $0x40] ss:$16 sps:$4 sm:$0xff]   ;;  %p327_p2 = scmp.lt.s32.totalorder %s2394_s17, 15 }
  0x74   : > { %796 = vmatprep.subr.bf16.mxu0 %v2722_v2  ;;  %v2728_v6 = vld [vmem:[%s4159_s1 + $0x64] ss:$16 sps:$4 sm:$0xff]   ;;  %v2730_v7 = vld [vmem:[%s4159_s1 + $0x60] ss:$16 sps:$4 sm:$0xff]   ;;  %v2766_v13 = vld [vmem:[%s4159_s1 + $0xc] ss:$16 sps:$4 sm:$0xff]  }
  0x75   : > { %v2731_v8 = vld [vmem:[%s4159_s1 + $0x84] ss:$16 sps:$4 sm:$0xff]   ;;  %s4238_s17 = smov (!%p327_p2, %s2394_s17), 15  ;;  %v2733_v9 = vld [vmem:[%s4159_s1 + $0x80] ss:$16 sps:$4 sm:$0xff]   ;;  %867 = vmatprep.subr.bf16.mxu1 %v2766_v13 }
  0x76   : > { %v2734_v10 = vld [vmem:[%s4159_s1 + $0xa4] ss:$16 sps:$4 sm:$0xff]   ;;  %s2618_s11 = sshll.u32 %s4238_s17, 3  ;;  %v2736_v11 = vld [vmem:[%s4159_s1 + $0xa0] ss:$16 sps:$4 sm:$0xff]   ;;  %s2619_s22 = sshll.u32 %s4238_s17, 4 }
  0x77   : > { %797 = vmatpush1.bf16.msra.mxu0 %v2724_v3  ;;  %v2737_v12 = vld [vmem:[%s4159_s1 + $0xc4] ss:$16 sps:$4 sm:$0xff]   ;;  %s3386_s28 = scalar_lea.vmem %s4158_s0, %s2618_s11  ;;  %v2739_v14 = vld [vmem:[%s4159_s1 + $0xc0] ss:$16 sps:$4 sm:$0xff]   ;;  %v2769_v15 = vld [vmem:[%s4159_s1 + $0x8] ss:$16 sps:$4 sm:$0xff]   ;;  %s4043_s30 = scalar_lea.vmem %s4165_s7, %s2619_s22 }
  0x78   : > { %798 = vmatprep.subr.bf16.mxu0 %v2725_v4  ;;  %v2740_v16 = vld [vmem:[%s4159_s1 + $0xe4] ss:$16 sps:$4 sm:$0xff]   ;;  %868 = vmatpush1.bf16.msra.mxu1 %v2769_v15  ;;  %v2773_v18 = vld [vmem:[%s4159_s1 + $0x2c] ss:$16 sps:$4 sm:$0xff]   ;;  %v2775_v19 = vld [vmem:[%s4159_s1 + $0x28] ss:$16 sps:$4 sm:$0xff]  }
  0x79   : > { %v2772_v17 = vld [vmem:[%s3386_s28 + $0x4] ss:$8 sps:$4 sm:$0xff]   ;;  %869 = vmatprep.subr.bf16.mxu1 %v2773_v18  ;;  %v2742_v21 = vld [vmem:[%s4159_s1 + $0xe0] ss:$16 sps:$4 sm:$0xff]   ;;  %v2778_v23 = vld [vmem:[%s4159_s1 + $0x48] ss:$16 sps:$4 sm:$0xff]  }
  0x7a   : > { %826 = vmatprep.mubr.bf16.mxu0 %v2772_v17  ;;  %899 = vmatprep.mubr.bf16.mxu1 %v2772_v17  ;;  %v2776_v20 = vld [vmem:[%s4159_s1 + $0x4c] ss:$16 sps:$4 sm:$0xff]   ;;  %v2743_v22 = vld [vmem:[%s4159_s1 + $0x104] ss:$16 sps:$4 sm:$0xff]   ;;  %v2745_v25 = vld [vmem:[%s4159_s1 + $0x100] ss:$16 sps:$4 sm:$0xff]  }
  0x7b   : > { %799 = vmatpush1.bf16.msra.mxu0 %v2727_v5  ;;  %v2779_v24 = vld [vmem:[%s4159_s1 + $0x6c] ss:$16 sps:$4 sm:$0xff]   ;;  %v2746_v26 = vld [vmem:[%s4159_s1 + $0x124] ss:$16 sps:$4 sm:$0xff]   ;;  %v2781_v27 = vld [vmem:[%s4159_s1 + $0x68] ss:$16 sps:$4 sm:$0xff]  }
  0x7c   : > { %800 = vmatprep.subr.bf16.mxu0 %v2728_v6  ;;  %870 = vmatpush1.bf16.msra.mxu1 %v2775_v19  ;;  %v2782_v28 = vld [vmem:[%s4159_s1 + $0x8c] ss:$16 sps:$4 sm:$0xff]   ;;  %v2748_v29 = vld [vmem:[%s4159_s1 + $0x120] ss:$16 sps:$4 sm:$0xff]   ;;  %v2749_v30 = vld [vmem:[%s4159_s1 + $0x144] ss:$16 sps:$4 sm:$0xff]  }
  0x7d   : > { %871 = vmatprep.subr.bf16.mxu1 %v2776_v20  ;;  %v2784_v31 = vld [vmem:[%s4159_s1 + $0x88] ss:$16 sps:$4 sm:$0xff]   ;;  %v2785_v32 = vld [vmem:[%s4159_s1 + $0xac] ss:$16 sps:$4 sm:$0xff]   ;;  %v2751_v33 = vld [vmem:[%s4159_s1 + $0x140] ss:$16 sps:$4 sm:$0xff]  }
  0x7e   : > { %v2752_v34 = vld [vmem:[%s4159_s1 + $0x164] ss:$16 sps:$4 sm:$0xff]   ;;  %v2787_v35 = vld [vmem:[%s4159_s1 + $0xa8] ss:$16 sps:$4 sm:$0xff]   ;;  %v2788_v36 = vld [vmem:[%s4159_s1 + $0xcc] ss:$16 sps:$4 sm:$0xff]  }
  0x7f   : > { %801 = vmatpush1.bf16.msra.mxu0 %v2730_v7  ;;  %v2754_v37 = vld [vmem:[%s4159_s1 + $0x160] ss:$16 sps:$4 sm:$0xff]   ;;  %v2755_v38 = vld [vmem:[%s4159_s1 + $0x184] ss:$16 sps:$4 sm:$0xff]   ;;  %v2790_v39 = vld [vmem:[%s4159_s1 + $0xc8] ss:$16 sps:$4 sm:$0xff]  }
  0x80   : > { %802 = vmatprep.subr.bf16.mxu0 %v2731_v8  ;;  %872 = vmatpush1.bf16.msra.mxu1 %v2778_v23  ;;  %v2791_v40 = vld [vmem:[%s4159_s1 + $0xec] ss:$16 sps:$4 sm:$0xff]   ;;  %v2757_v41 = vld [vmem:[%s4159_s1 + $0x180] ss:$16 sps:$4 sm:$0xff]   ;;  %v2758_v42 = vld [vmem:[%s4159_s1 + $0x1a4] ss:$16 sps:$4 sm:$0xff]  }
  0x81   : > { %873 = vmatprep.subr.bf16.mxu1 %v2779_v24  ;;  %v2793_v43 = vld [vmem:[%s4159_s1 + $0xe8] ss:$16 sps:$4 sm:$0xff]   ;;  %v2794_v44 = vld [vmem:[%s4159_s1 + $0x10c] ss:$16 sps:$4 sm:$0xff]   ;;  %v2760_v45 = vld [vmem:[%s4159_s1 + $0x1a0] ss:$16 sps:$4 sm:$0xff]  }
  0x82   : > { %v2761_v46 = vld [vmem:[%s4159_s1 + $0x1c4] ss:$16 sps:$4 sm:$0xff]   ;;  %v2796_v47 = vld [vmem:[%s4159_s1 + $0x108] ss:$16 sps:$4 sm:$0xff]   ;;  %v2797_v48 = vld [vmem:[%s4159_s1 + $0x12c] ss:$16 sps:$4 sm:$0xff]  }
  0x83   : > { %803 = vmatpush1.bf16.msra.mxu0 %v2733_v9  ;;  %v2763_v49 = vld [vmem:[%s4159_s1 + $0x1c0] ss:$16 sps:$4 sm:$0xff]   ;;  %v2764_v50 = vld [vmem:[%s4159_s1 + $0x1e4] ss:$16 sps:$4 sm:$0xff]   ;;  %v2799_v51 = vld [vmem:[%s4159_s1 + $0x128] ss:$16 sps:$4 sm:$0xff]  }
  0x84   : > { %804 = vmatprep.subr.bf16.mxu0 %v2734_v10  ;;  %874 = vmatpush1.bf16.msra.mxu1 %v2781_v27  ;;  %v2803_v52 = vld [vmem:[%s4159_s1 + $0x14c] ss:$16 sps:$4 sm:$0xff]   ;;  %v2768_v53 = vld [vmem:[%s4159_s1 + $0x1e0] ss:$16 sps:$4 sm:$0xff]   ;;  %v2805_v54 = vld [vmem:[%s4159_s1 + $0x148] ss:$16 sps:$4 sm:$0xff]  }
  0x85   : > { %875 = vmatprep.subr.bf16.mxu1 %v2782_v28  ;;  %v2829_v55 = vld [vmem:[%s4161_s3 + $0x4] ss:$8 sps:$4 sm:$0xff]   ;;  %v2770_v57 = vld [vmem:[%s3386_s28] ss:$8 sps:$4 sm:$0xff]   ;;  %v2800_v58 = vld [vmem:[%s3386_s28 + $0x14] ss:$8 sps:$4 sm:$0xff]  }
  0x86   : > { %v2806_v56 = vld [vmem:[%s4159_s1 + $0x16c] ss:$16 sps:$4 sm:$0xff]   ;;  %v2808_v59 = vld [vmem:[%s4159_s1 + $0x168] ss:$16 sps:$4 sm:$0xff]  }
  0x87   : > { %805 = vmatpush1.bf16.msra.mxu0 %v2736_v11  ;;  %v2827_v60 = vld [vmem:[%s4161_s3] ss:$8 sps:$4 sm:$0xff]   ;;  %v2832_v61 = vld [vmem:[%s4161_s3 + $0x14] ss:$8 sps:$4 sm:$0xff]   ;;  %v2830_v0 = vld [vmem:[%s4161_s3 + $0x10] ss:$8 sps:$4 sm:$0xff]  }
  0x88   : > { %806 = vmatprep.subr.bf16.mxu0 %v2737_v12  ;;  %876 = vmatpush1.bf16.msra.mxu1 %v2784_v31  ;;  %v2812_v62 = vld [vmem:[%s4159_s1 + $0x18c] ss:$16 sps:$4 sm:$0xff]   ;;  %v2814_v63 = vld [vmem:[%s4159_s1 + $0x188] ss:$16 sps:$4 sm:$0xff]  }
  0x89   : > { %877 = vmatprep.subr.bf16.mxu1 %v2785_v32  ;;  %v2835_v1 = vld [vmem:[%s4161_s3 + $0x24] ss:$8 sps:$4 sm:$0xff]   ;;  %v2802_v3 = vld [vmem:[%s3386_s28 + $0x10] ss:$8 sps:$4 sm:$0xff]   ;;  %v2833_v5 = vld [vmem:[%s4161_s3 + $0x20] ss:$8 sps:$4 sm:$0xff]  }
  0x8a   : > { %v2815_v2 = vld [vmem:[%s4159_s1 + $0x1ac] ss:$16 sps:$4 sm:$0xff]   ;;  %v2817_v6 = vld [vmem:[%s4159_s1 + $0x1a8] ss:$16 sps:$4 sm:$0xff]  }
  0x8b   : > { %807 = vmatpush1.bf16.msra.mxu0 %v2739_v14  ;;  %v2809_v4 = vld [vmem:[%s3386_s28 + $0x24] ss:$8 sps:$4 sm:$0xff]   ;;  %v2838_v7 = vld [vmem:[%s4161_s3 + $0x34] ss:$8 sps:$4 sm:$0xff]   ;;  %v2836_v9 = vld [vmem:[%s4161_s3 + $0x30] ss:$8 sps:$4 sm:$0xff]  }
  0x8c   : > { %808 = vmatprep.subr.bf16.mxu0 %v2740_v16  ;;  %878 = vmatpush1.bf16.msra.mxu1 %v2787_v35  ;;  %v2821_v8 = vld [vmem:[%s4159_s1 + $0x1cc] ss:$16 sps:$4 sm:$0xff]   ;;  %v2823_v10 = vld [vmem:[%s4159_s1 + $0x1c8] ss:$16 sps:$4 sm:$0xff]  }
  0x8d   : > { %879 = vmatprep.subr.bf16.mxu1 %v2788_v36  ;;  %v2841_v11 = vld [vmem:[%s4161_s3 + $0x44] ss:$8 sps:$4 sm:$0xff]   ;;  %v2811_v13 = vld [vmem:[%s3386_s28 + $0x20] ss:$8 sps:$4 sm:$0xff]   ;;  %v2818_v14 = vld [vmem:[%s3386_s28 + $0x34] ss:$8 sps:$4 sm:$0xff]  }
  0x8e   : > { %v2824_v12 = vld [vmem:[%s4159_s1 + $0x1ec] ss:$16 sps:$4 sm:$0xff]   ;;  %v2839_v15 = vld [vmem:[%s4161_s3 + $0x40] ss:$8 sps:$4 sm:$0xff]   ;;  %v2842_v18 = vld [vmem:[%s4161_s3 + $0x50] ss:$8 sps:$4 sm:$0xff]  }
  0x8f   : > { %809 = vmatpush1.bf16.msra.mxu0 %v2742_v21  ;;  %v2826_v16 = vld [vmem:[%s4159_s1 + $0x1e8] ss:$16 sps:$4 sm:$0xff]   ;;  %v2844_v17 = vld [vmem:[%s4161_s3 + $0x54] ss:$8 sps:$4 sm:$0xff]   ;;  %v2847_v19 = vld [vmem:[%s4161_s3 + $0x64] ss:$8 sps:$4 sm:$0xff]  }
  0x90   : > { %810 = vmatprep.subr.bf16.mxu0 %v2743_v22  ;;  %880 = vmatpush1.bf16.msra.mxu1 %v2790_v39  ;;  %v2820_v20 = vld [vmem:[%s3386_s28 + $0x30] ss:$8 sps:$4 sm:$0xff]   ;;  %v2845_v21 = vld [vmem:[%s4161_s3 + $0x60] ss:$8 sps:$4 sm:$0xff]   ;;  %v2850_v22 = vld [vmem:[%s4161_s3 + $0x74] ss:$8 sps:$4 sm:$0xff]  }
  0x91   : > { %881 = vmatprep.subr.bf16.mxu1 %v2791_v40  ;;  %v2848_v23 = vld [vmem:[%s4161_s3 + $0x70] ss:$8 sps:$4 sm:$0xff]   ;;  %v2853_v24 = vld [vmem:[%s4161_s3 + $0x84] ss:$8 sps:$4 sm:$0xff]  }
  0x92   : > { %v2854_v27 = vld [vmem:[%s4161_s3 + $0x90] ss:$8 sps:$4 sm:$0xff]   ;;  %v2859_v28 = vld [vmem:[%s4161_s3 + $0xa4] ss:$8 sps:$4 sm:$0xff]  }
  0x93   : > { %811 = vmatpush1.bf16.msra.mxu0 %v2745_v25  ;;  %v2851_v25 = vld [vmem:[%s4161_s3 + $0x80] ss:$8 sps:$4 sm:$0xff]   ;;  %v2860_v31 = vld [vmem:[%s4161_s3 + $0xb0] ss:$8 sps:$4 sm:$0xff]   ;;  %v2865_v32 = vld [vmem:[%s4161_s3 + $0xc4] ss:$8 sps:$4 sm:$0xff]  }
  0x94   : > { %812 = vmatprep.subr.bf16.mxu0 %v2746_v26  ;;  %882 = vmatpush1.bf16.msra.mxu1 %v2793_v43  ;;  %v2856_v26 = vld [vmem:[%s4161_s3 + $0x94] ss:$8 sps:$4 sm:$0xff]   ;;  %v2866_v35 = vld [vmem:[%s4161_s3 + $0xd0] ss:$8 sps:$4 sm:$0xff]   ;;  %v2871_v36 = vld [vmem:[%s4161_s3 + $0xe4] ss:$8 sps:$4 sm:$0xff]  }
  0x95   : > { %883 = vmatprep.subr.bf16.mxu1 %v2794_v44  ;;  %v2872_v39 = vld [vmem:[%s4161_s3 + $0xf0] ss:$8 sps:$4 sm:$0xff]   ;;  %v2877_v40 = vld [vmem:[%s4161_s3 + $0x104] ss:$8 sps:$4 sm:$0xff]  }
  0x96   : > { %v2928_v43 = vld [vmem:[#allocation6 + $0x24] ss:$16 sps:$4 sm:$0xff]   ;;  %v2926_v44 = vld [vmem:[#allocation6 + $0x20] ss:$16 sps:$4 sm:$0xff]  }
  0x97   : > { %813 = vmatpush1.bf16.msra.mxu0 %v2748_v29  ;;  %v2857_v29 = vld [vmem:[%s4161_s3 + $0xa0] ss:$8 sps:$4 sm:$0xff]  }
  0x98   : > { %814 = vmatprep.subr.bf16.mxu0 %v2749_v30  ;;  %884 = vmatpush1.bf16.msra.mxu1 %v2796_v47  ;;  %v2862_v30 = vld [vmem:[%s4161_s3 + $0xb4] ss:$8 sps:$4 sm:$0xff]  }
  0x99   : > { %885 = vmatprep.subr.bf16.mxu1 %v2797_v48  ;;  %v2934_v47 = vld [vmem:[#allocation6 + $0x64] ss:$16 sps:$4 sm:$0xff]   ;;  %v2932_v48 = vld [vmem:[#allocation6 + $0x60] ss:$16 sps:$4 sm:$0xff]  }
  0x9b   : > { %815 = vmatpush1.bf16.msra.mxu0 %v2751_v33  ;;  %v2863_v33 = vld [vmem:[%s4161_s3 + $0xc0] ss:$8 sps:$4 sm:$0xff]  }
  0x9c   : > { %816 = vmatprep.subr.bf16.mxu0 %v2752_v34  ;;  %886 = vmatpush1.bf16.msra.mxu1 %v2799_v51  ;;  %v2868_v34 = vld [vmem:[%s4161_s3 + $0xd4] ss:$8 sps:$4 sm:$0xff]  }
  0x9d   : > { %887 = vmatprep.subr.bf16.mxu1 %v2803_v52  ;;  %v2935_v51 = vld [vmem:[#allocation6 + $0x80] ss:$16 sps:$4 sm:$0xff]   ;;  %v2940_v52 = vld [vmem:[#allocation6 + $0xa4] ss:$16 sps:$4 sm:$0xff]  }
  0x9f   : > { %817 = vmatpush1.bf16.msra.mxu0 %v2754_v37  ;;  %v2869_v37 = vld [vmem:[%s4161_s3 + $0xe0] ss:$8 sps:$4 sm:$0xff]  }
  0xa0   : > { %818 = vmatprep.subr.bf16.mxu0 %v2755_v38  ;;  %888 = vmatpush1.bf16.msra.mxu1 %v2805_v54  ;;  %v2874_v38 = vld [vmem:[%s4161_s3 + $0xf4] ss:$8 sps:$4 sm:$0xff]  }
  0xa1   : > { %889 = vmatprep.subr.bf16.mxu1 %v2806_v56  ;;  %v2938_v54 = vld [vmem:[#allocation6 + $0xa0] ss:$16 sps:$4 sm:$0xff]  }
  0xa3   : > { %819 = vmatpush1.bf16.msra.mxu0 %v2757_v41  ;;  %v2923_v41 = vld [vmem:[#allocation6] ss:$16 sps:$4 sm:$0xff]  }
  0xa4   : > { %820 = vmatprep.subr.bf16.mxu0 %v2758_v42  ;;  %890 = vmatpush1.bf16.msra.mxu1 %v2808_v59  ;;  %v2925_v42 = vld [vmem:[#allocation6 + $0x4] ss:$16 sps:$4 sm:$0xff]  }
  0xa5   : > { %891 = vmatprep.subr.bf16.mxu1 %v2812_v62  ;;  %v2944_v62 = vld [vmem:[#allocation6 + $0xe0] ss:$16 sps:$4 sm:$0xff]  }
  0xa7   : > { %821 = vmatpush1.bf16.msra.mxu0 %v2760_v45  ;;  %v2931_v45 = vld [vmem:[#allocation6 + $0x44] ss:$16 sps:$4 sm:$0xff]  }
  0xa8   : > { %822 = vmatprep.subr.bf16.mxu0 %v2761_v46  ;;  %892 = vmatpush1.bf16.msra.mxu1 %v2814_v63  ;;  %v2929_v46 = vld [vmem:[#allocation6 + $0x40] ss:$16 sps:$4 sm:$0xff]  }
  0xa9   : > { %893 = vmatprep.subr.bf16.mxu1 %v2815_v2 }
  0xab   : > { %823 = vmatpush1.bf16.msra.mxu0 %v2763_v49  ;;  %v2937_v49 = vld [vmem:[#allocation6 + $0x84] ss:$16 sps:$4 sm:$0xff]  }
  0xac   : > { %824 = vmatprep.subr.bf16.mxu0 %v2764_v50  ;;  %894 = vmatpush1.bf16.msra.mxu1 %v2817_v6  ;;  %v414_v50 = vlaneseq }
  0xad   : > { %895 = vmatprep.subr.bf16.mxu1 %v2821_v8 }
  0xaf   : > { %825 = vmatpush1.bf16.msra.mxu0 %v2768_v53  ;;  %v3648_v53 = vshrl.u32 %v414_v50, 7 }
  0xb0   : > { %1384 = vmatprep.subr.bf16.mxu0 %v2829_v55  ;;  %896 = vmatpush1.bf16.msra.mxu1 %v2823_v10  ;;  %v2943_v55 = vld [vmem:[#allocation6 + $0xc4] ss:$16 sps:$4 sm:$0xff]  }
  0xb1   : > { %897 = vmatprep.subr.bf16.mxu1 %v2824_v12  ;;  %v3651_v56 = vsub.s32 1, %v3648_v53  ;;  %v3656_v59 = vsub.s32 0, %v3648_v53 }
  0xb2   : > { %827 = vmatmul.mubr.bf16.vlgmr.msra.gmra.mrb[0].mxu0 %v2770_v57 }
  0xb3   : > { %836 = vmatprep.mubr.bf16.mxu0 %v2800_v58  ;;  %1385 = vmatpush1.bf16.msra.mxu0 %v2827_v60  ;;  %v2946_v60 = vld [vmem:[#allocation6 + $0xe4] ss:$16 sps:$4 sm:$0xff]  }
  0xb4   : > { %1386 = vmatprep.subr.bf16.mxu0 %v2832_v61  ;;  %898 = vmatpush1.bf16.msra.mxu1 %v2826_v16  ;;  %v2955_v16 = vld [vmem:[#allocation6 + $0x144] ss:$16 sps:$4 sm:$0xff]  }
  0xb5   : > { %1960 = vmatprep.subr.bf16.mxu1 %v2925_v42 }
  0xb7   : > { %1387 = vmatpush1.bf16.msra.mxu0 %v2830_v0  ;;  %900 = vmatmul.mubr.bf16.vlgmr.msra.gmra.mrb[0].mxu1 %v2770_v57  ;;  %v2941_v57 = vld [vmem:[#allocation6 + $0xc0] ss:$16 sps:$4 sm:$0xff]   ;;  %v2949_v0 = vld [vmem:[#allocation6 + $0x104] ss:$16 sps:$4 sm:$0xff]  }
  0xb8   : > { %1388 = vmatprep.subr.bf16.mxu0 %v2835_v1  ;;  %909 = vmatprep.mubr.bf16.mxu1 %v2800_v58  ;;  %v3653_v58 = vld [vmem:[#allocation2] sm:$0xf] }
  0xb9   : > { %1961 = vmatpush1.bf16.msra.mxu1 %v2923_v41  ;;  %v3660_v61 = vrot.slane %v3653_v58, %v3651_v56  ;;  %v3664_v63 = vrot.slane %v3653_v58, %v3656_v59 }
  0xba   : > { %837 = vmatmul.mubr.bf16.gmra.mrb[4].mxu0 %v2802_v3  ;;  %1962 = vmatprep.subr.bf16.mxu1 %v2928_v43  ;;  %v4171_v43 = vsub.s32 3, %v3648_v53 }
  0xbb   : > { %846 = vmatprep.mubr.bf16.mxu0 %v2809_v4  ;;  %1389 = vmatpush1.bf16.msra.mxu0 %v2833_v5  ;;  %v2947_v5 = vld [vmem:[#allocation6 + $0x100] ss:$16 sps:$4 sm:$0xff]  }
  0xbc   : > { %1390 = vmatprep.subr.bf16.mxu0 %v2838_v7 }
  0xbd   : > { %1963 = vmatpush1.bf16.msra.mxu1 %v2926_v44  ;;  %v2886_v44 = vld [vmem:[%s4161_s3 + $0x134] ss:$8 sps:$4 sm:$0xff]  }
  0xbe   : > { %1964 = vmatprep.subr.bf16.mxu1 %v2931_v45 }
  0xbf   : > { %1391 = vmatpush1.bf16.msra.mxu0 %v2836_v9  ;;  %910 = vmatmul.mubr.bf16.gmra.mrb[4].mxu1 %v2802_v3  ;;  %v2952_v9 = vld [vmem:[#allocation6 + $0x124] ss:$16 sps:$4 sm:$0xff]  }
  0xc0   : > { %1392 = vmatprep.subr.bf16.mxu0 %v2841_v11  ;;  %919 = vmatprep.mubr.bf16.mxu1 %v2809_v4 }
  0xc1   : > { %1965 = vmatpush1.bf16.msra.mxu1 %v2929_v46 }
  0xc2   : > { %847 = vmatmul.mubr.bf16.gmra.mrb[8].mxu0 %v2811_v13  ;;  %1966 = vmatprep.subr.bf16.mxu1 %v2934_v47 }
  0xc3   : > { %856 = vmatprep.mubr.bf16.mxu0 %v2818_v14  ;;  %1393 = vmatpush1.bf16.msra.mxu0 %v2839_v15 }
  0xc4   : > { %1394 = vmatprep.subr.bf16.mxu0 %v2844_v17 }
  0xc5   : > { %1967 = vmatpush1.bf16.msra.mxu1 %v2932_v48 }
  0xc6   : > { %1968 = vmatprep.subr.bf16.mxu1 %v2937_v49  ;;  %v2959_v49 = vld [vmem:[#allocation6 + $0x180] ss:$16 sps:$4 sm:$0xff]  }
  0xc7   : > { %1395 = vmatpush1.bf16.msra.mxu0 %v2842_v18  ;;  %920 = vmatmul.mubr.bf16.gmra.mrb[8].mxu1 %v2811_v13  ;;  %v2875_v18 = vld [vmem:[%s4161_s3 + $0x100] ss:$8 sps:$4 sm:$0xff]  }
  0xc8   : > { %1396 = vmatprep.subr.bf16.mxu0 %v2847_v19  ;;  %929 = vmatprep.mubr.bf16.mxu1 %v2818_v14  ;;  %v2950_v14 = vld [vmem:[#allocation6 + $0x120] ss:$16 sps:$4 sm:$0xff]  }
  0xc9   : > { %1969 = vmatpush1.bf16.msra.mxu1 %v2935_v51 }
  0xca   : > { %857 = vmatmul.mubr.bf16.gmra.mrb[12].mxu0 %v2820_v20  ;;  %1970 = vmatprep.subr.bf16.mxu1 %v2940_v52 }
  0xcb   : > { %1397 = vmatpush1.bf16.msra.mxu0 %v2845_v21  ;;  %v2880_v21 = vld [vmem:[%s4161_s3 + $0x114] ss:$8 sps:$4 sm:$0xff]  }
  0xcc   : > { %1398 = vmatprep.subr.bf16.mxu0 %v2850_v22 }
  0xcd   : > { %1971 = vmatpush1.bf16.msra.mxu1 %v2938_v54  ;;  %v2964_v54 = vld [vmem:[#allocation6 + $0x1a4] ss:$16 sps:$4 sm:$0xff]  }
  0xce   : > { %1972 = vmatprep.subr.bf16.mxu1 %v2943_v55  ;;  %v2884_v55 = vld [vmem:[%s4161_s3 + $0x130] ss:$8 sps:$4 sm:$0xff]  }
  0xcf   : > { %1399 = vmatpush1.bf16.msra.mxu0 %v2848_v23  ;;  %930 = vmatmul.mubr.bf16.gmra.mrb[12].mxu1 %v2820_v20 }
  0xd0   : > { %1400 = vmatprep.subr.bf16.mxu0 %v2853_v24 }
  0xd1   : > { %1973 = vmatpush1.bf16.msra.mxu1 %v2941_v57 }
  0xd2   : > { %1974 = vmatprep.subr.bf16.mxu1 %v2946_v60 }
  0xd3   : > { %1401 = vmatpush1.bf16.msra.mxu0 %v2851_v25 }
  0xd4   : > { %1402 = vmatprep.subr.bf16.mxu0 %v2856_v26  ;;  %v2953_v26 = vld [vmem:[#allocation6 + $0x140] ss:$16 sps:$4 sm:$0xff]  }
  0xd5   : > { %1975 = vmatpush1.bf16.msra.mxu1 %v2944_v62  ;;  %v3753_v62 = vrot.slane %v3653_v58, %v4171_v43 }
  0xd6   : > { %1976 = vmatprep.subr.bf16.mxu1 %v2949_v0  ;;  %v2889_v0 = vld [vmem:[%s4161_s3 + $0x144] ss:$8 sps:$4 sm:$0xff]  }
  0xd7   : > { %1403 = vmatpush1.bf16.msra.mxu0 %v2854_v27 }
  0xd8   : > { %1404 = vmatprep.subr.bf16.mxu0 %v2859_v28 }
  0xd9   : > { %1977 = vmatpush1.bf16.msra.mxu1 %v2947_v5 }
  0xda   : > { %1978 = vmatprep.subr.bf16.mxu1 %v2952_v9 }
  0xdb   : > { %1405 = vmatpush1.bf16.msra.mxu0 %v2857_v29 }
  0xdc   : > { %1406 = vmatprep.subr.bf16.mxu0 %v2862_v30  ;;  %v2958_v30 = vld [vmem:[#allocation6 + $0x164] ss:$16 sps:$4 sm:$0xff]  }
  0xdd   : > { %1979 = vmatpush1.bf16.msra.mxu1 %v2950_v14 }
  0xde   : > { %1980 = vmatprep.subr.bf16.mxu1 %v2955_v16  ;;  %v2887_v16 = vld [vmem:[%s4161_s3 + $0x140] ss:$8 sps:$4 sm:$0xff]  }
  0xdf   : > { %1407 = vmatpush1.bf16.msra.mxu0 %v2860_v31  ;;  %v2878_v31 = vld [vmem:[%s4161_s3 + $0x110] ss:$8 sps:$4 sm:$0xff]  }
  0xe0   : > { %1408 = vmatprep.subr.bf16.mxu0 %v2865_v32 }
  0xe1   : > { %1981 = vmatpush1.bf16.msra.mxu1 %v2953_v26 }
  0xe2   : > { %1982 = vmatprep.subr.bf16.mxu1 %v2958_v30 }
  0xe3   : > { %1409 = vmatpush1.bf16.msra.mxu0 %v2863_v33 }
  0xe4   : > { %1410 = vmatprep.subr.bf16.mxu0 %v2868_v34  ;;  %v2883_v34 = vld [vmem:[%s4161_s3 + $0x124] ss:$8 sps:$4 sm:$0xff]  }
  0xe7   : > { %1411 = vmatpush1.bf16.msra.mxu0 %v2866_v35 }
  0xe8   : > { %1412 = vmatprep.subr.bf16.mxu0 %v2871_v36 }
  0xeb   : > { %1413 = vmatpush1.bf16.msra.mxu0 %v2869_v37  ;;  %v2956_v37 = vld [vmem:[#allocation6 + $0x160] ss:$16 sps:$4 sm:$0xff]  }
  0xec   : > { %1414 = vmatprep.subr.bf16.mxu0 %v2874_v38  ;;  %1983 = vmatpush1.bf16.msra.mxu1 %v2956_v37 }
  0xef   : > { %1415 = vmatpush1.bf16.msra.mxu0 %v2872_v39  ;;  %v2961_v39 = vld [vmem:[#allocation6 + $0x184] ss:$16 sps:$4 sm:$0xff]  }
  0xf0   : > { %1457 = vmatprep.subr.bf16.mxu0 %v2877_v40  ;;  %v2881_v40 = vld [vmem:[%s4161_s3 + $0x120] ss:$8 sps:$4 sm:$0xff]   ;;  %1984 = vmatprep.subr.bf16.mxu1 %v2961_v39 }
  0xf1   : > { %1985 = vmatpush1.bf16.msra.mxu1 %v2959_v49 }
  0xf2   : > { %1986 = vmatprep.subr.bf16.mxu1 %v2964_v54  ;;  %v2893_v54 = vld [vmem:[%s4161_s3 + $0x160] ss:$8 sps:$4 sm:$0xff]  }
 0x185   : > { %v828_v1 = vpop.f32.mrb[0].mxu0 }
 0x186   : > { %v830_v2 = vpop.f32.mrb[1].mxu0  ;;  %v3670_v6 = vadd.f32 %v828_v1, %v3664_v63 }
 0x187   : > { %v3667_v3 = vadd.f32 %v830_v2, %v3660_v61  ;;  %v832_v4 = vpop.f32.mrb[2].mxu0 }
 0x188   : > { %v3673_v7 = vadd.f32 %v832_v4, %v3664_v63  ;;  %v834_v8 = vpop.f32.mrb[3].mxu0  ;;  %v940_v15 = vmax.f32 %v3670_v6, 0.0 }
 0x189   : > { %v3676_v10 = vadd.f32 %v834_v8, %v3660_v61  ;;  %v941_v12 = vmax.f32 %v3667_v3, 0.0  ;;  %v2962_v8 = vld [vmem:[#allocation6 + $0x1a0] ss:$16 sps:$4 sm:$0xff]  }
 0x18a   : > { %v944_v11 = vmax.f32 %v3673_v7, 0.0  ;;  %v3759_v2 = vpop.f32.mrb[0].mxu1  ;;  %1987 = vmatpush1.bf16.msra.mxu1 %v2962_v8  ;;  %v2898_v8 = vld [vmem:[%s4161_s3 + $0x174] ss:$8 sps:$4 sm:$0xff]  }
 0x18b   : > { %v4199_v13 = vmax.f32 %v3676_v10, 0.0  ;;  %v903_v5 = vpop.f32.mrb[1].mxu1 }
 0x18c   : > { %v972_v20 = vpack.c.bf16 %v944_v11, %v940_v15  ;;  %v3766_v14 = vpop.f32.mrb[2].mxu1 }
 0x18d   : > { %v973_v17 = vpack.c.bf16 %v4199_v13, %v941_v12  ;;  %v838_v19 = vpop.f32.mrb[4].mxu0  ;;  %v2994_v13 = vld [vmem:[#allocation6 + $0xec] ss:$16 sps:$4 sm:$0xff]  }
 0x18e   : > { %v3697_v22 = vadd.f32 %v838_v19, %v3664_v63  ;;  %v840_v23 = vpop.f32.mrb[5].mxu0  ;;  %v3776_v19 = vadd.f32 %v903_v5, %v3753_v62 }
 0x18f   : > { %1416 = vmatprep.mubr.bf16.mxu0 %v973_v17  ;;  %v3700_v24 = vadd.f32 %v840_v23, %v3660_v61  ;;  %v842_v25 = vpop.f32.mrb[6].mxu0 }
 0x190   : > { %1417 = vmatmul.mubr.bf16.vlgmr.msra.gmra.mrb[16].mxu0 %v972_v20  ;;  %v4198_v27 = vmax.f32 %v3697_v22, 0.0  ;;  %v3704_v28 = vadd.f32 %v842_v25, %v3664_v63  ;;  %v844_v29 = vpop.f32.mrb[7].mxu0  ;;  %v907_v20 = vpop.f32.mrb[3].mxu1 }
 0x191   : > { %1458 = vmatpush1.bf16.msra.mxu0 %v2875_v18  ;;  %v4197_v32 = vmax.f32 %v3700_v24, 0.0  ;;  %v3711_v33 = vadd.f32 %v844_v29, %v3660_v61  ;;  %v3785_v26 = vadd.f32 %v907_v20, %v3753_v62 }
 0x192   : > { %1459 = vmatprep.subr.bf16.mxu0 %v2880_v21  ;;  %v4196_v35 = vmax.f32 %v3704_v28, 0.0  ;;  %v2892_v21 = vld [vmem:[%s4161_s3 + $0x154] ss:$8 sps:$4 sm:$0xff]  }
 0x193   : > { %v4195_v36 = vmax.f32 %v3711_v33, 0.0 }
 0x194   : > { %v976_v38 = vpack.c.bf16 %v4196_v35, %v4198_v27 }
 0x195   : > { %1460 = vmatpush1.bf16.msra.mxu0 %v2878_v31  ;;  %v977_v41 = vpack.c.bf16 %v4195_v36, %v4197_v32  ;;  %v848_v42 = vpop.f32.mrb[8].mxu0 }
 0x196   : > { %1461 = vmatprep.subr.bf16.mxu0 %v2883_v34  ;;  %v3734_v45 = vadd.f32 %v848_v42, %v3664_v63  ;;  %v850_v46 = vpop.f32.mrb[9].mxu0  ;;  %v4169_v42 = vmax.f32 %v3785_v26, 0.0 }
 0x197   : > { %v3737_v47 = vadd.f32 %v850_v46, %v3660_v61  ;;  %v852_v48 = vpop.f32.mrb[10].mxu0  ;;  %1426 = vmatprep.mubr.bf16.mxu0 %v977_v41  ;;  %v4170_v41 = vmax.f32 %v3776_v19, 0.0  ;;  %v3807_v46 = vpop.f32.mrb[4].mxu1 }
 0x198   : > { %v4194_v50 = vmax.f32 %v3734_v45, 0.0  ;;  %v3741_v51 = vadd.f32 %v852_v48, %v3664_v63  ;;  %v854_v52 = vpop.f32.mrb[11].mxu0  ;;  %1427 = vmatmul.mubr.bf16.gmra.mrb[20].mxu0 %v976_v38  ;;  %v2890_v38 = vld [vmem:[%s4161_s3 + $0x150] ss:$8 sps:$4 sm:$0xff]   ;;  %v913_v49 = vpop.f32.mrb[5].mxu1 }
 0x199   : > { %1462 = vmatpush1.bf16.msra.mxu0 %v2881_v40  ;;  %v4193_v57 = vmax.f32 %v3737_v47, 0.0  ;;  %v3748_v60 = vadd.f32 %v854_v52, %v3660_v61  ;;  %v3814_v52 = vpop.f32.mrb[6].mxu1 }
 0x19a   : > { %1463 = vmatprep.subr.bf16.mxu0 %v2886_v44  ;;  %v4192_v1 = vmax.f32 %v3741_v51, 0.0  ;;  %v917_v5 = vpop.f32.mrb[7].mxu1 }
 0x19b   : > { %v4191_v4 = vmax.f32 %v3748_v60, 0.0 }
 0x19c   : > { %v980_v9 = vpack.c.bf16 %v4192_v1, %v4194_v50 }
 0x19d   : > { %1464 = vmatpush1.bf16.msra.mxu0 %v2884_v55  ;;  %v981_v17 = vpack.c.bf16 %v4191_v4, %v4193_v57  ;;  %v858_v18 = vpop.f32.mrb[12].mxu0  ;;  %v2971_v4 = vld [vmem:[#allocation6 + $0x8] ss:$16 sps:$4 sm:$0xff]  }
 0x19e   : > { %1465 = vmatprep.subr.bf16.mxu0 %v2889_v0  ;;  %v3782_v23 = vadd.f32 %v858_v18, %v3664_v63  ;;  %v860_v25 = vpop.f32.mrb[13].mxu0  ;;  %v975_v0 = vpack.c.bf16 %v4169_v42, %v4170_v41 }
 0x19f   : > { %v3788_v29 = vadd.f32 %v860_v25, %v3660_v61  ;;  %v862_v30 = vpop.f32.mrb[14].mxu0  ;;  %1436 = vmatprep.mubr.bf16.mxu0 %v981_v17  ;;  %v3836_v17 = vpop.f32.mrb[8].mxu1 }
 0x1a0   : > { %v4190_v31 = vmax.f32 %v3782_v23, 0.0  ;;  %v3792_v34 = vadd.f32 %v862_v30, %v3664_v63  ;;  %v864_v37 = vpop.f32.mrb[15].mxu0  ;;  %1437 = vmatmul.mubr.bf16.gmra.mrb[24].mxu0 %v980_v9  ;;  %v2895_v63 = vld [vmem:[%s4161_s3 + $0x164] ss:$8 sps:$4 sm:$0xff]   ;;  %v2896_v9 = vld [vmem:[%s4161_s3 + $0x170] ss:$8 sps:$4 sm:$0xff]  }
 0x1a1   : > { %1466 = vmatpush1.bf16.msra.mxu0 %v2887_v16  ;;  %v4189_v39 = vmax.f32 %v3788_v29, 0.0  ;;  %v3799_v40 = vadd.f32 %v864_v37, %v3660_v61  ;;  %v2901_v16 = vld [vmem:[%s4161_s3 + $0x184] ss:$8 sps:$4 sm:$0xff]   ;;  %v923_v18 = vpop.f32.mrb[9].mxu1  ;;  %v2904_v30 = vld [vmem:[%s4161_s3 + $0x194] ss:$8 sps:$4 sm:$0xff]  }
 0x1a2   : > { %1467 = vmatprep.subr.bf16.mxu0 %v2892_v21  ;;  %v4188_v44 = vmax.f32 %v3792_v34, 0.0  ;;  %v925_v20 = vpop.f32.mrb[10].mxu1  ;;  %v2899_v21 = vld [vmem:[%s4161_s3 + $0x180] ss:$8 sps:$4 sm:$0xff]   ;;  %v2902_v37 = vld [vmem:[%s4161_s3 + $0x190] ss:$8 sps:$4 sm:$0xff]   ;;  %v3916_v43 = vadd.f32 %v923_v18, %v3753_v62 }
 0x1a3   : > { %v4187_v48 = vmax.f32 %v3799_v40, 0.0  ;;  %v927_v25 = vpop.f32.mrb[11].mxu1 }
 0x1a4   : > { %v984_v61 = vpack.c.bf16 %v4188_v44, %v4190_v31 }
 0x1a5   : > { %1468 = vmatpush1.bf16.msra.mxu0 %v2890_v38  ;;  %v985_v55 = vpack.c.bf16 %v4187_v48, %v4189_v39  ;;  %v2907_v38 = vld [vmem:[%s4161_s3 + $0x1a4] ss:$8 sps:$4 sm:$0xff]  }
 0x1a6   : > { %1469 = vmatprep.subr.bf16.mxu0 %v2895_v63  ;;  %v3850_v63 = vpop.f32.mrb[12].mxu1 }
 0x1a7   : > { %1446 = vmatprep.mubr.bf16.mxu0 %v985_v55  ;;  %v2905_v55 = vld [vmem:[%s4161_s3 + $0x1a0] ss:$8 sps:$4 sm:$0xff]  }
 0x1a8   : > { %1447 = vmatmul.mubr.bf16.gmra.mrb[28].mxu0 %v984_v61  ;;  %v933_v61 = vpop.f32.mrb[13].mxu1 }
 0x1a9   : > { %1470 = vmatpush1.bf16.msra.mxu0 %v2893_v54  ;;  %1489 = vmatprep.mubr.bf16.mxu0 %v975_v0  ;;  %v935_v54 = vpop.f32.mrb[14].mxu1 }
 0x1aa   : > { %1471 = vmatprep.subr.bf16.mxu0 %v2898_v8  ;;  %v937_v0 = vpop.f32.mrb[15].mxu1  ;;  %v2910_v8 = vld [vmem:[%s4161_s3 + $0x1b4] ss:$8 sps:$4 sm:$0xff]  }
 0x1ad   : > { %1472 = vmatpush1.bf16.msra.mxu0 %v2896_v9  ;;  %v2908_v9 = vld [vmem:[%s4161_s3 + $0x1b0] ss:$8 sps:$4 sm:$0xff]  }
 0x1ae   : > { %1473 = vmatprep.subr.bf16.mxu0 %v2901_v16  ;;  %v2913_v16 = vld [vmem:[%s4161_s3 + $0x1c4] ss:$8 sps:$4 sm:$0xff]  }
 0x1b1   : > { %1474 = vmatpush1.bf16.msra.mxu0 %v2899_v21  ;;  %v2911_v21 = vld [vmem:[%s4161_s3 + $0x1c0] ss:$8 sps:$4 sm:$0xff]  }
 0x1b2   : > { %1475 = vmatprep.subr.bf16.mxu0 %v2904_v30  ;;  %v4172_v30 = vsub.s32 2, %v3648_v53 }
 0x1b5   : > { %1476 = vmatpush1.bf16.msra.mxu0 %v2902_v37  ;;  %v2916_v37 = vld [vmem:[%s4161_s3 + $0x1d4] ss:$8 sps:$4 sm:$0xff]  }
 0x1b6   : > { %1477 = vmatprep.subr.bf16.mxu0 %v2907_v38  ;;  %v2914_v38 = vld [vmem:[%s4161_s3 + $0x1d0] ss:$8 sps:$4 sm:$0xff]  }
 0x1b9   : > { %1478 = vmatpush1.bf16.msra.mxu0 %v2905_v55  ;;  %v425_v55 = vrot.slane %v3653_v58, %v4172_v30  ;;  %v3919_v30 = vadd.f32 %v927_v25, %v3753_v62 }
 0x1ba   : > { %1479 = vmatprep.subr.bf16.mxu0 %v2910_v8  ;;  %v2919_v8 = vld [vmem:[%s4161_s3 + $0x1e4] ss:$8 sps:$4 sm:$0xff]  }
 0x1bb   : > { %v3890_v42 = vadd.f32 %v3759_v2, %v425_v55  ;;  %v3893_v58 = vadd.f32 %v3766_v14, %v425_v55  ;;  %v3906_v14 = vadd.f32 %v3807_v46, %v425_v55  ;;  %v3934_v25 = vadd.f32 %v3836_v17, %v425_v55 }
 0x1bd   : > { %1480 = vmatpush1.bf16.msra.mxu0 %v2908_v9  ;;  %v2917_v9 = vld [vmem:[%s4161_s3 + $0x1e0] ss:$8 sps:$4 sm:$0xff]   ;;  %v4176_v2 = vmax.f32 %v3890_v42, 0.0  ;;  %v4175_v41 = vmax.f32 %v3893_v58, 0.0 }
 0x1be   : > { %1481 = vmatprep.subr.bf16.mxu0 %v2913_v16  ;;  %v3884_v16 = vadd.f32 %v913_v49, %v3753_v62  ;;  %v2920_v49 = vld [vmem:[%s4161_s3 + $0x1f0] ss:$8 sps:$4 sm:$0xff]  }
 0x1bf   : > { %v974_v46 = vpack.c.bf16 %v4175_v41, %v4176_v2  ;;  %v3943_v41 = vadd.f32 %v933_v61, %v3753_v62  ;;  %v4183_v2 = vmax.f32 %v3934_v25, 0.0  ;;  %v3957_v61 = vadd.f32 %v3850_v63, %v425_v55  ;;  %v2967_v63 = vld [vmem:[#allocation6 + $0x1c4] ss:$16 sps:$4 sm:$0xff]  }
 0x1c0   : > { %1988 = vmatprep.subr.bf16.mxu1 %v2967_v63 }
 0x1c1   : > { %1482 = vmatpush1.bf16.msra.mxu0 %v2911_v21  ;;  %v3887_v21 = vadd.f32 %v917_v5, %v3753_v62  ;;  %v4182_v17 = vmax.f32 %v3943_v41, 0.0 }
 0x1c2   : > { %1483 = vmatprep.subr.bf16.mxu0 %v2916_v37  ;;  %v2922_v37 = vld [vmem:[%s4161_s3 + $0x1f4] ss:$8 sps:$4 sm:$0xff]  }
 0x1c3   : > { %v4173_v5 = vmax.f32 %v3887_v21, 0.0 }
 0x1c5   : > { %1484 = vmatpush1.bf16.msra.mxu0 %v2914_v38  ;;  %v4174_v38 = vmax.f32 %v3884_v16, 0.0 }
 0x1c6   : > { %1485 = vmatprep.subr.bf16.mxu0 %v2919_v8  ;;  %v3909_v8 = vadd.f32 %v3814_v52, %v425_v55  ;;  %v4186_v52 = vmax.f32 %v3906_v14, 0.0 }
 0x1c9   : > { %1486 = vmatpush1.bf16.msra.mxu0 %v2917_v9  ;;  %v979_v9 = vpack.c.bf16 %v4173_v5, %v4174_v38  ;;  %v4178_v5 = vmax.f32 %v3919_v30, 0.0  ;;  %v3936_v38 = vadd.f32 %v925_v20, %v425_v55 }
 0x1ca   : > { %1487 = vmatprep.subr.bf16.mxu0 %v2922_v37  ;;  %v4177_v37 = vmax.f32 %v3909_v8, 0.0 }
 0x1cc   : > { %v978_v18 = vpack.c.bf16 %v4177_v37, %v4186_v52  ;;  %v4179_v37 = vmax.f32 %v3936_v38, 0.0 }
 0x1cd   : > { %1488 = vmatpush1.bf16.msra.mxu0 %v2920_v49  ;;  %v4180_v49 = vmax.f32 %v3916_v43, 0.0 }
 0x1d0   : > { %1490 = vmatmul.mubr.bf16.vlgmr.msra.gmra.mrb[16].mxu0 %v974_v46  ;;  %v983_v46 = vpack.c.bf16 %v4178_v5, %v4180_v49  ;;  %v982_v5 = vpack.c.bf16 %v4179_v37, %v4183_v2  ;;  %v2968_v49 = vld [vmem:[#allocation6 + $0x1e0] ss:$16 sps:$4 sm:$0xff]  }
 0x1d1   : > { %1499 = vmatprep.mubr.bf16.mxu0 %v979_v9  ;;  %v3946_v9 = vadd.f32 %v937_v0, %v3753_v62  ;;  %v3959_v62 = vadd.f32 %v935_v54, %v425_v55  ;;  %v2965_v54 = vld [vmem:[#allocation6 + $0x1c0] ss:$16 sps:$4 sm:$0xff]   ;;  %v2970_v55 = vld [vmem:[#allocation6 + $0x1e4] ss:$16 sps:$4 sm:$0xff]  }
 0x1d2   : > { %1989 = vmatpush1.bf16.msra.mxu1 %v2965_v54 }
 0x1d3   : > { %v4181_v20 = vmax.f32 %v3946_v9, 0.0  ;;  %1990 = vmatprep.subr.bf16.mxu1 %v2970_v55 }
 0x1d5   : > { %v987_v0 = vpack.c.bf16 %v4181_v20, %v4182_v17  ;;  %v2973_v20 = vld [vmem:[#allocation6 + $0xc] ss:$16 sps:$4 sm:$0xff]  }
 0x1d6   : > { %1991 = vmatpush1.bf16.msra.mxu1 %v2968_v49  ;;  %v1052_v17 = vld [vmem:[#allocation4] sm:$0x3] }
 0x1d7   : > { %2033 = vmatprep.subr.bf16.mxu1 %v2973_v20 }
 0x1d8   : > { %1500 = vmatmul.mubr.bf16.gmra.mrb[20].mxu0 %v978_v18  ;;  %v4185_v18 = vmax.f32 %v3957_v61, 0.0 }
 0x1d9   : > { %1509 = vmatprep.mubr.bf16.mxu0 %v983_v46  ;;  %v4184_v46 = vmax.f32 %v3959_v62, 0.0 }
 0x1db   : > { %v986_v37 = vpack.c.bf16 %v4184_v46, %v4185_v18 }
 0x1e0   : > { %1510 = vmatmul.mubr.bf16.gmra.mrb[24].mxu0 %v982_v5  ;;  %v3972_v5 = vrot.slane %v1052_v17, %v3656_v59 }
 0x1e1   : > { %1519 = vmatprep.mubr.bf16.mxu0 %v987_v0  ;;  %v3975_v0 = vrot.slane %v1052_v17, %v3651_v56 }
 0x1e8   : > { %1520 = vmatmul.mubr.bf16.gmra.mrb[28].mxu0 %v986_v37 }
 0x2a3   : > { %v1491_v2 = vpop.f32.mrb[16].mxu0 }
 0x2a4   : > { %v2636_v37 = vadd.f32 %v1491_v2, %v3972_v5  ;;  %v1493_v46 = vpop.f32.mrb[17].mxu0 }
 0x2a5   : > { %v2637_v63 = vadd.f32 %v1493_v46, %v3975_v0  ;;  %v1495_v54 = vpop.f32.mrb[18].mxu0  ;;  %v2976_v46 = vld [vmem:[#allocation6 + $0x2c] ss:$16 sps:$4 sm:$0xff]  }
 0x2a6   : > { %v2638_v18 = vadd.f32 %v1495_v54, %v3972_v5  ;;  %v1497_v55 = vpop.f32.mrb[19].mxu0  ;;  %v1530_v20 = vmax.f32 %v2636_v37, 0.0 }
 0x2a7   : > { %v2639_v49 = vadd.f32 %v1497_v55, %v3975_v0  ;;  %v1531_v48 = vmax.f32 %v2637_v63, 0.0 }
 0x2a8   : > { %v1532_v52 = vmax.f32 %v2638_v18, 0.0 }
 0x2a9   : > { %v1533_v44 = vmax.f32 %v2639_v49, 0.0 }
 0x2aa   : > { %v3981_v39 = vpack.c.bf16 %v1532_v52, %v1530_v20 }
 0x2ab   : > { %v3983_v17 = vpack.c.bf16 %v1533_v44, %v1531_v48  ;;  %v1501_v31 = vpop.f32.mrb[20].mxu0  ;;  %v2974_v44 = vld [vmem:[#allocation6 + $0x28] ss:$16 sps:$4 sm:$0xff]  }
 0x2ac   : > { %v2640_v2 = vadd.f32 %v1501_v31, %v3972_v5  ;;  %v1503_v1 = vpop.f32.mrb[21].mxu0  ;;  %v2979_v31 = vld [vmem:[#allocation6 + $0x4c] ss:$16 sps:$4 sm:$0xff]  }
 0x2ad   : > { %v2641_v57 = vadd.f32 %v1503_v1, %v3975_v0  ;;  %v1505_v54 = vpop.f32.mrb[22].mxu0  ;;  %1992 = vmatprep.mubr.bf16.mxu1 %v3983_v17 }
 0x2ae   : > { %v2642_v37 = vadd.f32 %v1505_v54, %v3972_v5  ;;  %v1507_v18 = vpop.f32.mrb[23].mxu0  ;;  %1993 = vmatmul.mubr.bf16.vlgmr.msra.gmra.mrb[16].mxu1 %v3981_v39  ;;  %v1534_v48 = vmax.f32 %v2640_v2, 0.0  ;;  %v2977_v54 = vld [vmem:[#allocation6 + $0x48] ss:$16 sps:$4 sm:$0xff]  }
 0x2af   : > { %v2643_v52 = vadd.f32 %v1507_v18, %v3975_v0  ;;  %2034 = vmatpush1.bf16.msra.mxu1 %v2971_v4  ;;  %v1535_v55 = vmax.f32 %v2641_v57, 0.0  ;;  %v2982_v18 = vld [vmem:[#allocation6 + $0x6c] ss:$16 sps:$4 sm:$0xff]  }
 0x2b0   : > { %v1536_v63 = vmax.f32 %v2642_v37, 0.0  ;;  %2035 = vmatprep.subr.bf16.mxu1 %v2976_v46 }
 0x2b1   : > { %v1537_v49 = vmax.f32 %v2643_v52, 0.0  ;;  %v2980_v52 = vld [vmem:[#allocation6 + $0x68] ss:$16 sps:$4 sm:$0xff]  }
 0x2b2   : > { %v3991_v20 = vpack.c.bf16 %v1536_v63, %v1534_v48 }
 0x2b3   : > { %v3993_v1 = vpack.c.bf16 %v1537_v49, %v1535_v55  ;;  %2036 = vmatpush1.bf16.msra.mxu1 %v2974_v44  ;;  %v1511_v50 = vpop.f32.mrb[24].mxu0 }
 0x2b4   : > { %v2644_v36 = vadd.f32 %v1511_v50, %v3972_v5  ;;  %v1513_v35 = vpop.f32.mrb[25].mxu0  ;;  %2037 = vmatprep.subr.bf16.mxu1 %v2979_v31  ;;  %v2985_v50 = vld [vmem:[#allocation6 + $0x8c] ss:$16 sps:$4 sm:$0xff]  }
 0x2b5   : > { %v2645_v4 = vadd.f32 %v1513_v35, %v3975_v0  ;;  %v1515_v2 = vpop.f32.mrb[26].mxu0  ;;  %2002 = vmatprep.mubr.bf16.mxu1 %v3993_v1 }
 0x2b6   : > { %v2646_v57 = vadd.f32 %v1515_v2, %v3972_v5  ;;  %v1517_v46 = vpop.f32.mrb[27].mxu0  ;;  %2003 = vmatmul.mubr.bf16.gmra.mrb[20].mxu1 %v3991_v20  ;;  %v1538_v44 = vmax.f32 %v2644_v36, 0.0  ;;  %v2983_v2 = vld [vmem:[#allocation6 + $0x88] ss:$16 sps:$4 sm:$0xff]  }
 0x2b7   : > { %v2647_v37 = vadd.f32 %v1517_v46, %v3975_v0  ;;  %2038 = vmatpush1.bf16.msra.mxu1 %v2977_v54  ;;  %v1539_v63 = vmax.f32 %v2645_v4, 0.0  ;;  %v2988_v46 = vld [vmem:[#allocation6 + $0xac] ss:$16 sps:$4 sm:$0xff]  }
 0x2b8   : > { %v1540_v48 = vmax.f32 %v2646_v57, 0.0  ;;  %2039 = vmatprep.subr.bf16.mxu1 %v2982_v18 }
 0x2b9   : > { %v1541_v31 = vmax.f32 %v2647_v37, 0.0  ;;  %v2986_v37 = vld [vmem:[#allocation6 + $0xa8] ss:$16 sps:$4 sm:$0xff]  }
 0x2ba   : > { %v4001_v55 = vpack.c.bf16 %v1540_v48, %v1538_v44  ;;  %v2991_v48 = vld [vmem:[#allocation6 + $0xcc] ss:$16 sps:$4 sm:$0xff]  }
 0x2bb   : > { %v4003_v35 = vpack.c.bf16 %v1541_v31, %v1539_v63  ;;  %2040 = vmatpush1.bf16.msra.mxu1 %v2980_v52  ;;  %v1521_v49 = vpop.f32.mrb[28].mxu0 }
 0x2bc   : > { %v2648_v32 = vadd.f32 %v1521_v49, %v3972_v5  ;;  %v1523_v27 = vpop.f32.mrb[29].mxu0  ;;  %2041 = vmatprep.subr.bf16.mxu1 %v2985_v50  ;;  %v2989_v49 = vld [vmem:[#allocation6 + $0xc8] ss:$16 sps:$4 sm:$0xff]  }
 0x2bd   : > { %v2649_v54 = vadd.f32 %v1523_v27, %v3975_v0  ;;  %v1525_v36 = vpop.f32.mrb[30].mxu0  ;;  %2012 = vmatprep.mubr.bf16.mxu1 %v4003_v35 }
 0x2be   : > { %v2650_v18 = vadd.f32 %v1525_v36, %v3972_v5  ;;  %v1527_v4 = vpop.f32.mrb[31].mxu0  ;;  %2013 = vmatmul.mubr.bf16.gmra.mrb[24].mxu1 %v4001_v55  ;;  %v1542_v52 = vmax.f32 %v2648_v32, 0.0  ;;  %v2992_v5 = vld [vmem:[#allocation6 + $0xe8] ss:$16 sps:$4 sm:$0xff]  }
 0x2bf   : > { %v2651_v57 = vadd.f32 %v1527_v4, %v3975_v0  ;;  %2042 = vmatpush1.bf16.msra.mxu1 %v2983_v2  ;;  %v1543_v50 = vmax.f32 %v2649_v54, 0.0  ;;  %v2997_v0 = vld [vmem:[#allocation6 + $0x10c] ss:$16 sps:$4 sm:$0xff]   ;;  %v2995_v32 = vld [vmem:[#allocation6 + $0x108] ss:$16 sps:$4 sm:$0xff]  }
 0x2c0   : > { %v1544_v44 = vmax.f32 %v2650_v18, 0.0  ;;  %2043 = vmatprep.subr.bf16.mxu1 %v2988_v46  ;;  %v3000_v2 = vld [vmem:[#allocation6 + $0x12c] ss:$16 sps:$4 sm:$0xff]   ;;  %v2998_v46 = vld [vmem:[#allocation6 + $0x128] ss:$16 sps:$4 sm:$0xff]  }
 0x2c1   : > { %v1545_v63 = vmax.f32 %v2651_v57, 0.0  ;;  %v3003_v54 = vld [vmem:[#allocation6 + $0x14c] ss:$16 sps:$4 sm:$0xff]   ;;  %v3001_v36 = vld [vmem:[#allocation6 + $0x148] ss:$16 sps:$4 sm:$0xff]  }
 0x2c2   : > { %v1552_v31 = vpack.c.bf16 %v1544_v44, %v1542_v52  ;;  %v3006_v18 = vld [vmem:[#allocation6 + $0x16c] ss:$16 sps:$4 sm:$0xff]   ;;  %v3004_v4 = vld [vmem:[#allocation6 + $0x168] ss:$16 sps:$4 sm:$0xff]  }
 0x2c3   : > { %v1553_v27 = vpack.c.bf16 %v1545_v63, %v1543_v50  ;;  %2044 = vmatpush1.bf16.msra.mxu1 %v2986_v37  ;;  %v3009_v57 = vld [vmem:[#allocation6 + $0x18c] ss:$16 sps:$4 sm:$0xff]   ;;  %v3010_v37 = vld [vmem:[#allocation6 + $0x1a8] ss:$16 sps:$4 sm:$0xff]   ;;  %v4017_v63 = vld [vmem:[#allocation7] sm:$0xf] }
 0x2c4   : > { %2045 = vmatprep.subr.bf16.mxu1 %v2991_v48  ;;  %v3015_v52 = vld [vmem:[#allocation6 + $0x1cc] ss:$16 sps:$4 sm:$0xff]   ;;  %v3013_v44 = vld [vmem:[#allocation6 + $0x1c8] ss:$16 sps:$4 sm:$0xff]  }
 0x2c5   : > { %2022 = vmatprep.mubr.bf16.mxu1 %v1553_v27  ;;  %v3018_v48 = vld [vmem:[#allocation6 + $0x1ec] ss:$16 sps:$4 sm:$0xff]   ;;  %v3016_v50 = vld [vmem:[#allocation6 + $0x1e8] ss:$16 sps:$4 sm:$0xff]  }
 0x2c6   : > { %2023 = vmatmul.mubr.bf16.gmra.mrb[28].mxu1 %v1552_v31 }
 0x2c7   : > { %2046 = vmatpush1.bf16.msra.mxu1 %v2989_v49  ;;  %2065 = vmatprep.mubr.bf16.mxu1 %v3983_v17  ;;  %v3007_v17 = vld [vmem:[#allocation6 + $0x188] ss:$16 sps:$4 sm:$0xff]   ;;  %v4021_v49 = vrot.slane %v4017_v63, %v3656_v59 }
 0x2c8   : > { %2047 = vmatprep.subr.bf16.mxu1 %v2994_v13  ;;  %v3012_v13 = vld [vmem:[#allocation6 + $0x1ac] ss:$16 sps:$4 sm:$0xff]  }
 0x2cb   : > { %2048 = vmatpush1.bf16.msra.mxu1 %v2992_v5 }
 0x2cc   : > { %2049 = vmatprep.subr.bf16.mxu1 %v2997_v0 }
 0x2cf   : > { %2050 = vmatpush1.bf16.msra.mxu1 %v2995_v32 }
 0x2d0   : > { %2051 = vmatprep.subr.bf16.mxu1 %v3000_v2 }
 0x2d3   : > { %2052 = vmatpush1.bf16.msra.mxu1 %v2998_v46 }
 0x2d4   : > { %2053 = vmatprep.subr.bf16.mxu1 %v3003_v54  ;;  %v4206_v54 = vmax.f32 %v3676_v10, 0.0 }
 0x2d7   : > { %2054 = vmatpush1.bf16.msra.mxu1 %v3001_v36 }
 0x2d8   : > { %2055 = vmatprep.subr.bf16.mxu1 %v3006_v18 }
 0x2db   : > { %2056 = vmatpush1.bf16.msra.mxu1 %v3004_v4 }
 0x2dc   : > { %2057 = vmatprep.subr.bf16.mxu1 %v3009_v57  ;;  %v4207_v57 = vmax.f32 %v3697_v22, 0.0 }
 0x2df   : > { %2058 = vmatpush1.bf16.msra.mxu1 %v3007_v17 }
 0x2e0   : > { %2059 = vmatprep.subr.bf16.mxu1 %v3012_v13 }
 0x2e3   : > { %2060 = vmatpush1.bf16.msra.mxu1 %v3010_v37 }
 0x2e4   : > { %2061 = vmatprep.subr.bf16.mxu1 %v3015_v52  ;;  %v4208_v52 = vmax.f32 %v3700_v24, 0.0 }
 0x2e7   : > { %2062 = vmatpush1.bf16.msra.mxu1 %v3013_v44 }
 0x2e8   : > { %2063 = vmatprep.subr.bf16.mxu1 %v3018_v48 }
 0x2eb   : > { %2064 = vmatpush1.bf16.msra.mxu1 %v3016_v50 }
 0x2ee   : > { %2066 = vmatmul.mubr.bf16.vlgmr.msra.gmra.mrb[32].mxu1 %v3981_v39  ;;  %v4025_v39 = vrot.slane %v4017_v63, %v3651_v56 }
 0x2ef   : > { %2075 = vmatprep.mubr.bf16.mxu1 %v3993_v1 }
 0x2f6   : > { %2076 = vmatmul.mubr.bf16.gmra.mrb[36].mxu1 %v3991_v20 }
 0x2f7   : > { %2085 = vmatprep.mubr.bf16.mxu1 %v4003_v35 }
 0x2fe   : > { %2086 = vmatmul.mubr.bf16.gmra.mrb[40].mxu1 %v4001_v55 }
 0x2ff   : > { %2095 = vmatprep.mubr.bf16.mxu1 %v1553_v27 }
 0x306   : > { %2096 = vmatmul.mubr.bf16.gmra.mrb[44].mxu1 %v1552_v31 }
 0x381   : > { %v1994_v1 = vpop.f32.mrb[16].mxu1 }
 0x382   : > { %v1995_v20 = vadd.f32 %v1994_v1, %v4021_v49  ;;  %v1996_v5 = vpop.f32.mrb[17].mxu1  ;;  %v4209_v1 = vmax.f32 %v3704_v28, 0.0  ;;  %v4211_v28 = vmax.f32 %v3734_v45, 0.0 }
 0x383   : > { %v1997_v35 = vadd.f32 %v1996_v5, %v4025_v39  ;;  %v1998_v0 = vpop.f32.mrb[18].mxu1 }
 0x384   : > { %v2106_v55 = vadd.f32 %v1995_v20, %v940_v15  ;;  %v1999_v31 = vadd.f32 %v1998_v0, %v4021_v49  ;;  %v2000_v27 = vpop.f32.mrb[19].mxu1 }
 0x385   : > { %v2107_v59 = vadd.f32 %v1997_v35, %v941_v12  ;;  %v2001_v56 = vadd.f32 %v2000_v27, %v4025_v39  ;;  %v4210_v35 = vmax.f32 %v3711_v33, 0.0 }
 0x386   : > { %v2138_v32 = vmax.f32 %v2106_v55, 0.0  ;;  %v2110_v2 = vadd.f32 %v1999_v31, %v944_v11 }
 0x387   : > { %v2139_v46 = vmax.f32 %v2107_v59, 0.0  ;;  %v2111_v36 = vadd.f32 %v2001_v56, %v4206_v54 }
 0x388   : > { %v2142_v6 = vmax.f32 %v2110_v2, 0.0 }
 0x389   : > { %v2620_v3 = vpack.c.bf16 %v2139_v46, %v2138_v32  ;;  %v2143_v12 = vmax.f32 %v2111_v36, 0.0  ;;  %v2004_v15 = vpop.f32.mrb[20].mxu1  ;;  %v4212_v36 = vmax.f32 %v3737_v47, 0.0 }
 0x38a   : > { %v2005_v18 = vadd.f32 %v2004_v15, %v4021_v49  ;;  %v2006_v4 = vpop.f32.mrb[21].mxu1  ;;  %v4213_v15 = vmax.f32 %v3741_v51, 0.0  ;;  %v4215_v51 = vmax.f32 %v3782_v23, 0.0 }
 0x38b   : > { %2266 = vst [vmem:[%s4043_s30] sm:$0xff] %v2620_v3  ;;  %v2622_v7 = vpack.c.bf16 %v2143_v12, %v2142_v6  ;;  %v2007_v11 = vadd.f32 %v2006_v4, %v4025_v39  ;;  %v2008_v10 = vpop.f32.mrb[22].mxu1 }
 0x38c   : > { %v2114_v17 = vadd.f32 %v2005_v18, %v4207_v57  ;;  %v2009_v13 = vadd.f32 %v2008_v10, %v4021_v49  ;;  %v2010_v37 = vpop.f32.mrb[23].mxu1 }
 0x38d   : > { %2268 = vst [vmem:[%s4043_s30 + $0x10] sm:$0xff] %v2622_v7  ;;  %v2115_v44 = vadd.f32 %v2007_v11, %v4208_v52  ;;  %v2011_v48 = vadd.f32 %v2010_v37, %v4025_v39  ;;  %v4214_v7 = vmax.f32 %v3748_v60, 0.0 }
 0x38e   : > { %v2146_v50 = vmax.f32 %v2114_v17, 0.0  ;;  %v2118_v20 = vadd.f32 %v2009_v13, %v4209_v1  ;;  %v4216_v1 = vmax.f32 %v3788_v29, 0.0 }
 0x38f   : > { %v2147_v5 = vmax.f32 %v2115_v44, 0.0  ;;  %v2119_v22 = vadd.f32 %v2011_v48, %v4210_v35 }
 0x390   : > { %v2150_v0 = vmax.f32 %v2118_v20, 0.0 }
 0x391   : > { %v2624_v55 = vpack.c.bf16 %v2147_v5, %v2146_v50  ;;  %v2151_v31 = vmax.f32 %v2119_v22, 0.0  ;;  %v2014_v27 = vpop.f32.mrb[24].mxu1  ;;  %v4217_v22 = vmax.f32 %v3792_v34, 0.0 }
 0x392   : > { %v2015_v59 = vadd.f32 %v2014_v27, %v4021_v49  ;;  %v2016_v56 = vpop.f32.mrb[25].mxu1 }
 0x393   : > { %2270 = vst [vmem:[%s4043_s30 + $0x20] sm:$0xff] %v2624_v55  ;;  %v2626_v24 = vpack.c.bf16 %v2151_v31, %v2150_v0  ;;  %v2017_v32 = vadd.f32 %v2016_v56, %v4025_v39  ;;  %v2018_v2 = vpop.f32.mrb[26].mxu1  ;;  %v4218_v31 = vmax.f32 %v3799_v40, 0.0 }
 0x394   : > { %v2122_v46 = vadd.f32 %v2015_v59, %v4211_v28  ;;  %v2019_v54 = vadd.f32 %v2018_v2, %v4021_v49  ;;  %v2020_v33 = vpop.f32.mrb[27].mxu1 }
 0x395   : > { %2272 = vst [vmem:[%s4043_s30 + $0x30] sm:$0xff] %v2626_v24  ;;  %v2123_v6 = vadd.f32 %v2017_v32, %v4212_v36  ;;  %v2021_v3 = vadd.f32 %v2020_v33, %v4025_v39  ;;  %v4219_v24 = vsub.s32 2, %v3648_v53 }
 0x396   : > { %v2154_v12 = vmax.f32 %v2122_v46, 0.0  ;;  %v2126_v18 = vadd.f32 %v2019_v54, %v4213_v15  ;;  %v4221_v54 = vmax.f32 %v3890_v42, 0.0  ;;  %v4223_v15 = vmax.f32 %v3893_v58, 0.0 }
 0x397   : > { %v2155_v4 = vmax.f32 %v2123_v6, 0.0  ;;  %v2127_v45 = vadd.f32 %v2021_v3, %v4214_v7  ;;  %v4092_v29 = vrot.slane %v4017_v63, %v4219_v24  ;;  %v4222_v3 = vmax.f32 %v3776_v19, 0.0 }
 0x398   : > { %v2158_v11 = vmax.f32 %v2126_v18, 0.0  ;;  %v4224_v7 = vmax.f32 %v3785_v26, 0.0  ;;  %v4225_v58 = vmax.f32 %v3906_v14, 0.0 }
 0x399   : > { %v2628_v10 = vpack.c.bf16 %v2155_v4, %v2154_v12  ;;  %v2159_v57 = vmax.f32 %v2127_v45, 0.0  ;;  %v2024_v17 = vpop.f32.mrb[28].mxu1 }
 0x39a   : > { %v2025_v13 = vadd.f32 %v2024_v17, %v4021_v49  ;;  %v2026_v37 = vpop.f32.mrb[29].mxu1 }
 0x39b   : > { %2274 = vst [vmem:[%s4043_s30 + $0x40] sm:$0xff] %v2628_v10  ;;  %v2630_v47 = vpack.c.bf16 %v2159_v57, %v2158_v11  ;;  %v2027_v52 = vadd.f32 %v2026_v37, %v4025_v39  ;;  %v2028_v44 = vpop.f32.mrb[30].mxu1 }
 0x39c   : > { %v2130_v48 = vadd.f32 %v2025_v13, %v4215_v51  ;;  %v2029_v60 = vadd.f32 %v2028_v44, %v4021_v49  ;;  %v2030_v50 = vpop.f32.mrb[31].mxu1  ;;  %v4226_v51 = vmax.f32 %v3884_v16, 0.0 }
 0x39d   : > { %2276 = vst [vmem:[%s4043_s30 + $0x50] sm:$0xff] %v2630_v47  ;;  %v2131_v20 = vadd.f32 %v2027_v52, %v4216_v1  ;;  %v2031_v5 = vadd.f32 %v2030_v50, %v4025_v39  ;;  %v4220_v39 = vsub.s32 3, %v3648_v53  ;;  %v4227_v1 = vmax.f32 %v3909_v8, 0.0 }
 0x39e   : > { %v2162_v35 = vmax.f32 %v2130_v48, 0.0  ;;  %v2134_v0 = vadd.f32 %v2029_v60, %v4217_v22  ;;  %v4229_v8 = vmax.f32 %v3934_v25, 0.0 }
 0x39f   : > { %v2163_v55 = vmax.f32 %v2131_v20, 0.0  ;;  %v2135_v27 = vadd.f32 %v2031_v5, %v4218_v31  ;;  %v4097_v34 = vrot.slane %v4017_v63, %v4220_v39  ;;  %v4230_v39 = vmax.f32 %v3916_v43, 0.0 }
 0x3a0   : > { %v2166_v23 = vmax.f32 %v2134_v0, 0.0 }
 0x3a1   : > { %v2632_v59 = vpack.c.bf16 %v2163_v55, %v2162_v35  ;;  %v2167_v56 = vmax.f32 %v2135_v27, 0.0  ;;  %v4228_v35 = vmax.f32 %v3887_v21, 0.0 }
 0x3a3   : > { %2278 = vst [vmem:[%s4043_s30 + $0x60] sm:$0xff] %v2632_v59  ;;  %v2634_v49 = vpack.c.bf16 %v2167_v56, %v2166_v23 }
 0x3a5   : > { %2280 = vst [vmem:[%s4043_s30 + $0x70] sm:$0xff] %v2634_v49 }
 0x3c1   : > { %v2067_v32 = vpop.f32.mrb[32].mxu1 }
 0x3c2   : > { %v2068_v40 = vadd.f32 %v2067_v32, %v4092_v29  ;;  %v2069_v2 = vpop.f32.mrb[33].mxu1 }
 0x3c3   : > { %v2070_v28 = vadd.f32 %v2069_v2, %v4097_v34  ;;  %v2071_v46 = vpop.f32.mrb[34].mxu1 }
 0x3c4   : > { %v2108_v33 = vadd.f32 %v2068_v40, %v4221_v54  ;;  %v2072_v36 = vadd.f32 %v2071_v46, %v4092_v29  ;;  %v2073_v6 = vpop.f32.mrb[35].mxu1 }
 0x3c5   : > { %v2109_v53 = vadd.f32 %v2070_v28, %v4222_v3  ;;  %v2074_v63 = vadd.f32 %v2073_v6, %v4097_v34  ;;  %v4231_v28 = vmax.f32 %v3936_v38, 0.0  ;;  %v4233_v38 = vmax.f32 %v3957_v61, 0.0 }
 0x3c6   : > { %v2140_v12 = vmax.f32 %v2108_v33, 0.0  ;;  %v2112_v18 = vadd.f32 %v2072_v36, %v4223_v15  ;;  %v4232_v33 = vmax.f32 %v3919_v30, 0.0 }
 0x3c7   : > { %v2141_v4 = vmax.f32 %v2109_v53, 0.0  ;;  %v2113_v45 = vadd.f32 %v2074_v63, %v4224_v7 }
 0x3c8   : > { %v2144_v42 = vmax.f32 %v2112_v18, 0.0 }
 0x3c9   : > { %v2621_v11 = vpack.c.bf16 %v2141_v4, %v2140_v12  ;;  %v2145_v10 = vmax.f32 %v2113_v45, 0.0  ;;  %v2077_v57 = vpop.f32.mrb[36].mxu1  ;;  %v4234_v45 = vmax.f32 %v3943_v41, 0.0 }
 0x3ca   : > { %v2078_v17 = vadd.f32 %v2077_v57, %v4092_v29  ;;  %v2079_v13 = vpop.f32.mrb[37].mxu1  ;;  %v4235_v57 = vmax.f32 %v3959_v62, 0.0 }
 0x3cb   : > { %2267 = vst [vmem:[%s4043_s30 + $0x8] sm:$0xff] %v2621_v11  ;;  %v2623_v19 = vpack.c.bf16 %v2145_v10, %v2144_v42  ;;  %v2080_v37 = vadd.f32 %v2079_v13, %v4097_v34  ;;  %v2081_v47 = vpop.f32.mrb[38].mxu1 }
 0x3cc   : > { %v2116_v52 = vadd.f32 %v2078_v17, %v4225_v58  ;;  %v2082_v44 = vadd.f32 %v2081_v47, %v4092_v29  ;;  %v2083_v26 = vpop.f32.mrb[39].mxu1 }
 0x3cd   : > { %2269 = vst [vmem:[%s4043_s30 + $0x18] sm:$0xff] %v2623_v19  ;;  %v2117_v48 = vadd.f32 %v2080_v37, %v4226_v51  ;;  %v2084_v60 = vadd.f32 %v2083_v26, %v4097_v34  ;;  %v4236_v19 = vmax.f32 %v3946_v9, 0.0 }
 0x3ce   : > { %v2148_v50 = vmax.f32 %v2116_v52, 0.0  ;;  %v2120_v20 = vadd.f32 %v2082_v44, %v4227_v1 }
 0x3cf   : > { %v2149_v5 = vmax.f32 %v2117_v48, 0.0  ;;  %v2121_v14 = vadd.f32 %v2084_v60, %v4228_v35 }
 0x3d0   : > { %v2152_v22 = vmax.f32 %v2120_v20, 0.0 }
 0x3d1   : > { %v2625_v0 = vpack.c.bf16 %v2149_v5, %v2148_v50  ;;  %v2153_v55 = vmax.f32 %v2121_v14, 0.0  ;;  %v2087_v31 = vpop.f32.mrb[40].mxu1 }
 0x3d2   : > { %v2088_v27 = vadd.f32 %v2087_v31, %v4092_v29  ;;  %v2089_v23 = vpop.f32.mrb[41].mxu1 }
 0x3d3   : > { %2271 = vst [vmem:[%s4043_s30 + $0x28] sm:$0xff] %v2625_v0  ;;  %v2627_v16 = vpack.c.bf16 %v2153_v55, %v2152_v22  ;;  %v2090_v59 = vadd.f32 %v2089_v23, %v4097_v34  ;;  %v2091_v56 = vpop.f32.mrb[42].mxu1 }
 0x3d4   : > { %v2124_v49 = vadd.f32 %v2088_v27, %v4229_v8  ;;  %v2092_v24 = vadd.f32 %v2091_v56, %v4092_v29  ;;  %v2093_v21 = vpop.f32.mrb[43].mxu1 }
 0x3d5   : > { %2273 = vst [vmem:[%s4043_s30 + $0x38] sm:$0xff] %v2627_v16  ;;  %v2125_v32 = vadd.f32 %v2090_v59, %v4230_v39  ;;  %v2094_v40 = vadd.f32 %v2093_v21, %v4097_v34 }
 0x3d6   : > { %v2156_v2 = vmax.f32 %v2124_v49, 0.0  ;;  %v2128_v46 = vadd.f32 %v2092_v24, %v4231_v28 }
 0x3d7   : > { %v2157_v54 = vmax.f32 %v2125_v32, 0.0  ;;  %v2129_v25 = vadd.f32 %v2094_v40, %v4232_v33 }
 0x3d8   : > { %v2160_v36 = vmax.f32 %v2128_v46, 0.0 }
 0x3d9   : > { %v2629_v6 = vpack.c.bf16 %v2157_v54, %v2156_v2  ;;  %v2161_v3 = vmax.f32 %v2129_v25, 0.0  ;;  %v2097_v53 = vpop.f32.mrb[44].mxu1 }
 0x3da   : > { %v2098_v63 = vadd.f32 %v2097_v53, %v4092_v29  ;;  %v2099_v12 = vpop.f32.mrb[45].mxu1 }
 0x3db   : > { %2275 = vst [vmem:[%s4043_s30 + $0x48] sm:$0xff] %v2629_v6  ;;  %v2631_v43 = vpack.c.bf16 %v2161_v3, %v2160_v36  ;;  %v2100_v15 = vadd.f32 %v2099_v12, %v4097_v34  ;;  %v2101_v18 = vpop.f32.mrb[46].mxu1 }
 0x3dc   : > { %v2132_v4 = vadd.f32 %v2098_v63, %v4233_v38  ;;  %v2102_v30 = vadd.f32 %v2101_v18, %v4092_v29  ;;  %v2103_v7 = vpop.f32.mrb[47].mxu1 }
 0x3dd   : > { %2277 = vst [vmem:[%s4043_s30 + $0x58] sm:$0xff] %v2631_v43  ;;  %v2133_v42 = vadd.f32 %v2100_v15, %v4234_v45  ;;  %v2104_v11 = vadd.f32 %v2103_v7, %v4097_v34 }
 0x3de   : > { %v2164_v10 = vmax.f32 %v2132_v4, 0.0  ;;  %v2136_v17 = vadd.f32 %v2102_v30, %v4235_v57 }
 0x3df   : > { %v2165_v13 = vmax.f32 %v2133_v42, 0.0  ;;  %v2137_v37 = vadd.f32 %v2104_v11, %v4236_v19 }
 0x3e0   : > { %v2168_v61 = vmax.f32 %v2136_v17, 0.0 }
 0x3e1   : > { %v2633_v47 = vpack.c.bf16 %v2165_v13, %v2164_v10  ;;  %v2169_v58 = vmax.f32 %v2137_v37, 0.0 }
 0x3e3   : > { %2279 = vst [vmem:[%s4043_s30 + $0x68] sm:$0xff] %v2633_v47  ;;  %v2635_v29 = vpack.c.bf16 %v2169_v58, %v2168_v61 }
 0x3e5   : > { %2281 = vst [vmem:[%s4043_s30 + $0x78] sm:$0xff] %v2635_v29 }
 0x3e6 PF: > { %s20_s24 = sadd.s32 1, %s3149_s24  }
 0x3e7   : > { %p17_p3 = scmp.ge.s32.totalorder %s20_s24, 4  }
 0x3e9   :  { %19 = sbr.rel (!%p17_p3) target bundleno = 3 (0x3), region = 95 }
 0x3f0   :  { %2306 = vsyncpa [#allocation3], 1 }
 0x3f1   :  { %2308 = vsyncpa [#allocation3 + $0x1], 1 }
 0x3f2   :  { %2309 = vsyncpa [#allocation5], 1 }
 0x3f3   :  { %2310 = vsyncpa [#allocation8], 1 }

</bundles_post_ra>
